<compile_context>
chip_gen: v5e
topology: v5e:2x2
jax: 0.10.0
libtpu: 0.0.40
codegen_flags: <defaults>
</compile_context>

<pallas_src>
import math
from functools import partial

import jax
import jax.numpy as jnp
from jax.experimental import pallas as pl
from jax.experimental.pallas import tpu as pltpu


def points_encoder_kernel(
    x_ref, mask_ref,
    w1_ref, b1_ref, w2_ref, b2_ref,
    w3h_ref, w3p_ref, b3_ref, w4_ref, b4_ref,
    out_ref,
):
    TB, M, F = x_ref.shape
    rows = TB * M

    x = x_ref[...].reshape(rows, F)              # f32 (rows, F), F tiny (e.g. 3)
    mask = mask_ref[...].reshape(rows, 1)        # f32 (rows, 1), 1.0 = valid

    # ---- first_mlp layer 1: Linear(F,128) with eval-mode BN folded in.
    # K = F is degenerate on the MXU (a full pass for a 3-deep contraction),
    # so do it as a rank-F broadcast update on the VPU, in f32.
    w1 = w1_ref[...]                             # (F, H1) f32
    h1 = x[:, 0:1] * w1[0:1, :] + b1_ref[...]    # (rows, H1)
    for f in range(1, F):
        h1 = h1 + x[:, f:f + 1] * w1[f:f + 1, :]
    h1 = jnp.maximum(h1, 0.0)

    # ---- first_mlp layer 2: Linear(128,256) on the MXU (bf16 in / f32 acc).
    h = jnp.dot(h1.astype(jnp.bfloat16), w2_ref[...],
                preferred_element_type=jnp.float32) + b2_ref[...]
    h = h * mask                                 # scatter-into-zeros semantics

    # Single bf16 copy of h feeds both the max-pool and the w3h matmul.
    h_b = h.astype(jnp.bfloat16).reshape(TB, M, -1)
    pooled = jnp.max(h_b, axis=1)                # (TB, 256); zeros participate

    # ---- second_mlp: Linear(512,256) [BN folded; concat removed via split]
    #      -> ReLU -> Linear(256, C_pad)
    pooled_term = jnp.dot(pooled, w3p_ref[...],
                          preferred_element_type=jnp.float32)           # (TB, 256)
    z = jnp.dot(h_b.reshape(rows, -1), w3h_ref[...],
                preferred_element_type=jnp.float32)                     # (rows, 256)
    z = z.reshape(TB, M, -1) + pooled_term[:, None, :] + b3_ref[...]
    z = jnp.maximum(z, 0.0).reshape(rows, -1)
    z = jnp.dot(z.astype(jnp.bfloat16), w4_ref[...],
                preferred_element_type=jnp.float32) + b4_ref[...]       # (rows, Cp)
    z = z * mask                                 # invalid rows -> exactly 0

    out_ref[0] = jnp.max(z.reshape(TB, M, -1), axis=1)                  # (TB, Cp)


def _num_tensorcores():
    """Best-effort TensorCore count per chip (v7x=2, v5e/v6e=1)."""
    try:
        info = pltpu.get_tpu_info()
        for name in ("num_cores", "core_count", "num_tensorcores",
                     "tensorcore_count", "cores_per_chip"):
            v = getattr(info, name, None)
            if isinstance(v, int) and v >= 1:
                return v
    except Exception:
        pass
    try:
        kind = jax.devices()[0].device_kind.lower()
        if "v7" in kind or "7x" in kind:
            return 2
    except Exception:
        pass
    return 1


@partial(jax.jit, static_argnames=("n_cores", "single_buffer_weights"))
def _points_encoder_impl(x, mask, params, *, n_cores=1, single_buffer_weights=True):
    B, M, F = x.shape
    H1 = params["w1"].shape[1]                   # 128
    H = params["w2"].shape[1]                    # 256
    C = params["w4"].shape[1]
    C_pad = ((C + 127) // 128) * 128             # lane-dense output stores

    # --- fold eval-mode BatchNorm into the preceding Linear; split w3 so the
    #     (rows, 512) concat never materializes.  First layer stays f32 (VPU).
    w1f = params["w1"] * params["s1"]
    b1f = params["b1"] * params["s1"] + params["t1"]
    w2f = params["w2"].astype(jnp.bfloat16)
    b2f = params["b2"]
    w3h = (params["w3"][:H] * params["s2"]).astype(jnp.bfloat16)
    w3p = (params["w3"][H:] * params["s2"]).astype(jnp.bfloat16)
    b3f = params["b3"] * params["s2"] + params["t2"]
    w4f = jnp.pad(params["w4"], ((0, 0), (0, C_pad - C))).astype(jnp.bfloat16)
    b4f = jnp.pad(params["b4"], ((0, 0), (0, C_pad - C)))

    # --- choose TB: ~4096 rows per grid step (amortizes the ~0.35us per-step
    #     overhead).  Only force a grid split -- with G a multiple of the core
    #     count for an even shard -- on multi-TC chips (v7x).  On single-TC
    #     v5e/v6e the grid is a sequential loop, so one big step wins.
    TARGET_ROWS = 4096
    TB = min(B, max(1, TARGET_ROWS // M))
    if n_cores > 1 and B > 1:
        G = n_cores * pl.cdiv(B, TB * n_cores)   # multiple of n_cores
        TB = pl.cdiv(B, G)
    else:
        G = pl.cdiv(B, TB)
    B_pad = G * TB

    x_f = x.astype(jnp.float32)
    mask_f = mask.astype(jnp.float32)[..., None]          # (B, M, 1)
    if B_pad != B:
        x_f = jnp.pad(x_f, ((0, B_pad - B), (0, 0), (0, 0)))
        mask_f = jnp.pad(mask_f, ((0, B_pad - B), (0, 0), (0, 0)))

    weights = (w1f, b1f, w2f, b2f, w3h, w3p, b3f, w4f, b4f)

    def wspec(shape):
        idx = lambda g, _n=len(shape): (0,) * _n
        if single_buffer_weights:
            # Grid-invariant operands: no second pipeline buffer needed.
            return pl.BlockSpec(shape, idx, pipeline_mode=pl.Buffered(1))
        return pl.BlockSpec(shape, idx)

    # --- advisory cost estimate for the XLA scheduler.
    rows_total = B_pad * M
    flops = (2 * rows_total * (F * H1 + H1 * H + H * H + H * C_pad)
             + 2 * B_pad * H * H)
    weight_bytes = sum(int(w.size) * w.dtype.itemsize for w in weights)
    bytes_accessed = (int(x_f.size) * 4 + int(mask_f.size) * 4
                      + weight_bytes + B_pad * C_pad * 4)

    # --- VMEM budget: per-step live intermediates + double-buffered I/O.
    rows_step = TB * M
    vmem_est = (
        2 * rows_step * (F * 4 + 4)                        # x + mask blocks (2 bufs)
        + 2 * TB * C_pad * 4 * 2                           # output blocks (2 bufs)
        + weight_bytes * (1 if single_buffer_weights else 2)
        + rows_step * (H1 * 4 + H * 4 + H * 2 + H * 4 + H * 2 + C_pad * 4)
    )
    vmem_limit = int(min(max(2 * vmem_est, 32 * 1024 * 1024), 56 * 1024 * 1024))

    out = pl.pallas_call(
        points_encoder_kernel,
        out_shape=jax.ShapeDtypeStruct((G, TB, C_pad), jnp.float32),
        grid=(G,),
        in_specs=[
            pl.BlockSpec((TB, M, F), lambda g: (g, 0, 0)),
            pl.BlockSpec((TB, M, 1), lambda g: (g, 0, 0)),
            *[wspec(w.shape) for w in weights],
        ],
        out_specs=pl.BlockSpec((1, TB, C_pad), lambda g: (g, 0, 0)),
        compiler_params=pltpu.CompilerParams(
            dimension_semantics=("parallel",),
            vmem_limit_bytes=vmem_limit),
        cost_estimate=pl.CostEstimate(
            flops=int(flops), transcendentals=0,
            bytes_accessed=int(bytes_accessed)),
    )(x_f, mask_f, *weights)

    return out.reshape(B_pad, C_pad)[:B, :C]               # (B, C)


def points_encoder(x, mask, params):
    n_cores = _num_tensorcores()
    try:
        out = _points_encoder_impl(x, mask, params, n_cores=n_cores,
                                   single_buffer_weights=True)
        return jax.block_until_ready(out)
    except Exception:
        # Fallback if this JAX build rejects single-buffered (pl.Buffered(1))
        # weight BlockSpecs; identical math, default double-buffering.
        return _points_encoder_impl(x, mask, params, n_cores=n_cores,
                                    single_buffer_weights=False)


def points_encoder_ref(x, mask, params):
    """Pure-JAX f32 reference mirroring the PyTorch module (BN in eval mode)."""
    B, M, F = x.shape
    m = mask.astype(jnp.float32)[..., None]
    h = x.reshape(B * M, F) @ params["w1"] + params["b1"]
    h = h * params["s1"] + params["t1"]
    h = jnp.maximum(h, 0.0)
    h = h @ params["w2"] + params["b2"]
    h = h.reshape(B, M, -1) * m
    pooled = jnp.max(h, axis=1, keepdims=True)
    feat = jnp.concatenate([h, jnp.broadcast_to(pooled, h.shape)], axis=-1)
    z = feat.reshape(B * M, -1) @ params["w3"] + params["b3"]
    z = z * params["s2"] + params["t2"]
    z = jnp.maximum(z, 0.0)
    z = z @ params["w4"] + params["b4"]
    z = z.reshape(B, M, -1) * m
    return jnp.max(z, axis=1)


def init_params(key, feat_channel, encoder_channel):
    ks = jax.random.split(key, 6)
    eps = 1e-5

    def linear(k, fan_in, fan_out):
        bound = 1.0 / math.sqrt(fan_in)
        kw, kb = jax.random.split(k)
        w = jax.random.uniform(kw, (fan_in, fan_out), jnp.float32, -bound, bound)
        b = jax.random.uniform(kb, (1, fan_out), jnp.float32, -bound, bound)
        return w, b

    def batchnorm(k, n):
        kg, kb, km, kv = jax.random.split(k, 4)
        gamma = 1.0 + 0.1 * jax.random.normal(kg, (1, n), jnp.float32)
        beta = 0.1 * jax.random.normal(kb, (1, n), jnp.float32)
        mean = 0.1 * jax.random.normal(km, (1, n), jnp.float32)
        var = jnp.abs(1.0 + 0.1 * jax.random.normal(kv, (1, n), jnp.float32))
        scale = gamma * jax.lax.rsqrt(var + eps)
        shift = beta - mean * scale
        return scale, shift

    w1, b1 = linear(ks[0], feat_channel, 128)
    w2, b2 = linear(ks[1], 128, 256)
    w3, b3 = linear(ks[2], 512, 256)
    w4, b4 = linear(ks[3], 256, encoder_channel)
    s1, t1 = batchnorm(ks[4], 128)
    s2, t2 = batchnorm(ks[5], 256)

    return dict(w1=w1, b1=b1, s1=s1, t1=t1, w2=w2, b2=b2,
                w3=w3, b3=b3, s2=s2, t2=t2, w4=w4, b4=b4)


if __name__ == "__main__":
    key = jax.random.PRNGKey(0)
    B, M, F, C = 8, 16, 3, 64      # batch, points per set, feat_channel, encoder_channel

    kx, km, kp = jax.random.split(key, 3)
    x = jax.random.normal(kx, (B, M, F), jnp.float32)
    mask = jax.random.uniform(km, (B, M)) > 0.3    # bool mask, some invalid points
    params = init_params(kp, F, C)

    out = points_encoder(x, mask, params)
    out = jax.block_until_ready(out)
    assert out.shape == (B, C) and out.dtype == jnp.float32

    ref = points_encoder_ref(x, mask, params)
    max_err = float(jnp.max(jnp.abs(out - ref)))
    assert max_err < 0.1, f"max abs err {max_err}"   # loose: bf16 MXU operands

    print("KERNEL_OK")
</pallas_src>

<mosaic_0001>
module attributes {stable_mosaic.version = 11 : i64} {
  func.func @points_encoder_kernel(%arg0: i32, %arg1: memref<8x16x3xf32, #tpu.memory_space<vmem>>, %arg2: memref<8x16x1xf32, #tpu.memory_space<vmem>>, %arg3: memref<3x128xf32, #tpu.memory_space<vmem>>, %arg4: memref<1x128xf32, #tpu.memory_space<vmem>>, %arg5: memref<128x256xbf16, #tpu.memory_space<vmem>>, %arg6: memref<1x256xf32, #tpu.memory_space<vmem>>, %arg7: memref<256x256xbf16, #tpu.memory_space<vmem>>, %arg8: memref<256x256xbf16, #tpu.memory_space<vmem>>, %arg9: memref<1x256xf32, #tpu.memory_space<vmem>>, %arg10: memref<256x128xbf16, #tpu.memory_space<vmem>>, %arg11: memref<1x128xf32, #tpu.memory_space<vmem>>, %arg12: memref<1x8x128xf32, #tpu.memory_space<vmem>>) attributes {dimension_semantics = [#tpu.dimension_semantics<parallel>], iteration_bounds = array<i64: 1>, scalar_prefetch = 0 : i64, scratch_operands = 0 : i64, tpu.core_type = #tpu.core_type<tc>, window_params = [{transform_indices = @transform_0, window_bounds = array<i64: 8, 16, 3>}, {transform_indices = @transform_1, window_bounds = array<i64: 8, 16, 1>}, {pipeline_mode = #tpu.pipeline_mode<synchronous>, transform_indices = @transform_2, window_bounds = array<i64: 3, 128>}, {pipeline_mode = #tpu.pipeline_mode<synchronous>, transform_indices = @transform_3, window_bounds = array<i64: 1, 128>}, {pipeline_mode = #tpu.pipeline_mode<synchronous>, transform_indices = @transform_4, window_bounds = array<i64: 128, 256>}, {pipeline_mode = #tpu.pipeline_mode<synchronous>, transform_indices = @transform_5, window_bounds = array<i64: 1, 256>}, {pipeline_mode = #tpu.pipeline_mode<synchronous>, transform_indices = @transform_6, window_bounds = array<i64: 256, 256>}, {pipeline_mode = #tpu.pipeline_mode<synchronous>, transform_indices = @transform_7, window_bounds = array<i64: 256, 256>}, {pipeline_mode = #tpu.pipeline_mode<synchronous>, transform_indices = @transform_8, window_bounds = array<i64: 1, 256>}, {pipeline_mode = #tpu.pipeline_mode<synchronous>, transform_indices = @transform_9, window_bounds = array<i64: 256, 128>}, {pipeline_mode = #tpu.pipeline_mode<synchronous>, transform_indices = @transform_10, window_bounds = array<i64: 1, 128>}, {transform_indices = @transform_11, window_bounds = array<i64: 1, 8, 128>}]} {
    %c0 = arith.constant 0 : index
    %c0_0 = arith.constant 0 : index
    %c0_1 = arith.constant 0 : index
    %0 = vector.load %arg1[%c0, %c0_0, %c0_1] : memref<8x16x3xf32, #tpu.memory_space<vmem>>, vector<8x16x3xf32>
    %1 = vector.shape_cast %0 : vector<8x16x3xf32> to vector<128x3xf32>
    %c0_2 = arith.constant 0 : index
    %c0_3 = arith.constant 0 : index
    %c0_4 = arith.constant 0 : index
    %2 = vector.load %arg2[%c0_2, %c0_3, %c0_4] : memref<8x16x1xf32, #tpu.memory_space<vmem>>, vector<8x16x1xf32>
    %3 = vector.shape_cast %2 : vector<8x16x1xf32> to vector<128x1xf32>
    %c0_5 = arith.constant 0 : index
    %c0_6 = arith.constant 0 : index
    %4 = vector.load %arg3[%c0_5, %c0_6] : memref<3x128xf32, #tpu.memory_space<vmem>>, vector<3x128xf32>
    %5 = vector.extract_strided_slice %1 {offsets = [0, 0], sizes = [128, 1], strides = [1, 1]} : vector<128x3xf32> to vector<128x1xf32>
    %6 = vector.extract_strided_slice %4 {offsets = [0, 0], sizes = [1, 128], strides = [1, 1]} : vector<3x128xf32> to vector<1x128xf32>
    %7 = vector.broadcast %5 : vector<128x1xf32> to vector<128x128xf32>
    %8 = vector.broadcast %6 : vector<1x128xf32> to vector<128x128xf32>
    %9 = arith.mulf %7, %8 : vector<128x128xf32>
    %c0_7 = arith.constant 0 : index
    %c0_8 = arith.constant 0 : index
    %10 = vector.load %arg4[%c0_7, %c0_8] : memref<1x128xf32, #tpu.memory_space<vmem>>, vector<1x128xf32>
    %11 = vector.broadcast %10 : vector<1x128xf32> to vector<128x128xf32>
    %12 = arith.addf %9, %11 : vector<128x128xf32>
    %13 = vector.extract_strided_slice %1 {offsets = [0, 1], sizes = [128, 1], strides = [1, 1]} : vector<128x3xf32> to vector<128x1xf32>
    %14 = vector.extract_strided_slice %4 {offsets = [1, 0], sizes = [1, 128], strides = [1, 1]} : vector<3x128xf32> to vector<1x128xf32>
    %15 = vector.broadcast %13 : vector<128x1xf32> to vector<128x128xf32>
    %16 = vector.broadcast %14 : vector<1x128xf32> to vector<128x128xf32>
    %17 = arith.mulf %15, %16 : vector<128x128xf32>
    %18 = arith.addf %12, %17 : vector<128x128xf32>
    %19 = vector.extract_strided_slice %1 {offsets = [0, 2], sizes = [128, 1], strides = [1, 1]} : vector<128x3xf32> to vector<128x1xf32>
    %20 = vector.extract_strided_slice %4 {offsets = [2, 0], sizes = [1, 128], strides = [1, 1]} : vector<3x128xf32> to vector<1x128xf32>
    %21 = vector.broadcast %19 : vector<128x1xf32> to vector<128x128xf32>
    %22 = vector.broadcast %20 : vector<1x128xf32> to vector<128x128xf32>
    %23 = arith.mulf %21, %22 : vector<128x128xf32>
    %24 = arith.addf %18, %23 : vector<128x128xf32>
    %cst = arith.constant 0.000000e+00 : f32
    %25 = vector.broadcast %cst : f32 to vector<128x128xf32>
    %26 = arith.maximumf %24, %25 : vector<128x128xf32>
    %27 = arith.truncf %26 : vector<128x128xf32> to vector<128x128xbf16>
    %c0_9 = arith.constant 0 : index
    %c0_10 = arith.constant 0 : index
    %28 = vector.load %arg5[%c0_9, %c0_10] : memref<128x256xbf16, #tpu.memory_space<vmem>>, vector<128x256xbf16>
    %cst_11 = arith.constant dense<0.000000e+00> : vector<128x256xf32>
    %29 = tpu.matmul %27, %28, %cst_11 {dimension_numbers = #tpu.dot_dimension_numbers<[1], [0], [0], [1], [0, 0, 1, 1], [], []>} : vector<128x128xbf16>, vector<128x256xbf16>, vector<128x256xf32> -> vector<128x256xf32>
    %c0_12 = arith.constant 0 : index
    %c0_13 = arith.constant 0 : index
    %30 = vector.load %arg6[%c0_12, %c0_13] : memref<1x256xf32, #tpu.memory_space<vmem>>, vector<1x256xf32>
    %31 = vector.broadcast %30 : vector<1x256xf32> to vector<128x256xf32>
    %32 = arith.addf %29, %31 : vector<128x256xf32>
    %33 = vector.broadcast %3 : vector<128x1xf32> to vector<128x256xf32>
    %34 = arith.mulf %32, %33 : vector<128x256xf32>
    %35 = arith.truncf %34 : vector<128x256xf32> to vector<128x256xbf16>
    %36 = vector.shape_cast %35 : vector<128x256xbf16> to vector<8x16x256xbf16>
    %cst_14 = arith.constant dense<0xFF80> : vector<8x256xbf16>
    %37 = vector.multi_reduction <maximumf>, %36, %cst_14 [1] : vector<8x16x256xbf16> to vector<8x256xbf16>
    %c0_15 = arith.constant 0 : index
    %c0_16 = arith.constant 0 : index
    %38 = vector.load %arg8[%c0_15, %c0_16] : memref<256x256xbf16, #tpu.memory_space<vmem>>, vector<256x256xbf16>
    %cst_17 = arith.constant dense<0.000000e+00> : vector<8x256xf32>
    %39 = tpu.matmul %37, %38, %cst_17 {dimension_numbers = #tpu.dot_dimension_numbers<[1], [0], [0], [1], [0, 0, 1, 1], [], []>} : vector<8x256xbf16>, vector<256x256xbf16>, vector<8x256xf32> -> vector<8x256xf32>
    %40 = vector.shape_cast %36 : vector<8x16x256xbf16> to vector<128x256xbf16>
    %c0_18 = arith.constant 0 : index
    %c0_19 = arith.constant 0 : index
    %41 = vector.load %arg7[%c0_18, %c0_19] : memref<256x256xbf16, #tpu.memory_space<vmem>>, vector<256x256xbf16>
    %cst_20 = arith.constant dense<0.000000e+00> : vector<128x256xf32>
    %42 = tpu.matmul %40, %41, %cst_20 {dimension_numbers = #tpu.dot_dimension_numbers<[1], [0], [0], [1], [0, 0, 1, 1], [], []>} : vector<128x256xbf16>, vector<256x256xbf16>, vector<128x256xf32> -> vector<128x256xf32>
    %43 = vector.shape_cast %42 : vector<128x256xf32> to vector<8x16x256xf32>
    %44 = vector.shape_cast %39 : vector<8x256xf32> to vector<8x1x256xf32>
    %45 = vector.broadcast %44 : vector<8x1x256xf32> to vector<8x16x256xf32>
    %46 = arith.addf %43, %45 : vector<8x16x256xf32>
    %c0_21 = arith.constant 0 : index
    %c0_22 = arith.constant 0 : index
    %47 = vector.load %arg9[%c0_21, %c0_22] : memref<1x256xf32, #tpu.memory_space<vmem>>, vector<1x256xf32>
    %48 = vector.shape_cast %47 : vector<1x256xf32> to vector<1x1x256xf32>
    %49 = vector.broadcast %48 : vector<1x1x256xf32> to vector<8x16x256xf32>
    %50 = arith.addf %46, %49 : vector<8x16x256xf32>
    %cst_23 = arith.constant 0.000000e+00 : f32
    %51 = vector.broadcast %cst_23 : f32 to vector<8x16x256xf32>
    %52 = arith.maximumf %50, %51 : vector<8x16x256xf32>
    %53 = vector.shape_cast %52 : vector<8x16x256xf32> to vector<128x256xf32>
    %54 = arith.truncf %53 : vector<128x256xf32> to vector<128x256xbf16>
    %c0_24 = arith.constant 0 : index
    %c0_25 = arith.constant 0 : index
    %55 = vector.load %arg10[%c0_24, %c0_25] : memref<256x128xbf16, #tpu.memory_space<vmem>>, vector<256x128xbf16>
    %cst_26 = arith.constant dense<0.000000e+00> : vector<128x128xf32>
    %56 = tpu.matmul %54, %55, %cst_26 {dimension_numbers = #tpu.dot_dimension_numbers<[1], [0], [0], [1], [0, 0, 1, 1], [], []>} : vector<128x256xbf16>, vector<256x128xbf16>, vector<128x128xf32> -> vector<128x128xf32>
    %c0_27 = arith.constant 0 : index
    %c0_28 = arith.constant 0 : index
    %57 = vector.load %arg11[%c0_27, %c0_28] : memref<1x128xf32, #tpu.memory_space<vmem>>, vector<1x128xf32>
    %58 = vector.broadcast %57 : vector<1x128xf32> to vector<128x128xf32>
    %59 = arith.addf %56, %58 : vector<128x128xf32>
    %60 = vector.broadcast %3 : vector<128x1xf32> to vector<128x128xf32>
    %61 = arith.mulf %59, %60 : vector<128x128xf32>
    %62 = vector.shape_cast %61 : vector<128x128xf32> to vector<8x16x128xf32>
    %cst_29 = arith.constant dense<0xFF800000> : vector<8x128xf32>
    %63 = vector.multi_reduction <maximumf>, %62, %cst_29 [1] : vector<8x16x128xf32> to vector<8x128xf32>
    %c0_30 = arith.constant 0 : index
    %c0_31 = arith.constant 0 : index
    %c0_32 = arith.constant 0 : index
    %64 = vector.load %arg12[%c0_30, %c0_31, %c0_32] : memref<1x8x128xf32, #tpu.memory_space<vmem>>, vector<1x8x128xf32>
    %65 = vector.shape_cast %64 : vector<1x8x128xf32> to vector<8x128xf32>
    %66 = vector.shape_cast %63 : vector<8x128xf32> to vector<1x8x128xf32>
    tpu.vector_store %arg12[%c0_30, %c0_31, %c0_32], %66 {strides = array<i32>} : memref<1x8x128xf32, #tpu.memory_space<vmem>>, vector<1x8x128xf32>,
    return
  }
  func.func @transform_0(%arg0: i32) -> (i32, i32, i32) {
    %c0_i32 = arith.constant 0 : i32
    %c0_i32_0 = arith.constant 0 : i32
    %c0_i32_1 = arith.constant 0 : i32
    return %arg0, %c0_i32, %c0_i32_0 : i32, i32, i32
  }
  func.func @transform_1(%arg0: i32) -> (i32, i32, i32) {
    %c0_i32 = arith.constant 0 : i32
    %c0_i32_0 = arith.constant 0 : i32
    %c0_i32_1 = arith.constant 0 : i32
    return %arg0, %c0_i32, %c0_i32_0 : i32, i32, i32
  }
  func.func @transform_2(%arg0: i32) -> (i32, i32) {
    %c0_i32 = arith.constant 0 : i32
    %c0_i32_0 = arith.constant 0 : i32
    %c0_i32_1 = arith.constant 0 : i32
    return %c0_i32, %c0_i32_0 : i32, i32
  }
  func.func @transform_3(%arg0: i32) -> (i32, i32) {
    %c0_i32 = arith.constant 0 : i32
    %c0_i32_0 = arith.constant 0 : i32
    %c0_i32_1 = arith.constant 0 : i32
    return %c0_i32, %c0_i32_0 : i32, i32
  }
  func.func @transform_4(%arg0: i32) -> (i32, i32) {
    %c0_i32 = arith.constant 0 : i32
    %c0_i32_0 = arith.constant 0 : i32
    %c0_i32_1 = arith.constant 0 : i32
    return %c0_i32, %c0_i32_0 : i32, i32
  }
  func.func @transform_5(%arg0: i32) -> (i32, i32) {
    %c0_i32 = arith.constant 0 : i32
    %c0_i32_0 = arith.constant 0 : i32
    %c0_i32_1 = arith.constant 0 : i32
    return %c0_i32, %c0_i32_0 : i32, i32
  }
  func.func @transform_6(%arg0: i32) -> (i32, i32) {
    %c0_i32 = arith.constant 0 : i32
    %c0_i32_0 = arith.constant 0 : i32
    %c0_i32_1 = arith.constant 0 : i32
    return %c0_i32, %c0_i32_0 : i32, i32
  }
  func.func @transform_7(%arg0: i32) -> (i32, i32) {
    %c0_i32 = arith.constant 0 : i32
    %c0_i32_0 = arith.constant 0 : i32
    %c0_i32_1 = arith.constant 0 : i32
    return %c0_i32, %c0_i32_0 : i32, i32
  }
  func.func @transform_8(%arg0: i32) -> (i32, i32) {
    %c0_i32 = arith.constant 0 : i32
    %c0_i32_0 = arith.constant 0 : i32
    %c0_i32_1 = arith.constant 0 : i32
    return %c0_i32, %c0_i32_0 : i32, i32
  }
  func.func @transform_9(%arg0: i32) -> (i32, i32) {
    %c0_i32 = arith.constant 0 : i32
    %c0_i32_0 = arith.constant 0 : i32
    %c0_i32_1 = arith.constant 0 : i32
    return %c0_i32, %c0_i32_0 : i32, i32
  }
  func.func @transform_10(%arg0: i32) -> (i32, i32) {
    %c0_i32 = arith.constant 0 : i32
    %c0_i32_0 = arith.constant 0 : i32
    %c0_i32_1 = arith.constant 0 : i32
    return %c0_i32, %c0_i32_0 : i32, i32
  }
  func.func @transform_11(%arg0: i32) -> (i32, i32, i32) {
    %c0_i32 = arith.constant 0 : i32
    %c0_i32_0 = arith.constant 0 : i32
    %c0_i32_1 = arith.constant 0 : i32
    return %arg0, %c0_i32, %c0_i32_0 : i32, i32, i32
  }
}

module attributes {stable_mosaic.version = 11 : i64} {
  func.func @points_encoder_kernel(%arg0: i32, %arg1: memref<8x16x3xf32, #tpu.memory_space<vmem>>, %arg2: memref<8x16x1xf32, #tpu.memory_space<vmem>>, %arg3: memref<3x128xf32, #tpu.memory_space<vmem>>, %arg4: memref<1x128xf32, #tpu.memory_space<vmem>>, %arg5: memref<128x256xbf16, #tpu.memory_space<vmem>>, %arg6: memref<1x256xf32, #tpu.memory_space<vmem>>, %arg7: memref<256x256xbf16, #tpu.memory_space<vmem>>, %arg8: memref<256x256xbf16, #tpu.memory_space<vmem>>, %arg9: memref<1x256xf32, #tpu.memory_space<vmem>>, %arg10: memref<256x128xbf16, #tpu.memory_space<vmem>>, %arg11: memref<1x128xf32, #tpu.memory_space<vmem>>, %arg12: memref<1x8x128xf32, #tpu.memory_space<vmem>>) attributes {dimension_semantics = [#tpu.dimension_semantics<parallel>], iteration_bounds = array<i64: 1>, scalar_prefetch = 0 : i64, scratch_operands = 0 : i64, tpu.core_type = #tpu.core_type<tc>, window_params = [{transform_indices = @transform_0, window_bounds = array<i64: 8, 16, 3>}, {transform_indices = @transform_1, window_bounds = array<i64: 8, 16, 1>}, {pipeline_mode = #tpu.pipeline_mode<synchronous>, transform_indices = @transform_2, window_bounds = array<i64: 3, 128>}, {pipeline_mode = #tpu.pipeline_mode<synchronous>, transform_indices = @transform_3, window_bounds = array<i64: 1, 128>}, {pipeline_mode = #tpu.pipeline_mode<synchronous>, transform_indices = @transform_4, window_bounds = array<i64: 128, 256>}, {pipeline_mode = #tpu.pipeline_mode<synchronous>, transform_indices = @transform_5, window_bounds = array<i64: 1, 256>}, {pipeline_mode = #tpu.pipeline_mode<synchronous>, transform_indices = @transform_6, window_bounds = array<i64: 256, 256>}, {pipeline_mode = #tpu.pipeline_mode<synchronous>, transform_indices = @transform_7, window_bounds = array<i64: 256, 256>}, {pipeline_mode = #tpu.pipeline_mode<synchronous>, transform_indices = @transform_8, window_bounds = array<i64: 1, 256>}, {pipeline_mode = #tpu.pipeline_mode<synchronous>, transform_indices = @transform_9, window_bounds = array<i64: 256, 128>}, {pipeline_mode = #tpu.pipeline_mode<synchronous>, transform_indices = @transform_10, window_bounds = array<i64: 1, 128>}, {transform_indices = @transform_11, window_bounds = array<i64: 1, 8, 128>}]} {
    %c0 = arith.constant 0 : index
    %c0_0 = arith.constant 0 : index
    %c0_1 = arith.constant 0 : index
    %0 = vector.load %arg1[%c0, %c0_0, %c0_1] : memref<8x16x3xf32, #tpu.memory_space<vmem>>, vector<8x16x3xf32>
    %1 = vector.shape_cast %0 : vector<8x16x3xf32> to vector<128x3xf32>
    %c0_2 = arith.constant 0 : index
    %c0_3 = arith.constant 0 : index
    %c0_4 = arith.constant 0 : index
    %2 = vector.load %arg2[%c0_2, %c0_3, %c0_4] : memref<8x16x1xf32, #tpu.memory_space<vmem>>, vector<8x16x1xf32>
    %3 = vector.shape_cast %2 : vector<8x16x1xf32> to vector<128x1xf32>
    %c0_5 = arith.constant 0 : index
    %c0_6 = arith.constant 0 : index
    %4 = vector.load %arg3[%c0_5, %c0_6] : memref<3x128xf32, #tpu.memory_space<vmem>>, vector<3x128xf32>
    %5 = vector.extract_strided_slice %1 {offsets = [0, 0], sizes = [128, 1], strides = [1, 1]} : vector<128x3xf32> to vector<128x1xf32>
    %6 = vector.extract_strided_slice %4 {offsets = [0, 0], sizes = [1, 128], strides = [1, 1]} : vector<3x128xf32> to vector<1x128xf32>
    %7 = vector.broadcast %5 : vector<128x1xf32> to vector<128x128xf32>
    %8 = vector.broadcast %6 : vector<1x128xf32> to vector<128x128xf32>
    %9 = arith.mulf %7, %8 : vector<128x128xf32>
    %c0_7 = arith.constant 0 : index
    %c0_8 = arith.constant 0 : index
    %10 = vector.load %arg4[%c0_7, %c0_8] : memref<1x128xf32, #tpu.memory_space<vmem>>, vector<1x128xf32>
    %11 = vector.broadcast %10 : vector<1x128xf32> to vector<128x128xf32>
    %12 = arith.addf %9, %11 : vector<128x128xf32>
    %13 = vector.extract_strided_slice %1 {offsets = [0, 1], sizes = [128, 1], strides = [1, 1]} : vector<128x3xf32> to vector<128x1xf32>
    %14 = vector.extract_strided_slice %4 {offsets = [1, 0], sizes = [1, 128], strides = [1, 1]} : vector<3x128xf32> to vector<1x128xf32>
    %15 = vector.broadcast %13 : vector<128x1xf32> to vector<128x128xf32>
    %16 = vector.broadcast %14 : vector<1x128xf32> to vector<128x128xf32>
    %17 = arith.mulf %15, %16 : vector<128x128xf32>
    %18 = arith.addf %12, %17 : vector<128x128xf32>
    %19 = vector.extract_strided_slice %1 {offsets = [0, 2], sizes = [128, 1], strides = [1, 1]} : vector<128x3xf32> to vector<128x1xf32>
    %20 = vector.extract_strided_slice %4 {offsets = [2, 0], sizes = [1, 128], strides = [1, 1]} : vector<3x128xf32> to vector<1x128xf32>
    %21 = vector.broadcast %19 : vector<128x1xf32> to vector<128x128xf32>
    %22 = vector.broadcast %20 : vector<1x128xf32> to vector<128x128xf32>
    %23 = arith.mulf %21, %22 : vector<128x128xf32>
    %24 = arith.addf %18, %23 : vector<128x128xf32>
    %cst = arith.constant 0.000000e+00 : f32
    %25 = vector.broadcast %cst : f32 to vector<128x128xf32>
    %26 = arith.maximumf %24, %25 : vector<128x128xf32>
    %27 = arith.truncf %26 : vector<128x128xf32> to vector<128x128xbf16>
    %c0_9 = arith.constant 0 : index
    %c0_10 = arith.constant 0 : index
    %28 = vector.load %arg5[%c0_9, %c0_10] : memref<128x256xbf16, #tpu.memory_space<vmem>>, vector<128x256xbf16>
    %cst_11 = arith.constant dense<0.000000e+00> : vector<128x256xf32>
    %29 = tpu.matmul %27, %28, %cst_11 {dimension_numbers = #tpu.dot_dimension_numbers<[1], [0], [0], [1], [0, 0, 1, 1], [], []>} : vector<128x128xbf16>, vector<128x256xbf16>, vector<128x256xf32> -> vector<128x256xf32>
    %c0_12 = arith.constant 0 : index
    %c0_13 = arith.constant 0 : index
    %30 = vector.load %arg6[%c0_12, %c0_13] : memref<1x256xf32, #tpu.memory_space<vmem>>, vector<1x256xf32>
    %31 = vector.broadcast %30 : vector<1x256xf32> to vector<128x256xf32>
    %32 = arith.addf %29, %31 : vector<128x256xf32>
    %33 = vector.broadcast %3 : vector<128x1xf32> to vector<128x256xf32>
    %34 = arith.mulf %32, %33 : vector<128x256xf32>
    %35 = arith.truncf %34 : vector<128x256xf32> to vector<128x256xbf16>
    %36 = vector.shape_cast %35 : vector<128x256xbf16> to vector<8x16x256xbf16>
    %cst_14 = arith.constant dense<0xFF80> : vector<8x256xbf16>
    %37 = vector.multi_reduction <maximumf>, %36, %cst_14 [1] : vector<8x16x256xbf16> to vector<8x256xbf16>
    %c0_15 = arith.constant 0 : index
    %c0_16 = arith.constant 0 : index
    %38 = vector.load %arg8[%c0_15, %c0_16] : memref<256x256xbf16, #tpu.memory_space<vmem>>, vector<256x256xbf16>
    %cst_17 = arith.constant dense<0.000000e+00> : vector<8x256xf32>
    %39 = tpu.matmul %37, %38, %cst_17 {dimension_numbers = #tpu.dot_dimension_numbers<[1], [0], [0], [1], [0, 0, 1, 1], [], []>} : vector<8x256xbf16>, vector<256x256xbf16>, vector<8x256xf32> -> vector<8x256xf32>
    %40 = vector.shape_cast %36 : vector<8x16x256xbf16> to vector<128x256xbf16>
    %c0_18 = arith.constant 0 : index
    %c0_19 = arith.constant 0 : index
    %41 = vector.load %arg7[%c0_18, %c0_19] : memref<256x256xbf16, #tpu.memory_space<vmem>>, vector<256x256xbf16>
    %cst_20 = arith.constant dense<0.000000e+00> : vector<128x256xf32>
    %42 = tpu.matmul %40, %41, %cst_20 {dimension_numbers = #tpu.dot_dimension_numbers<[1], [0], [0], [1], [0, 0, 1, 1], [], []>} : vector<128x256xbf16>, vector<256x256xbf16>, vector<128x256xf32> -> vector<128x256xf32>
    %43 = vector.shape_cast %42 : vector<128x256xf32> to vector<8x16x256xf32>
    %44 = vector.shape_cast %39 : vector<8x256xf32> to vector<8x1x256xf32>
    %45 = vector.broadcast %44 : vector<8x1x256xf32> to vector<8x16x256xf32>
    %46 = arith.addf %43, %45 : vector<8x16x256xf32>
    %c0_21 = arith.constant 0 : index
    %c0_22 = arith.constant 0 : index
    %47 = vector.load %arg9[%c0_21, %c0_22] : memref<1x256xf32, #tpu.memory_space<vmem>>, vector<1x256xf32>
    %48 = vector.shape_cast %47 : vector<1x256xf32> to vector<1x1x256xf32>
    %49 = vector.broadcast %48 : vector<1x1x256xf32> to vector<8x16x256xf32>
    %50 = arith.addf %46, %49 : vector<8x16x256xf32>
    %cst_23 = arith.constant 0.000000e+00 : f32
    %51 = vector.broadcast %cst_23 : f32 to vector<8x16x256xf32>
    %52 = arith.maximumf %50, %51 : vector<8x16x256xf32>
    %53 = vector.shape_cast %52 : vector<8x16x256xf32> to vector<128x256xf32>
    %54 = arith.truncf %53 : vector<128x256xf32> to vector<128x256xbf16>
    %c0_24 = arith.constant 0 : index
    %c0_25 = arith.constant 0 : index
    %55 = vector.load %arg10[%c0_24, %c0_25] : memref<256x128xbf16, #tpu.memory_space<vmem>>, vector<256x128xbf16>
    %cst_26 = arith.constant dense<0.000000e+00> : vector<128x128xf32>
    %56 = tpu.matmul %54, %55, %cst_26 {dimension_numbers = #tpu.dot_dimension_numbers<[1], [0], [0], [1], [0, 0, 1, 1], [], []>} : vector<128x256xbf16>, vector<256x128xbf16>, vector<128x128xf32> -> vector<128x128xf32>
    %c0_27 = arith.constant 0 : index
    %c0_28 = arith.constant 0 : index
    %57 = vector.load %arg11[%c0_27, %c0_28] : memref<1x128xf32, #tpu.memory_space<vmem>>, vector<1x128xf32>
    %58 = vector.broadcast %57 : vector<1x128xf32> to vector<128x128xf32>
    %59 = arith.addf %56, %58 : vector<128x128xf32>
    %60 = vector.broadcast %3 : vector<128x1xf32> to vector<128x128xf32>
    %61 = arith.mulf %59, %60 : vector<128x128xf32>
    %62 = vector.shape_cast %61 : vector<128x128xf32> to vector<8x16x128xf32>
    %cst_29 = arith.constant dense<0xFF800000> : vector<8x128xf32>
    %63 = vector.multi_reduction <maximumf>, %62, %cst_29 [1] : vector<8x16x128xf32> to vector<8x128xf32>
    %c0_30 = arith.constant 0 : index
    %c0_31 = arith.constant 0 : index
    %c0_32 = arith.constant 0 : index
    %64 = vector.load %arg12[%c0_30, %c0_31, %c0_32] : memref<1x8x128xf32, #tpu.memory_space<vmem>>, vector<1x8x128xf32>
    %65 = vector.shape_cast %64 : vector<1x8x128xf32> to vector<8x128xf32>
    %66 = vector.shape_cast %63 : vector<8x128xf32> to vector<1x8x128xf32>
    tpu.vector_store %arg12[%c0_30, %c0_31, %c0_32], %66 {strides = array<i32>} : memref<1x8x128xf32, #tpu.memory_space<vmem>>, vector<1x8x128xf32>,
    return
  }
  func.func @transform_0(%arg0: i32) -> (i32, i32, i32) {
    %c0_i32 = arith.constant 0 : i32
    %c0_i32_0 = arith.constant 0 : i32
    %c0_i32_1 = arith.constant 0 : i32
    return %arg0, %c0_i32, %c0_i32_0 : i32, i32, i32
  }
  func.func @transform_1(%arg0: i32) -> (i32, i32, i32) {
    %c0_i32 = arith.constant 0 : i32
    %c0_i32_0 = arith.constant 0 : i32
    %c0_i32_1 = arith.constant 0 : i32
    return %arg0, %c0_i32, %c0_i32_0 : i32, i32, i32
  }
  func.func @transform_2(%arg0: i32) -> (i32, i32) {
    %c0_i32 = arith.constant 0 : i32
    %c0_i32_0 = arith.constant 0 : i32
    %c0_i32_1 = arith.constant 0 : i32
    return %c0_i32, %c0_i32_0 : i32, i32
  }
  func.func @transform_3(%arg0: i32) -> (i32, i32) {
    %c0_i32 = arith.constant 0 : i32
    %c0_i32_0 = arith.constant 0 : i32
    %c0_i32_1 = arith.constant 0 : i32
    return %c0_i32, %c0_i32_0 : i32, i32
  }
  func.func @transform_4(%arg0: i32) -> (i32, i32) {
    %c0_i32 = arith.constant 0 : i32
    %c0_i32_0 = arith.constant 0 : i32
    %c0_i32_1 = arith.constant 0 : i32
    return %c0_i32, %c0_i32_0 : i32, i32
  }
  func.func @transform_5(%arg0: i32) -> (i32, i32) {
    %c0_i32 = arith.constant 0 : i32
    %c0_i32_0 = arith.constant 0 : i32
    %c0_i32_1 = arith.constant 0 : i32
    return %c0_i32, %c0_i32_0 : i32, i32
  }
  func.func @transform_6(%arg0: i32) -> (i32, i32) {
    %c0_i32 = arith.constant 0 : i32
    %c0_i32_0 = arith.constant 0 : i32
    %c0_i32_1 = arith.constant 0 : i32
    return %c0_i32, %c0_i32_0 : i32, i32
  }
  func.func @transform_7(%arg0: i32) -> (i32, i32) {
    %c0_i32 = arith.constant 0 : i32
    %c0_i32_0 = arith.constant 0 : i32
    %c0_i32_1 = arith.constant 0 : i32
    return %c0_i32, %c0_i32_0 : i32, i32
  }
  func.func @transform_8(%arg0: i32) -> (i32, i32) {
    %c0_i32 = arith.constant 0 : i32
    %c0_i32_0 = arith.constant 0 : i32
    %c0_i32_1 = arith.constant 0 : i32
    return %c0_i32, %c0_i32_0 : i32, i32
  }
  func.func @transform_9(%arg0: i32) -> (i32, i32) {
    %c0_i32 = arith.constant 0 : i32
    %c0_i32_0 = arith.constant 0 : i32
    %c0_i32_1 = arith.constant 0 : i32
    return %c0_i32, %c0_i32_0 : i32, i32
  }
  func.func @transform_10(%arg0: i32) -> (i32, i32) {
    %c0_i32 = arith.constant 0 : i32
    %c0_i32_0 = arith.constant 0 : i32
    %c0_i32_1 = arith.constant 0 : i32
    return %c0_i32, %c0_i32_0 : i32, i32
  }
  func.func @transform_11(%arg0: i32) -> (i32, i32, i32) {
    %c0_i32 = arith.constant 0 : i32
    %c0_i32_0 = arith.constant 0 : i32
    %c0_i32_1 = arith.constant 0 : i32
    return %arg0, %c0_i32, %c0_i32_0 : i32, i32, i32
  }
}

</mosaic_0001>

<bundles_post_ra>
// kernel: _points_encoder_impl.1
= control target key start
LH: loop header
LB: loop body
LE: loop exit
PB: predicated region body
PF: predicated region fallthrough
CT: control target
= control target key end

     0   :  { %v2723_v1 = vmov 1   ;;  %v2724_v2 = vmov 0   ;;  %s3961_s0 = inlined_call_operand.vmem [shape: f32[8,16,3], index: 0, kind: input, shape index: {}]   ;;  %s3962_s1 = inlined_call_operand.vmem [shape: f32[8,16,1], index: 1, kind: input, shape index: {}]   ;;  %s3963_s2 = inlined_call_operand.vmem [shape: f32[3,128], index: 2, kind: input, shape index: {}]   ;;  %s3964_s3 = inlined_call_operand.vmem [shape: f32[1,128], index: 3, kind: input, shape index: {}]   ;;  %s3965_s4 = inlined_call_operand.vmem [shape: bf16[128,256], index: 4, kind: input, shape index: {}]   ;;  %s3966_s5 = inlined_call_operand.vmem [shape: f32[1,256], index: 5, kind: input, shape index: {}]   ;;  %s3967_s6 = inlined_call_operand.vmem [shape: bf16[256,256], index: 6, kind: input, shape index: {}]   ;;  %s3968_s7 = inlined_call_operand.vmem [shape: bf16[256,256], index: 7, kind: input, shape index: {}]   ;;  %s3969_s8 = inlined_call_operand.vmem [shape: f32[1,256], index: 8, kind: input, shape index: {}]   ;;  %s3970_s9 = inlined_call_operand.vmem [shape: bf16[256,128], index: 9, kind: input, shape index: {}]   ;;  %s3971_s10 = inlined_call_operand.vmem [shape: f32[1,128], index: 10, kind: input, shape index: {}]   ;;  %s3972_s11 = inlined_call_operand.hbm [shape: f32[1,8,128], index: 11, kind: output, shape index: {}]  }
   0x1   :  { %v39_v0 = vld [vmem:[%s3961_s0] sm:$0xff]  ;;  %2654 = vset.pattern.permute.xlu1 %v2723_v1  ;;  %2653 = vset.pattern.permute.xlu0 %v2724_v2 }
   0x2   :  { %190 = vperm.xlu1 %2654, %v39_v0   ;;  %74 = vperm.xlu0 %2653, %v39_v0  }
   0x3   :  { %16 = vsyncpa [#allocation3], 0  ;;  %v2725_v3 = vmov 2   ;;  %v40_v4 = vld [vmem:[%s3961_s0 + $0x8] sm:$0xff]  ;;  %v41_v5 = vld [vmem:[%s3961_s0 + $0x10] sm:$0xff]  ;;  %vm959_vm0 = vcmask 1041409  }
   0x4   :  { %2655 = vset.pattern.permute.xlu2 %v2725_v3  ;;  %v42_v6 = vld [vmem:[%s3961_s0 + $0x18] sm:$0xff]  ;;  %v43_v7 = vld [vmem:[%s3961_s0 + $0x20] sm:$0xff]  ;;  %v44_v8 = vld [vmem:[%s3961_s0 + $0x28] sm:$0xff]  ;;  %vm961_vm1 = vcmask 1042434   ;;  %vm963_vm2 = vcmask 1043459   ;;  %vm965_vm3 = vcmask 1044484  }
   0x5   :  { %287 = vperm.xlu2 %2655, %v39_v0   ;;  %v45_v9 = vld [vmem:[%s3961_s0 + $0x30] sm:$0xff]  ;;  %v46_v10 = vld [vmem:[%s3961_s0 + $0x38] sm:$0xff]  ;;  %v2829_v11 = vld [vmem:[%s3961_s0 + $0x48] sm:$0xff]  ;;  %vm967_vm4 = vcmask 1045509   ;;  %vm969_vm5 = vcmask 1046534   ;;  %vm971_vm6 = vcmask 1047559  }
   0x6   :  { %v2838_v12 = vld [vmem:[%s3961_s0 + $0x50] sm:$0xff]  ;;  %v2568_v14 = vld [vmem:[%s3965_s4 + $0x74] sm:$0xf0]  ;;  %v2229_v17 = vld [vmem:[%s3965_s4 + $0x78] sm:$0xf0]  ;;  %vm1681_vm7 = vcmask 1046528  }
   0x7   :  { %v2227_v13 = vld [vmem:[%s3965_s4 + $0x70] sm:$0xf]  ;;  %v2567_v15 = vld [vmem:[%s3965_s4 + $0x74] sm:$0xf]  ;;  %v47_v19 = vld [vmem:[%s3961_s0 + $0x40] sm:$0xff]  ;;  %vm1667_vm8 = vcmask 1040384  }
   0x8   :  { %v2228_v16 = vor.u32 %v2568_v14, %v2227_v13  ;;  %v2232_v18 = vor.u32 %v2567_v15, %v2229_v17  ;;  %v2219_v20 = vld [vmem:[%s3965_s4 + $0x60] sm:$0xf]  ;;  %v2566_v21 = vld [vmem:[%s3965_s4 + $0x64] sm:$0xf0]  ;;  %v2565_v22 = vld [vmem:[%s3965_s4 + $0x64] sm:$0xf] }
   0x9   :  { %v2870_v23 = vld [vmem:[%s3961_s0 + $0x58] sm:$0xff]  ;;  %v2220_v24 = vor.u32 %v2566_v21, %v2219_v20  ;;  %v2221_v25 = vld [vmem:[%s3965_s4 + $0x68] sm:$0xf0]  ;;  %v2211_v27 = vld [vmem:[%s3965_s4 + $0x50] sm:$0xf]  ;;  %s2160_s17 = sshll.u32 %s3972_s11, 4  ;;  %s2161_s17 = int_to_ptr.hbm [resolvable:$true] %s2160_s17 }
   0xa   :  { %194 = vperm.xlu1 %2654, %v40_v4   ;;  %79 = vperm.xlu0 %2653, %v40_v4   ;;  %v2224_v26 = vor.u32 %v2565_v22, %v2221_v25  ;;  %v2564_v28 = vld [vmem:[%s3965_s4 + $0x54] sm:$0xf0]  ;;  %v2563_v29 = vld [vmem:[%s3965_s4 + $0x54] sm:$0xf]  ;;  %v2213_v31 = vld [vmem:[%s3965_s4 + $0x58] sm:$0xf0] }
   0xb   :  { %509 = vmatpush.bf16.msra.mxu0 %v2228_v16  ;;  %558 = vmatpush.bf16.msra.mxu1 %v2232_v18  ;;  %v2212_v30 = vor.u32 %v2564_v28, %v2211_v27  ;;  %v2216_v32 = vor.u32 %v2563_v29, %v2213_v31  ;;  %v2203_v33 = vld [vmem:[%s3965_s4 + $0x40] sm:$0xf]  ;;  %v2562_v34 = vld [vmem:[%s3965_s4 + $0x44] sm:$0xf0]  ;;  %v2561_v36 = vld [vmem:[%s3965_s4 + $0x44] sm:$0xf] }
   0xc   :  { %v2204_v35 = vor.u32 %v2562_v34, %v2203_v33  ;;  %v2205_v37 = vld [vmem:[%s3965_s4 + $0x48] sm:$0xf0]  ;;  %v2907_v39 = vld [vmem:[%s3961_s0 + $0x60] sm:$0xff]  ;;  %v2195_v40 = vld [vmem:[%s3965_s4 + $0x30] sm:$0xf] }
   0xd   :  { %291 = vperm.xlu2 %2655, %v40_v4   ;;  %v2208_v38 = vor.u32 %v2561_v36, %v2205_v37  ;;  %v2560_v41 = vld [vmem:[%s3965_s4 + $0x34] sm:$0xf0]  ;;  %v2559_v42 = vld [vmem:[%s3965_s4 + $0x34] sm:$0xf]  ;;  %v2197_v44 = vld [vmem:[%s3965_s4 + $0x38] sm:$0xf0] }
   0xe   :  { %v2196_v43 = vor.u32 %v2560_v41, %v2195_v40  ;;  %v2200_v45 = vor.u32 %v2559_v42, %v2197_v44  ;;  %v2187_v46 = vld [vmem:[%s3965_s4 + $0x20] sm:$0xf]  ;;  %v2558_v47 = vld [vmem:[%s3965_s4 + $0x24] sm:$0xf0]  ;;  %v2557_v48 = vld [vmem:[%s3965_s4 + $0x24] sm:$0xf] }
   0xf   :  { %510 = vmatpush.bf16.msra.mxu0 %v2220_v24  ;;  %559 = vmatpush.bf16.msra.mxu1 %v2224_v26  ;;  %v2188_v49 = vor.u32 %v2558_v47, %v2187_v46  ;;  %v2189_v50 = vld [vmem:[%s3965_s4 + $0x28] sm:$0xf0]  ;;  %v2179_v53 = vld [vmem:[%s3965_s4 + $0x10] sm:$0xf]  ;;  %v2556_v54 = vld [vmem:[%s3965_s4 + $0x14] sm:$0xf0] }
  0x10   :  { %v2192_v51 = vor.u32 %v2557_v48, %v2189_v50  ;;  %v52_v52 = vld [vmem:[%s3961_s0 + $0x68] sm:$0xff]  ;;  %v2555_v55 = vld [vmem:[%s3965_s4 + $0x14] sm:$0xf]  ;;  %v2180_v56 = vor.u32 %v2556_v54, %v2179_v53  ;;  %v2181_v57 = vld [vmem:[%s3965_s4 + $0x18] sm:$0xf0] }
  0x11   :  { %v2184_v59 = vor.u32 %v2555_v55, %v2181_v57  ;;  %v2171_v60 = vld [vmem:[%s3965_s4] sm:$0xf]  ;;  %v2554_v61 = vld [vmem:[%s3965_s4 + $0x4] sm:$0xf0]  ;;  %v2553_v62 = vld [vmem:[%s3965_s4 + $0x4] sm:$0xf] }
  0x12   :  { %2656 = vset.pattern.permute.xlu1 %v2724_v2  ;;  %84 = vperm.xlu0 %2653, %v41_v5   ;;  %v2172_v63 = vor.u32 %v2554_v61, %v2171_v60  ;;  %v2173_v0 = vld [vmem:[%s3965_s4 + $0x8] sm:$0xf0]  ;;  %v54_v41 = vld [vmem:[%s3961_s0 + $0x78] sm:$0xff] }
  0x13   :  { %89 = vperm.xlu1 %2656, %v42_v6   ;;  %511 = vmatpush.bf16.msra.mxu0 %v2212_v30  ;;  %v2176_v4 = vor.u32 %v2553_v62, %v2173_v0 }
  0x14   :  { %560 = vmatpush.bf16.msra.mxu1 %v2216_v32 }
  0x15   :  { %2657 = vset.pattern.permute.xlu2 %v2723_v1 }
  0x16   :  { %198 = vperm.xlu2 %2657, %v41_v5  }
  0x17   :  { %512 = vmatpush.bf16.msra.mxu0 %v2204_v35 }
  0x18   :  { %561 = vmatpush.bf16.msra.mxu1 %v2208_v38 }
  0x1a   :  { %2658 = vset.pattern.permute.xlu0 %v2723_v1 }
  0x1b   :  { %2659 = vset.pattern.permute.xlu1 %v2725_v3  ;;  %202 = vperm.xlu0 %2658, %v42_v6  }
  0x1c   :  { %295 = vperm.xlu1 %2659, %v41_v5   ;;  %513 = vmatpush.bf16.msra.mxu0 %v2196_v43  ;;  %v2972_v5 = vld [vmem:[%s3961_s0 + $0x70] sm:$0xff] }
  0x1d   :  { %562 = vmatpush.bf16.msra.mxu1 %v2200_v45 }
  0x1e   :  { %2660 = vset.pattern.permute.xlu2 %v2725_v3 }
  0x1f   :  { %299 = vperm.xlu2 %2660, %v42_v6  }
  0x20   :  { %514 = vmatpush.bf16.msra.mxu0 %v2188_v49 }
  0x21   :  { %563 = vmatpush.bf16.msra.mxu1 %v2192_v51 }
  0x23   :  { %206 = vperm.xlu0 %2658, %v43_v7  }
  0x24   :  { %2661 = vset.pattern.permute.xlu1 %v2724_v2  ;;  %515 = vmatpush.bf16.msra.mxu0 %v2180_v56 }
  0x25   :  { %94 = vperm.xlu1 %2661, %v43_v7   ;;  %564 = vmatpush.bf16.msra.mxu1 %v2184_v59  ;;  %v55_v59 = vld [vmem:[%s3962_s1] sm:$0xff] }
  0x27   :  { %2662 = vset.pattern.permute.xlu2 %v2724_v2 }
  0x28   :  { %99 = vperm.xlu2 %2662, %v44_v8   ;;  %516 = vmatpush.bf16.msra.mxu0 %v2172_v63 }
  0x29   :  { %565 = vmatpush.bf16.msra.mxu1 %v2176_v4 }
  0x2b   :  { %2665 = vset.pattern.permute.xlu0 %v2725_v3 }
  0x2c   :  { %307 = vperm.xlu0 %2665, %v44_v8  }
  0x2d   :  { %2663 = vset.pattern.permute.xlu1 %v2723_v1 }
  0x2e   :  { %210 = vperm.xlu1 %2663, %v44_v8  }
  0x30   :  { %2664 = vset.pattern.permute.xlu2 %v2725_v3 }
  0x31   :  { %303 = vperm.xlu2 %2664, %v43_v7   ;;  %v71_v7 = vld [vmem:[%s3963_s2] sm:$0x7] }
  0x32   :  { %v2983_v8 = vperm.slane %v71_v7, 0  ;;  %v2993_v14 = vperm.slane %v71_v7, 1  ;;  %v2996_v15 = vperm.slane %v71_v7, 2 }
  0x34   :  { %311 = vperm.xlu0 %2665, %v45_v9  }
  0x36   :  { %2666 = vset.pattern.permute.xlu1 %v2724_v2 }
  0x37   :  { %104 = vperm.xlu1 %2666, %v45_v9  }
  0x39   :  { %2667 = vset.pattern.permute.xlu2 %v2724_v2 }
  0x3a   :  { %109 = vperm.xlu2 %2667, %v46_v10  }
  0x3c   :  { %2672 = vset.pattern.permute.xlu0 %v2724_v2 }
  0x3d   :  { %119 = vperm.xlu0 %2672, %v2829_v11  }
  0x3f   :  { %2668 = vset.pattern.permute.xlu1 %v2723_v1 }
  0x40   :  { %214 = vperm.xlu1 %2668, %v45_v9  }
  0x42   :  { %2669 = vset.pattern.permute.xlu2 %v2723_v1 }
  0x43   :  { %218 = vperm.xlu2 %2669, %v46_v10  }
  0x45   :  { %124 = vperm.xlu0 %2672, %v2838_v12  }
  0x48   :  { %2670 = vset.pattern.permute.xlu1 %v2725_v3 }
  0x49   :  { %315 = vperm.xlu1 %2670, %v46_v10  }
  0x4b   :  { %2671 = vset.pattern.permute.xlu2 %v2724_v2 }
  0x4c   :  { %114 = vperm.xlu2 %2671, %v47_v19  }
  0x4d   :  { %2679 = vset.pattern.permute.xlu0 %v2723_v1 }
  0x4e   :  { %234 = vperm.xlu0 %2679, %v2870_v23  }
  0x51   :  { %2673 = vset.pattern.permute.xlu1 %v2723_v1 }
  0x52   :  { %222 = vperm.xlu1 %2673, %v47_v19  }
  0x54   :  { %2674 = vset.pattern.permute.xlu2 %v2723_v1 }
  0x55   :  { %226 = vperm.xlu2 %2674, %v2829_v11  }
  0x56   :  { %238 = vperm.xlu0 %2679, %v2907_v39  }
  0x5a   :  { %2675 = vset.pattern.permute.xlu1 %v2725_v3 }
  0x5b   :  { %319 = vperm.xlu1 %2675, %v47_v19  }
  0x5d   :  { %2676 = vset.pattern.permute.xlu2 %v2725_v3 }
  0x5e   :  { %323 = vperm.xlu2 %2676, %v2829_v11   ;;  %2686 = vset.pattern.permute.xlu0 %v2725_v3  ;;  %v2988_v11 = vld [vmem:[%s3964_s3] ss:$0 sm:$0xff] }
  0x5f   :  { %339 = vperm.xlu0 %2686, %v52_v52   ;;  %v288_v58 = vpop.permute.xlu2 %287 }
  0x60   :  { %v351_v20 = vmul.f32 %v2996_v15, %v288_v58 }
  0x63   :  { %2677 = vset.pattern.permute.xlu1 %v2724_v2 }
  0x64   :  { %129 = vperm.xlu1 %2677, %v2870_v23  }
  0x66   :  { %2678 = vset.pattern.permute.xlu2 %v2723_v1 }
  0x67   :  { %230 = vperm.xlu2 %2678, %v2838_v12   ;;  %343 = vperm.xlu0 %2686, %v2972_v5   ;;  %v292_v6 = vpop.permute.xlu2 %291 }
  0x68   :  { %v352_v27 = vmul.f32 %v2996_v15, %v292_v6  ;;  %v57_v6 = vld [vmem:[%s3962_s1 + $0x10] sm:$0xff] }
  0x6c   :  { %2680 = vset.pattern.permute.xlu1 %v2725_v3 }
  0x6d   :  { %327 = vperm.xlu1 %2680, %v2838_v12  }
  0x6f   :  { %2681 = vset.pattern.permute.xlu2 %v2725_v3  ;;  %2693 = vset.pattern.permute.xlu0 %v2724_v2 }
  0x70   :  { %331 = vperm.xlu2 %2681, %v2870_v23   ;;  %v199_v13 = vpop.permute.xlu2 %198  ;;  %v56_v23 = vld [vmem:[%s3962_s1 + $0x8] sm:$0xff] }
  0x71   :  { %614 = vperm.xlu0 %2693, %v56_v23   ;;  %v256_v37 = vmul.f32 %v2993_v14, %v199_v13  ;;  %v61_v23 = vld [vmem:[%s3962_s1 + $0x30] sm:$0xff] }
  0x74   :  { %v191_v9 = vpop.permute.xlu1 %190  ;;  %v75_v10 = vpop.permute.xlu0 %74 }
  0x75   :  { %v153_v12 = vmul.f32 %v2983_v8, %v75_v10  ;;  %2682 = vset.pattern.permute.xlu1 %v2724_v2  ;;  %v254_v17 = vmul.f32 %v2993_v14, %v191_v9 }
  0x76   :  { %134 = vperm.xlu1 %2682, %v2907_v39  }
  0x77   :  { %v173_v16 = vadd.f32 %v2988_v11, %v153_v12 }
  0x78   :  { %2683 = vset.pattern.permute.xlu2 %v2724_v2 }
  0x79   :  { %139 = vperm.xlu2 %2683, %v52_v52   ;;  %v270_v21 = vadd.f32 %v254_v17, %v173_v16  ;;  %v300_v26 = vpop.permute.xlu2 %299  ;;  %v58_v17 = vld [vmem:[%s3962_s1 + $0x18] sm:$0xff]  ;;  %639 = vperm.xlu0 %2693, %v61_v23  }
  0x7a   :  { %v354_v45 = vmul.f32 %v2996_v15, %v300_v26 }
  0x7b   :  { %v367_v29 = vadd.f32 %v351_v20, %v270_v21 }
  0x7c   :  { %v195_v18 = vpop.permute.xlu1 %194  ;;  %v80_v19 = vpop.permute.xlu0 %79 }
  0x7d   :  { %v154_v22 = vmul.f32 %v2983_v8, %v80_v19  ;;  %v255_v24 = vmul.f32 %v2993_v14, %v195_v18  ;;  %v383_v34 = vmax.f32 %v367_v29, 0.0 }
  0x7e   :  { %2684 = vset.pattern.permute.xlu1 %v2723_v1 }
  0x7f   :  { %v174_v25 = vadd.f32 %v2988_v11, %v154_v22  ;;  %242 = vperm.xlu1 %2684, %v52_v52   ;;  %v59_v22 = vld [vmem:[%s3962_s1 + $0x20] sm:$0xff] }
  0x81   :  { %2685 = vset.pattern.permute.xlu2 %v2725_v3  ;;  %v271_v28 = vadd.f32 %v255_v24, %v174_v25 }
  0x82   :  { %335 = vperm.xlu2 %2685, %v2907_v39   ;;  %v100_v40 = vpop.permute.xlu2 %99 }
  0x83   :  { %v368_v30 = vadd.f32 %v352_v27, %v271_v28  ;;  %v158_v60 = vmul.f32 %v2983_v8, %v100_v40 }
  0x84   :  { %v85_v31 = vpop.permute.xlu0 %84 }
  0x85   :  { %v90_v32 = vpop.permute.xlu1 %89  ;;  %v155_v33 = vmul.f32 %v2983_v8, %v85_v31  ;;  %v384_v35 = vmax.f32 %v368_v30, 0.0 }
  0x86   :  { %v156_v39 = vmul.f32 %v2983_v8, %v90_v32 }
  0x87   :  { %2687 = vset.pattern.permute.xlu1 %v2724_v2  ;;  %v399_v36 = vpack.c.bf16 %v384_v35, %v383_v34  ;;  %v175_v38 = vadd.f32 %v2988_v11, %v155_v33  ;;  %v60_v34 = vld [vmem:[%s3962_s1 + $0x28] sm:$0xff] }
  0x88   :  { %144 = vperm.xlu1 %2687, %v2972_v5   ;;  %v176_v44 = vadd.f32 %v2988_v11, %v156_v39 }
  0x89   :  { %517 = vmatmul.bf16.vlgmr.msra.gmra.mxu0 %v399_v36  ;;  %566 = vmatmul.bf16.vlgmr.msra.gmra.mxu1 %v399_v36  ;;  %v272_v43 = vadd.f32 %v256_v37, %v175_v38  ;;  %v62_v36 = vld [vmem:[%s3962_s1 + $0x38] sm:$0xff] }
  0x8a   :  { %2688 = vset.pattern.permute.xlu2 %v2724_v2 }
  0x8b   :  { %149 = vperm.xlu2 %2688, %v54_v41   ;;  %v304_v53 = vpop.permute.xlu2 %303 }
  0x8c   :  { %v355_v4 = vmul.f32 %v2996_v15, %v304_v53 }
  0x8d   :  { %v203_v42 = vpop.permute.xlu0 %202 }
  0x8e   :  { %v257_v46 = vmul.f32 %v2993_v14, %v203_v42  ;;  %v296_v47 = vpop.permute.xlu1 %295 }
  0x8f   :  { %v353_v48 = vmul.f32 %v2996_v15, %v296_v47 }
  0x90   :  { %v273_v49 = vadd.f32 %v257_v46, %v176_v44  ;;  %2689 = vset.pattern.permute.xlu1 %v2723_v1 }
  0x91   :  { %v369_v50 = vadd.f32 %v353_v48, %v272_v43  ;;  %246 = vperm.xlu1 %2689, %v2972_v5  }
  0x92   :  { %v370_v51 = vadd.f32 %v354_v45, %v273_v49 }
  0x93   :  { %v385_v52 = vmax.f32 %v369_v50, 0.0  ;;  %2690 = vset.pattern.permute.xlu2 %v2723_v1 }
  0x94   :  { %v386_v54 = vmax.f32 %v370_v51, 0.0  ;;  %250 = vperm.xlu2 %2690, %v54_v41   ;;  %v110_v62 = vpop.permute.xlu2 %109 }
  0x95   :  { %v207_v55 = vpop.permute.xlu0 %206  ;;  %v160_v26 = vmul.f32 %v2983_v8, %v110_v62 }
  0x96   :  { %v400_v56 = vpack.c.bf16 %v386_v54, %v385_v52  ;;  %v258_v61 = vmul.f32 %v2993_v14, %v207_v55 }
  0x97   :  { %v95_v57 = vpop.permute.xlu1 %94  ;;  %v180_v30 = vadd.f32 %v2988_v11, %v160_v26 }
  0x98   :  { %v157_v58 = vmul.f32 %v2983_v8, %v95_v57  ;;  %v64_v57 = vld [vmem:[%s3962_s1 + $0x48] sm:$0xff] }
  0x99   :  { %2691 = vset.pattern.permute.xlu1 %v2725_v3  ;;  %522 = vmatmul.bf16.gmra.mxu0 %v400_v56  ;;  %v178_v3 = vadd.f32 %v2988_v11, %v158_v60 }
  0x9a   :  { %571 = vmatmul.bf16.gmra.mxu1 %v400_v56  ;;  %347 = vperm.xlu1 %2691, %v54_v41   ;;  %v177_v1 = vadd.f32 %v2988_v11, %v157_v58 }
  0x9b   :  { %654 = vperm.xlu0 %2693, %v64_v57   ;;  %v423_v57 = vld [vmem:[%s3966_s5] sm:$0x3] }
  0x9c   :  { %2692 = vset.pattern.permute.xlu2 %v2724_v2  ;;  %v274_v0 = vadd.f32 %v258_v61, %v177_v1 }
  0x9d   :  { %609 = vperm.xlu2 %2692, %v55_v59   ;;  %v219_v16 = vpop.permute.xlu2 %218 }
  0x9e   :  { %v308_v63 = vpop.permute.xlu0 %307  ;;  %v371_v10 = vadd.f32 %v355_v4, %v274_v0  ;;  %v261_v31 = vmul.f32 %v2993_v14, %v219_v16  ;;  %v63_v16 = vld [vmem:[%s3962_s1 + $0x40] sm:$0xff] }
  0x9f   :  { %v356_v9 = vmul.f32 %v2996_v15, %v308_v63 }
  0xa0   :  { %v211_v5 = vpop.permute.xlu1 %210  ;;  %v387_v18 = vmax.f32 %v371_v10, 0.0  ;;  %v277_v38 = vadd.f32 %v261_v31, %v180_v30 }
  0xa1   :  { %v259_v7 = vmul.f32 %v2993_v14, %v211_v5  ;;  %v65_v5 = vld [vmem:[%s3962_s1 + $0x50] sm:$0xff] }
  0xa2   :  { %2694 = vset.pattern.permute.xlu1 %v2724_v2 }
  0xa3   :  { %v275_v12 = vadd.f32 %v259_v7, %v178_v3  ;;  %619 = vperm.xlu1 %2694, %v57_v6  }
  0xa5   :  { %v372_v13 = vadd.f32 %v356_v9, %v275_v12  ;;  %624 = vperm.xlu2 %2692, %v58_v17  }
  0xa6   :  { %v115_v2 = vpop.permute.xlu2 %114  ;;  %v312_v28 = vpop.permute.xlu0 %311 }
  0xa7   :  { %v388_v19 = vmax.f32 %v372_v13, 0.0  ;;  %v357_v33 = vmul.f32 %v2996_v15, %v312_v28  ;;  %v161_v51 = vmul.f32 %v2983_v8, %v115_v2 }
  0xa9   :  { %v105_v20 = vpop.permute.xlu1 %104  ;;  %v401_v21 = vpack.c.bf16 %v388_v19, %v387_v18  ;;  %v181_v54 = vadd.f32 %v2988_v11, %v161_v51 }
  0xaa   :  { %v159_v24 = vmul.f32 %v2983_v8, %v105_v20 }
  0xab   :  { %527 = vmatmul.bf16.gmra.mxu0 %v401_v21  ;;  %576 = vmatmul.bf16.gmra.mxu1 %v401_v21  ;;  %v67_v21 = vld [vmem:[%s3962_s1 + $0x60] sm:$0xff] }
  0xac   :  { %629 = vperm.xlu1 %2694, %v59_v22   ;;  %v179_v29 = vadd.f32 %v2988_v11, %v159_v24  ;;  %669 = vperm.xlu0 %2693, %v67_v21  }
  0xad   :  { %634 = vperm.xlu2 %2692, %v60_v34   ;;  %v68_v34 = vld [vmem:[%s3962_s1 + $0x68] sm:$0xff] }
  0xaf   :  { %v227_v35 = vpop.permute.xlu2 %226  ;;  %v120_v41 = vpop.permute.xlu0 %119 }
  0xb0   :  { %v162_v45 = vmul.f32 %v2983_v8, %v120_v41  ;;  %v263_v48 = vmul.f32 %v2993_v14, %v227_v35  ;;  %v70_v35 = vld [vmem:[%s3962_s1 + $0x78] sm:$0xff] }
  0xb2   :  { %v215_v25 = vpop.permute.xlu1 %214  ;;  %v182_v50 = vadd.f32 %v2988_v11, %v162_v45 }
  0xb3   :  { %v260_v27 = vmul.f32 %v2993_v14, %v215_v25 }
  0xb4   :  { %644 = vperm.xlu1 %2694, %v62_v36   ;;  %v279_v52 = vadd.f32 %v263_v48, %v182_v50  ;;  %684 = vperm.xlu0 %2693, %v70_v35  }
  0xb5   :  { %v276_v32 = vadd.f32 %v260_v27, %v179_v29  ;;  %649 = vperm.xlu2 %2692, %v63_v16  }
  0xb7   :  { %v373_v40 = vadd.f32 %v357_v33, %v276_v32  ;;  %v125_v56 = vpop.permute.xlu0 %124 }
  0xb8   :  { %v324_v47 = vpop.permute.xlu2 %323  ;;  %v163_v10 = vmul.f32 %v2983_v8, %v125_v56 }
  0xb9   :  { %v389_v43 = vmax.f32 %v373_v40, 0.0  ;;  %v360_v53 = vmul.f32 %v2996_v15, %v324_v47  ;;  %v66_v47 = vld [vmem:[%s3962_s1 + $0x58] sm:$0xff] }
  0xba   :  { %v183_v17 = vadd.f32 %v2988_v11, %v163_v10 }
  0xbb   :  { %v316_v37 = vpop.permute.xlu1 %315  ;;  %v376_v58 = vadd.f32 %v360_v53, %v279_v52 }
  0xbc   :  { %v358_v39 = vmul.f32 %v2996_v15, %v316_v37  ;;  %659 = vperm.xlu1 %2694, %v65_v5  }
  0xbd   :  { %v392_v62 = vmax.f32 %v376_v58, 0.0  ;;  %664 = vperm.xlu2 %2692, %v66_v47  }
  0xbe   :  { %v374_v42 = vadd.f32 %v358_v39, %v277_v38 }
  0xc0   :  { %v390_v44 = vmax.f32 %v374_v42, 0.0  ;;  %v235_v4 = vpop.permute.xlu0 %234 }
  0xc1   :  { %v231_v60 = vpop.permute.xlu2 %230  ;;  %v265_v12 = vmul.f32 %v2993_v14, %v235_v4 }
  0xc2   :  { %v402_v46 = vpack.c.bf16 %v390_v44, %v389_v43  ;;  %v264_v18 = vmul.f32 %v2993_v14, %v231_v60  ;;  %v3120_v60 = vperm.slane %v423_v57, 0 }
  0xc4   :  { %v223_v49 = vpop.permute.xlu1 %222  ;;  %532 = vmatmul.bf16.gmra.mxu0 %v402_v46  ;;  %581 = vmatmul.bf16.gmra.mxu1 %v402_v46  ;;  %v280_v23 = vadd.f32 %v264_v18, %v183_v17 }
  0xc5   :  { %v262_v55 = vmul.f32 %v2993_v14, %v223_v49  ;;  %674 = vperm.xlu1 %2694, %v68_v34  }
  0xc7   :  { %v278_v1 = vadd.f32 %v262_v55, %v181_v54  ;;  %v69_v55 = vld [vmem:[%s3962_s1 + $0x70] sm:$0xff] }
  0xc8   :  { %v239_v29 = vpop.permute.xlu0 %238  ;;  %679 = vperm.xlu2 %2692, %v69_v55   ;;  %v2291_v55 = vld [vmem:[%s3968_s7 + $0x70] sm:$0xf] }
  0xc9   :  { %v266_v38 = vmul.f32 %v2993_v14, %v239_v29 }
  0xca   :  { %v332_v9 = vpop.permute.xlu2 %331 }
  0xcb   :  { %v362_v20 = vmul.f32 %v2996_v15, %v332_v9 }
  0xcd   :  { %v320_v59 = vpop.permute.xlu1 %319 }
  0xce   :  { %v359_v61 = vmul.f32 %v2996_v15, %v320_v59 }
  0xd0   :  { %v375_v63 = vadd.f32 %v359_v61, %v278_v1  ;;  %v3122_v1 = vperm.slane %v423_v57, 1  ;;  %v2355_v57 = vld [vmem:[%s3968_s7 + $0xf0] sm:$0xf] }
  0xd1   :  { %v340_v40 = vpop.permute.xlu0 %339 }
  0xd2   :  { %v391_v3 = vmax.f32 %v375_v63, 0.0  ;;  %v364_v46 = vmul.f32 %v2996_v15, %v340_v40 }
  0xd3   :  { %v140_v2 = vpop.permute.xlu2 %139 }
  0xd4   :  { %v403_v0 = vpack.c.bf16 %v392_v62, %v391_v3  ;;  %v166_v36 = vmul.f32 %v2983_v8, %v140_v2 }
  0xd6   :  { %v130_v6 = vpop.permute.xlu1 %129  ;;  %537 = vmatmul.bf16.gmra.mxu0 %v403_v0  ;;  %586 = vmatmul.bf16.gmra.mxu1 %v403_v0  ;;  %v186_v39 = vadd.f32 %v2988_v11, %v166_v36 }
  0xd7   :  { %v164_v7 = vmul.f32 %v2983_v8, %v130_v6 }
  0xd9   :  { %v184_v13 = vadd.f32 %v2988_v11, %v164_v7  ;;  %v344_v62 = vpop.permute.xlu0 %343 }
  0xda   :  { %v365_v16 = vmul.f32 %v2996_v15, %v344_v62 }
  0xdb   :  { %v281_v19 = vadd.f32 %v265_v12, %v184_v13 }
  0xdc   :  { %v336_v33 = vpop.permute.xlu2 %335 }
  0xdd   :  { %v378_v24 = vadd.f32 %v362_v20, %v281_v19  ;;  %v363_v42 = vmul.f32 %v2996_v15, %v336_v33 }
  0xdf   :  { %v328_v22 = vpop.permute.xlu1 %327  ;;  %v394_v27 = vmax.f32 %v378_v24, 0.0 }
  0xe0   :  { %v361_v25 = vmul.f32 %v2996_v15, %v328_v22 }
  0xe2   :  { %v377_v26 = vadd.f32 %v361_v25, %v280_v23 }
  0xe3   :  { %v3139_v21 = vpop.permute.xlu0 %614 }
  0xe4   :  { %v393_v28 = vmax.f32 %v377_v26, 0.0 }
  0xe5   :  { %v150_v44 = vpop.permute.xlu2 %149 }
  0xe6   :  { %v404_v30 = vpack.c.bf16 %v394_v27, %v393_v28  ;;  %v168_v61 = vmul.f32 %v2983_v8, %v150_v44 }
  0xe8   :  { %v135_v31 = vpop.permute.xlu1 %134  ;;  %542 = vmatmul.bf16.gmra.mxu0 %v404_v30  ;;  %591 = vmatmul.bf16.gmra.mxu1 %v404_v30  ;;  %v188_v9 = vadd.f32 %v2988_v11, %v168_v61 }
  0xe9   :  { %v165_v32 = vmul.f32 %v2983_v8, %v135_v31 }
  0xeb   :  { %v185_v37 = vadd.f32 %v2988_v11, %v165_v32 }
  0xed   :  { %v282_v41 = vadd.f32 %v266_v38, %v185_v37 }
  0xee   :  { %v251_v56 = vpop.permute.xlu2 %250 }
  0xef   :  { %v379_v48 = vadd.f32 %v363_v42, %v282_v41  ;;  %v269_v10 = vmul.f32 %v2993_v14, %v251_v56  ;;  %v2584_v56 = vld [vmem:[%s3968_s7 + $0x74] sm:$0xf0] }
  0xf0   :  { %v2292_v62 = vor.u32 %v2584_v56, %v2291_v55 }
  0xf1   :  { %v243_v43 = vpop.permute.xlu1 %242  ;;  %v395_v51 = vmax.f32 %v379_v48, 0.0  ;;  %v285_v19 = vadd.f32 %v269_v10, %v188_v9 }
  0xf2   :  { %v267_v45 = vmul.f32 %v2993_v14, %v243_v43  ;;  %1144 = vmatpush.bf16.msrb.mxu0 %v2292_v62 }
  0xf4   :  { %v283_v49 = vadd.f32 %v267_v45, %v186_v39 }
  0xf6   :  { %v380_v50 = vadd.f32 %v364_v46, %v283_v49 }
  0xf7   :  { %v3126_v3 = vpop.permute.xlu2 %609 }
  0xf8   :  { %v396_v52 = vmax.f32 %v380_v50, 0.0 }
  0xfa   :  { %v145_v53 = vpop.permute.xlu1 %144  ;;  %v405_v54 = vpack.c.bf16 %v396_v52, %v395_v51 }
  0xfb   :  { %v167_v58 = vmul.f32 %v2983_v8, %v145_v53 }
  0xfc   :  { %547 = vmatmul.bf16.gmra.mxu0 %v405_v54  ;;  %596 = vmatmul.bf16.gmra.mxu1 %v405_v54 }
  0xfd   :  { %v187_v5 = vadd.f32 %v2988_v11, %v167_v58 }
  0xff   :  { %v3159_v47 = vpop.permute.xlu2 %624 }
 0x103   :  { %v247_v59 = vpop.permute.xlu1 %246 }
 0x104   :  { %v268_v63 = vmul.f32 %v2993_v14, %v247_v59 }
 0x106   :  { %v518_v0 = vpop.f32.mrf.mxu0  ;;  %v567_v4 = vpop.f32.mrf.mxu1  ;;  %v284_v12 = vadd.f32 %v268_v63, %v187_v5  ;;  %v2600_v63 = vld [vmem:[%s3968_s7 + $0xf4] sm:$0xf0] }
 0x107   :  { %v519_v6 = vadd.f32 %v518_v0, %v3120_v60  ;;  %v568_v7 = vadd.f32 %v567_v4, %v3122_v1  ;;  %v2356_v0 = vor.u32 %v2600_v63, %v2355_v57 }
 0x108   :  { %v381_v22 = vadd.f32 %v365_v16, %v284_v12 }
 0x109   :  { %v687_v8 = vmul.f32 %v3126_v3, %v519_v6  ;;  %v688_v13 = vmul.f32 %v3126_v3, %v568_v7  ;;  %1157 = vmatpush.bf16.msrb.mxu1 %v2356_v0 }
 0x10a   :  { %v397_v28 = vmax.f32 %v381_v22, 0.0 }
 0x10b   :  { %v3136_v17 = vpack.c.bf16 %v688_v13, %v687_v8 }
 0x10c   :  { %v348_v18 = vpop.permute.xlu1 %347 }
 0x10d   :  { %v366_v20 = vmul.f32 %v2996_v15, %v348_v18  ;;  %v735_v32 = vunpack.c.l.bf16 %v3136_v17  ;;  %v736_v33 = vunpack.c.h.bf16 %v3136_v17 }
 0x10e   :  { %v520_v2 = vpop.f32.mrf.mxu0  ;;  %v569_v11 = vpop.f32.mrf.mxu1 }
 0x10f   :  { %v382_v23 = vadd.f32 %v366_v20, %v285_v19  ;;  %v521_v14 = vadd.f32 %v520_v2, %v3120_v60  ;;  %v570_v24 = vadd.f32 %v569_v11, %v3122_v1 }
 0x111   :  { %v398_v25 = vmax.f32 %v382_v23, 0.0  ;;  %v689_v26 = vmul.f32 %v3139_v21, %v521_v14  ;;  %v690_v27 = vmul.f32 %v3139_v21, %v570_v24 }
 0x113   :  { %v3145_v29 = vpack.c.bf16 %v690_v27, %v689_v26  ;;  %v406_v30 = vpack.c.bf16 %v398_v25, %v397_v28 }
 0x115   :  { %v737_v15 = vunpack.c.l.bf16 %v3145_v29  ;;  %v738_v31 = vunpack.c.h.bf16 %v3145_v29  ;;  %552 = vmatmul.bf16.gmra.mxu0 %v406_v30  ;;  %601 = vmatmul.bf16.gmra.mxu1 %v406_v30  ;;  %v3151_v35 = vpop.permute.xlu1 %619 }
 0x116   :  { %v523_v34 = vpop.f32.mrf.mxu0 }
 0x117   :  { %v524_v36 = vadd.f32 %v523_v34, %v3120_v60  ;;  %v572_v37 = vpop.f32.mrf.mxu1  ;;  %v767_v38 = vmax.f32 %v735_v32, %v737_v15  ;;  %v774_v40 = vmax.f32 %v736_v33, %v738_v31  ;;  %v3189_v15 = vpop.permute.xlu2 %634 }
 0x118   :  { %v573_v39 = vadd.f32 %v572_v37, %v3122_v1 }
 0x119   :  { %v691_v41 = vmul.f32 %v3151_v35, %v524_v36  ;;  %v768_v43 = vrot.slane %v767_v38, 4  ;;  %v775_v44 = vrot.slane %v774_v40, 4 }
 0x11a   :  { %v692_v42 = vmul.f32 %v3151_v35, %v573_v39 }
 0x11b   :  { %v769_v50 = vmax.f32 %v767_v38, %v768_v43  ;;  %v776_v51 = vmax.f32 %v774_v40, %v775_v44 }
 0x11c   :  { %v3157_v45 = vpack.c.bf16 %v692_v42, %v691_v41 }
 0x11d   :  { %v770_v58 = vrot.slane %v769_v50, 2  ;;  %v777_v59 = vrot.slane %v776_v51, 2 }
 0x11e   :  { %v525_v46 = vpop.f32.mrf.mxu0  ;;  %v739_v4 = vunpack.c.l.bf16 %v3157_v45  ;;  %v740_v5 = vunpack.c.h.bf16 %v3157_v45  ;;  %v3183_v9 = vpop.permute.xlu1 %629 }
 0x11f   :  { %v526_v48 = vadd.f32 %v525_v46, %v3120_v60  ;;  %v574_v49 = vpop.f32.mrf.mxu1  ;;  %v771_v10 = vmax.f32 %v769_v50, %v770_v58  ;;  %v778_v12 = vmax.f32 %v776_v51, %v777_v59 }
 0x120   :  { %v575_v52 = vadd.f32 %v574_v49, %v3122_v1 }
 0x121   :  { %v693_v53 = vmul.f32 %v3159_v47, %v526_v48  ;;  %v772_v14 = vrot.slane %v771_v10, 1  ;;  %v779_v24 = vrot.slane %v778_v12, 1 }
 0x122   :  { %v694_v54 = vmul.f32 %v3159_v47, %v575_v52 }
 0x123   :  { %v773_v31 = vmax.f32 %v771_v10, %v772_v14  ;;  %v780_v32 = vmax.f32 %v778_v12, %v779_v24 }
 0x124   :  { %v3174_v61 = vpack.c.bf16 %v694_v54, %v693_v53 }
 0x125   :  { %v879_v44 = vpack.c.bf16 %v773_v31, %v773_v31  ;;  %v880_v46 = vpack.c.bf16 %v780_v32, %v780_v32 }
 0x126   :  { %v741_v6 = vunpack.c.l.bf16 %v3174_v61  ;;  %v742_v7 = vunpack.c.h.bf16 %v3174_v61 }
 0x127   :  { %v943_v63 = vunpack.c.l.b16 %v879_v44 }
 0x128   :  { %v781_v8 = vmax.f32 %v739_v4, %v741_v6  ;;  %v788_v13 = vmax.f32 %v740_v5, %v742_v7  ;;  %v528_v16 = vpop.f32.mrf.mxu0  ;;  %v577_v18 = vpop.f32.mrf.mxu1  ;;  %v944_v4 = vunpack.c.l.b16 %v880_v46 }
 0x129   :  { %v529_v19 = vadd.f32 %v528_v16, %v3120_v60  ;;  %v578_v20 = vadd.f32 %v577_v18, %v3122_v1  ;;  %v2347_v16 = vld [vmem:[%s3968_s7 + $0xe0] sm:$0xf]  ;;  %v3219_v46 = vpop.permute.xlu1 %644 }
 0x12a   :  { %v782_v22 = vrot.slane %v781_v8, 4  ;;  %v789_v2 = vrot.slane %v788_v13, 4  ;;  %3982 = vst [vmem:[#allocation5_spill] sm:$0xff] %v3219_v46 }
 0x12b   :  { %v695_v11 = vmul.f32 %v3183_v9, %v529_v19  ;;  %v696_v23 = vmul.f32 %v3183_v9, %v578_v20 }
 0x12c   :  { %v783_v25 = vmax.f32 %v781_v8, %v782_v22  ;;  %v790_v26 = vmax.f32 %v788_v13, %v789_v2  ;;  %v2283_v8 = vld [vmem:[%s3968_s7 + $0x60] sm:$0xf]  ;;  %v2582_v13 = vld [vmem:[%s3968_s7 + $0x64] sm:$0xf0] }
 0x12d   :  { %v723_v27 = vpack.c.bf16 %v696_v23, %v695_v11  ;;  %v2284_v2 = vor.u32 %v2582_v13, %v2283_v8  ;;  %v2598_v11 = vld [vmem:[%s3968_s7 + $0xe4] sm:$0xf0] }
 0x12e   :  { %v784_v28 = vrot.slane %v783_v25, 2  ;;  %v791_v30 = vrot.slane %v790_v26, 2  ;;  %v2348_v23 = vor.u32 %v2598_v11, %v2347_v16 }
 0x12f   :  { %v743_v50 = vunpack.c.l.bf16 %v723_v27  ;;  %v744_v51 = vunpack.c.h.bf16 %v723_v27  ;;  %v1252_v55 = vunpack.c.l.b16 %v723_v27  ;;  %v1253_v56 = vunpack.c.h.b16 %v723_v27  ;;  %1145 = vmatpush.bf16.msrb.mxu0 %v2284_v2  ;;  %v3213_v27 = vpop.permute.xlu0 %639 }
 0x130   :  { %v785_v33 = vmax.f32 %v783_v25, %v784_v28  ;;  %v792_v34 = vmax.f32 %v790_v26, %v791_v30  ;;  %v530_v36 = vpop.f32.mrf.mxu0  ;;  %v579_v37 = vpop.f32.mrf.mxu1  ;;  %1158 = vmatpush.bf16.msrb.mxu1 %v2348_v23 }
 0x131   :  { %v531_v38 = vadd.f32 %v530_v36, %v3120_v60  ;;  %v580_v40 = vadd.f32 %v579_v37, %v3122_v1 }
 0x132   :  { %v786_v39 = vrot.slane %v785_v33, 1  ;;  %v793_v41 = vrot.slane %v792_v34, 1 }
 0x133   :  { %v697_v42 = vmul.f32 %v3189_v15, %v531_v38  ;;  %v698_v43 = vmul.f32 %v3189_v15, %v580_v40 }
 0x134   :  { %v787_v48 = vmax.f32 %v785_v33, %v786_v39  ;;  %v794_v49 = vmax.f32 %v792_v34, %v793_v41 }
 0x135   :  { %v724_v52 = vpack.c.bf16 %v698_v43, %v697_v42 }
 0x136   :  { %v881_v53 = vpack.c.bf16 %v787_v48, %v787_v48  ;;  %v882_v54 = vpack.c.bf16 %v794_v49, %v794_v49 }
 0x137   :  { %v745_v57 = vunpack.c.l.bf16 %v724_v52  ;;  %v746_v58 = vunpack.c.h.bf16 %v724_v52  ;;  %v1254_v59 = vunpack.c.l.b16 %v724_v52  ;;  %v1255_v62 = vunpack.c.h.b16 %v724_v52 }
 0x138   :  { %v945_v0 = vunpack.c.l.b16 %v881_v53  ;;  %v946_v5 = vunpack.c.l.b16 %v882_v54  ;;  %v2275_v54 = vld [vmem:[%s3968_s7 + $0x50] sm:$0xf] }
 0x139   :  { %v795_v6 = vmax.f32 %v743_v50, %v745_v57  ;;  %v802_v7 = vmax.f32 %v744_v51, %v746_v58  ;;  %v3195_v10 = vpack.c.b16 %v1254_v59, %v1252_v55  ;;  %v3197_v12 = vpack.c.b16 %v1255_v62, %v1253_v56  ;;  %v2580_v55 = vld [vmem:[%s3968_s7 + $0x54] sm:$0xf0]  ;;  %v2339_v56 = vld [vmem:[%s3968_s7 + $0xd0] sm:$0xf] }
 0x13a   :  { %v960_v18 = vsel %vm959_vm0, %v945_v0, %v943_v63  ;;  %v973_v19 = vsel %vm959_vm0, %v946_v5, %v944_v4  ;;  %v2276_v57 = vor.u32 %v2580_v55, %v2275_v54  ;;  %v2596_v58 = vld [vmem:[%s3968_s7 + $0xd4] sm:$0xf0] }
 0x13b   :  { %v796_v20 = vrot.slane %v795_v6, 4  ;;  %v803_v22 = vrot.slane %v802_v7, 4  ;;  %v2340_v4 = vor.u32 %v2596_v58, %v2339_v56 }
 0x13c   :  { %1146 = vmatpush.bf16.msrb.mxu0 %v2276_v57 }
 0x13d   :  { %v797_v14 = vmax.f32 %v795_v6, %v796_v20  ;;  %v804_v24 = vmax.f32 %v802_v7, %v803_v22  ;;  %1159 = vmatpush.bf16.msrb.mxu1 %v2340_v4 }
 0x13f   :  { %v798_v25 = vrot.slane %v797_v14, 2  ;;  %v805_v26 = vrot.slane %v804_v24, 2 }
 0x141   :  { %v799_v28 = vmax.f32 %v797_v14, %v798_v25  ;;  %v806_v30 = vmax.f32 %v804_v24, %v805_v26  ;;  %v533_v31 = vpop.f32.mrf.mxu0  ;;  %v582_v32 = vpop.f32.mrf.mxu1 }
 0x142   :  { %v534_v33 = vadd.f32 %v533_v31, %v3120_v60  ;;  %v583_v34 = vadd.f32 %v582_v32, %v3122_v1 }
 0x143   :  { %v800_v36 = vrot.slane %v799_v28, 1  ;;  %v807_v37 = vrot.slane %v806_v30, 1 }
 0x144   :  { %v699_v38 = vmul.f32 %v3213_v27, %v534_v33  ;;  %v700_v40 = vmul.f32 %v3213_v27, %v583_v34  ;;  %v3249_v33 = vpop.permute.xlu2 %649 }
 0x145   :  { %v801_v39 = vmax.f32 %v799_v28, %v800_v36  ;;  %v808_v41 = vmax.f32 %v806_v30, %v807_v37  ;;  %3983 = vst [vmem:[#allocation6_spill] sm:$0xff] %v3249_v33 }
 0x146   :  { %v725_v42 = vpack.c.bf16 %v700_v40, %v699_v38 }
 0x147   :  { %v883_v43 = vpack.c.bf16 %v801_v39, %v801_v39  ;;  %v884_v44 = vpack.c.bf16 %v808_v41, %v808_v41  ;;  %v3253_v41 = vpop.permute.xlu0 %654 }
 0x148   :  { %v747_v6 = vunpack.c.l.bf16 %v725_v42  ;;  %v748_v7 = vunpack.c.h.bf16 %v725_v42  ;;  %v1256_v8 = vunpack.c.l.b16 %v725_v42  ;;  %v1257_v13 = vunpack.c.h.b16 %v725_v42  ;;  %3984 = vst [vmem:[#allocation7_spill] sm:$0xff] %v3253_v41  ;;  %v2267_v42 = vld [vmem:[%s3968_s7 + $0x40] sm:$0xf] }
 0x149   :  { %v535_v48 = vpop.f32.mrf.mxu0  ;;  %v584_v49 = vpop.f32.mrf.mxu1  ;;  %v947_v50 = vunpack.c.l.b16 %v883_v43  ;;  %v948_v51 = vunpack.c.l.b16 %v884_v44  ;;  %v2578_v43 = vld [vmem:[%s3968_s7 + $0x44] sm:$0xf0]  ;;  %v2331_v44 = vld [vmem:[%s3968_s7 + $0xc0] sm:$0xf] }
 0x14a   :  { %v536_v52 = vadd.f32 %v535_v48, %v3120_v60  ;;  %v585_v53 = vadd.f32 %v584_v49, %v3122_v1 }
 0x14b   :  { %v3236_v59 = vsel %vm961_vm1, %v947_v50, %v960_v18  ;;  %v3239_v62 = vsel %vm961_vm1, %v948_v51, %v973_v19  ;;  %v2268_v50 = vor.u32 %v2578_v43, %v2267_v42  ;;  %v2594_v51 = vld [vmem:[%s3968_s7 + $0xc4] sm:$0xf0]  ;;  %v2599_v42 = vld [vmem:[%s3968_s7 + $0xf4] sm:$0xf]  ;;  %v2357_v43 = vld [vmem:[%s3968_s7 + $0xf8] sm:$0xf0] }
 0x14c   :  { %v701_v63 = vmul.f32 %v3219_v46, %v536_v52  ;;  %v702_v0 = vmul.f32 %v3219_v46, %v585_v53  ;;  %v2332_v54 = vor.u32 %v2594_v51, %v2331_v44  ;;  %v2574_v51 = vld [vmem:[%s3968_s7 + $0x24] sm:$0xf0] }
 0x14d   :  { %1147 = vmatpush.bf16.msrb.mxu0 %v2268_v50  ;;  %v2251_v50 = vld [vmem:[%s3968_s7 + $0x20] sm:$0xf] }
 0x14e   :  { %v726_v5 = vpack.c.bf16 %v702_v0, %v701_v63  ;;  %1160 = vmatpush.bf16.msrb.mxu1 %v2332_v54 }
 0x150   :  { %v749_v16 = vunpack.c.l.bf16 %v726_v5  ;;  %v750_v20 = vunpack.c.h.bf16 %v726_v5  ;;  %v1258_v22 = vunpack.c.l.b16 %v726_v5  ;;  %v1259_v18 = vunpack.c.h.b16 %v726_v5 }
 0x152   :  { %v809_v2 = vmax.f32 %v747_v6, %v749_v16  ;;  %v816_v11 = vmax.f32 %v748_v7, %v750_v20  ;;  %v3243_v19 = vpack.c.b16 %v1258_v22, %v1256_v8  ;;  %v3245_v23 = vpack.c.b16 %v1259_v18, %v1257_v13  ;;  %v2259_v6 = vld [vmem:[%s3968_s7 + $0x30] sm:$0xf]  ;;  %v2576_v7 = vld [vmem:[%s3968_s7 + $0x34] sm:$0xf0] }
 0x153   :  { %v538_v14 = vpop.f32.mrf.mxu0  ;;  %v587_v24 = vpop.f32.mrf.mxu1  ;;  %v2323_v8 = vld [vmem:[%s3968_s7 + $0xb0] sm:$0xf]  ;;  %v2260_v16 = vor.u32 %v2576_v7, %v2259_v6  ;;  %v2592_v20 = vld [vmem:[%s3968_s7 + $0xb4] sm:$0xf0] }
 0x154   :  { %v810_v25 = vrot.slane %v809_v2, 4  ;;  %v817_v26 = vrot.slane %v816_v11, 4  ;;  %v539_v31 = vadd.f32 %v538_v14, %v3120_v60  ;;  %v588_v32 = vadd.f32 %v587_v24, %v3122_v1 }
 0x155   :  { %v2324_v18 = vor.u32 %v2592_v20, %v2323_v8  ;;  %1148 = vmatpush.bf16.msrb.mxu0 %v2260_v16  ;;  %v2597_v8 = vld [vmem:[%s3968_s7 + $0xe4] sm:$0xf]  ;;  %v3347_v16 = vpop.permute.xlu2 %664 }
 0x156   :  { %v811_v28 = vmax.f32 %v809_v2, %v810_v25  ;;  %v818_v30 = vmax.f32 %v816_v11, %v817_v26  ;;  %v703_v40 = vmul.f32 %v3249_v33, %v539_v31  ;;  %v704_v39 = vmul.f32 %v3249_v33, %v588_v32  ;;  %3986 = vst [vmem:[#allocation9_spill] sm:$0xff] %v3347_v16 }
 0x157   :  { %1161 = vmatpush.bf16.msrb.mxu1 %v2324_v18 }
 0x158   :  { %v812_v34 = vrot.slane %v811_v28, 2  ;;  %v819_v36 = vrot.slane %v818_v30, 2  ;;  %v3269_v57 = vpack.c.bf16 %v704_v39, %v703_v40  ;;  %v3305_v40 = vpop.permute.xlu1 %659  ;;  %v2293_v39 = vld [vmem:[%s3968_s7 + $0x78] sm:$0xf0] }
 0x159   :  { %3985 = vst [vmem:[#allocation8_spill] sm:$0xff] %v3305_v40 }
 0x15a   :  { %v813_v37 = vmax.f32 %v811_v28, %v812_v34  ;;  %v820_v38 = vmax.f32 %v818_v30, %v819_v36  ;;  %v1260_v11 = vunpack.c.l.b16 %v3269_v57  ;;  %v1261_v25 = vunpack.c.h.b16 %v3269_v57 }
 0x15b   :  { %v540_v48 = vpop.f32.mrf.mxu0  ;;  %v589_v49 = vpop.f32.mrf.mxu1 }
 0x15c   :  { %v541_v52 = vadd.f32 %v540_v48, %v3120_v60  ;;  %v590_v53 = vadd.f32 %v589_v49, %v3122_v1  ;;  %v814_v55 = vrot.slane %v813_v37, 1  ;;  %v821_v56 = vrot.slane %v820_v38, 1 }
 0x15d   :  { %v2360_v49 = vor.u32 %v2599_v42, %v2357_v43 }
 0x15e   :  { %v705_v58 = vmul.f32 %v3253_v41, %v541_v52  ;;  %v706_v63 = vmul.f32 %v3253_v41, %v590_v53  ;;  %v815_v0 = vmax.f32 %v813_v37, %v814_v55  ;;  %v822_v4 = vmax.f32 %v820_v38, %v821_v56  ;;  %v2315_v52 = vld [vmem:[%s3968_s7 + $0xa0] sm:$0xf]  ;;  %v2590_v56 = vld [vmem:[%s3968_s7 + $0xa4] sm:$0xf0] }
 0x15f   :  { %v2252_v55 = vor.u32 %v2574_v51, %v2251_v50  ;;  %1183 = vmatpush.bf16.msra.mxu3 %v2360_v49  ;;  %v2316_v6 = vor.u32 %v2590_v56, %v2315_v52  ;;  %v2577_v49 = vld [vmem:[%s3968_s7 + $0x44] sm:$0xf] }
 0x160   :  { %v3273_v5 = vpack.c.bf16 %v706_v63, %v705_v58  ;;  %v885_v13 = vpack.c.bf16 %v815_v0, %v815_v0  ;;  %v886_v22 = vpack.c.bf16 %v822_v4, %v822_v4  ;;  %v2581_v58 = vld [vmem:[%s3968_s7 + $0x64] sm:$0xf]  ;;  %v2285_v63 = vld [vmem:[%s3968_s7 + $0x68] sm:$0xf0] }
 0x161   :  { %v2288_v7 = vor.u32 %v2581_v58, %v2285_v63  ;;  %1149 = vmatpush.bf16.msrb.mxu0 %v2252_v55  ;;  %1162 = vmatpush.bf16.msrb.mxu1 %v2316_v6  ;;  %v2593_v50 = vld [vmem:[%s3968_s7 + $0xc4] sm:$0xf] }
 0x162   :  { %v949_v2 = vunpack.c.l.b16 %v885_v13  ;;  %v950_v14 = vunpack.c.l.b16 %v886_v22  ;;  %v1262_v24 = vunpack.c.l.b16 %v3273_v5  ;;  %v1263_v26 = vunpack.c.h.b16 %v3273_v5  ;;  %v2349_v13 = vld [vmem:[%s3968_s7 + $0xe8] sm:$0xf0] }
 0x163   :  { %v2352_v20 = vor.u32 %v2597_v8, %v2349_v13  ;;  %v2575_v8 = vld [vmem:[%s3968_s7 + $0x34] sm:$0xf]  ;;  %v2261_v13 = vld [vmem:[%s3968_s7 + $0x38] sm:$0xf0] }
 0x164   :  { %v3293_v28 = vsel %vm963_vm2, %v949_v2, %v3236_v59  ;;  %v3297_v32 = vsel %vm963_vm2, %v950_v14, %v3239_v62  ;;  %v3299_v34 = vpack.c.b16 %v1262_v24, %v1260_v11  ;;  %v3301_v36 = vpack.c.b16 %v1263_v26, %v1261_v25  ;;  %v2583_v59 = vld [vmem:[%s3968_s7 + $0x74] sm:$0xf]  ;;  %v2277_v26 = vld [vmem:[%s3968_s7 + $0x58] sm:$0xf0] }
 0x165   :  { %v543_v30 = vpop.f32.mrf.mxu0  ;;  %v592_v31 = vpop.f32.mrf.mxu1  ;;  %v2296_v62 = vor.u32 %v2583_v59, %v2293_v39  ;;  %v753_v11 = vunpack.c.l.bf16 %v3273_v5  ;;  %v754_v14 = vunpack.c.h.bf16 %v3273_v5  ;;  %1184 = vmatpush.bf16.msra.mxu3 %v2352_v20  ;;  %v2579_v25 = vld [vmem:[%s3968_s7 + $0x54] sm:$0xf] }
 0x166   :  { %v544_v37 = vadd.f32 %v543_v30, %v3120_v60  ;;  %v593_v38 = vadd.f32 %v592_v31, %v3122_v1  ;;  %v2595_v30 = vld [vmem:[%s3968_s7 + $0xd4] sm:$0xf]  ;;  %v751_v31 = vunpack.c.l.bf16 %v3269_v57  ;;  %v2280_v5 = vor.u32 %v2579_v25, %v2277_v26 }
 0x167   :  { %1170 = vmatpush.bf16.msra.mxu2 %v2296_v62  ;;  %v2591_v20 = vld [vmem:[%s3968_s7 + $0xb4] sm:$0xf] }
 0x168   :  { %v707_v44 = vmul.f32 %v3305_v40, %v544_v37  ;;  %v708_v48 = vmul.f32 %v3305_v40, %v593_v38  ;;  %v752_v37 = vunpack.c.h.bf16 %v3269_v57  ;;  %v2341_v38 = vld [vmem:[%s3968_s7 + $0xd8] sm:$0xf0]  ;;  %v823_v42 = vmax.f32 %v751_v31, %v753_v11  ;;  %v2269_v57 = vld [vmem:[%s3968_s7 + $0x48] sm:$0xf0] }
 0x169   :  { %v2344_v59 = vor.u32 %v2595_v30, %v2341_v38  ;;  %v2272_v52 = vor.u32 %v2577_v49, %v2269_v57  ;;  %v2253_v38 = vld [vmem:[%s3968_s7 + $0x28] sm:$0xf0] }
 0x16a   :  { %v729_v22 = vpack.c.bf16 %v708_v48, %v707_v44  ;;  %v830_v43 = vmax.f32 %v752_v37, %v754_v14  ;;  %v824_v56 = vrot.slane %v823_v42, 4  ;;  %v2264_v14 = vor.u32 %v2575_v8, %v2261_v13  ;;  %v2588_v8 = vld [vmem:[%s3968_s7 + $0x94] sm:$0xf0]  ;;  %v2571_v13 = vld [vmem:[%s3968_s7 + $0x14] sm:$0xf] }
 0x16b   :  { %1171 = vmatpush.bf16.msra.mxu2 %v2288_v7  ;;  %1185 = vmatpush.bf16.msra.mxu3 %v2344_v59  ;;  %v2589_v59 = vld [vmem:[%s3968_s7 + $0xa4] sm:$0xf] }
 0x16c   :  { %v1264_v39 = vunpack.c.l.b16 %v729_v22  ;;  %v1265_v44 = vunpack.c.h.b16 %v729_v22  ;;  %v831_v58 = vrot.slane %v830_v43, 4  ;;  %v755_v7 = vunpack.c.l.bf16 %v729_v22 }
 0x16d   :  { %v545_v53 = vpop.f32.mrf.mxu0  ;;  %v594_v54 = vpop.f32.mrf.mxu1  ;;  %v3397_v26 = vmax.f32 %v823_v42, %v824_v56 }
 0x16e   :  { %v546_v0 = vadd.f32 %v545_v53, %v3120_v60  ;;  %v595_v4 = vadd.f32 %v594_v54, %v3122_v1  ;;  %v2333_v53 = vld [vmem:[%s3968_s7 + $0xc8] sm:$0xf0]  ;;  %v3399_v30 = vmax.f32 %v830_v43, %v831_v58  ;;  %v2243_v58 = vld [vmem:[%s3968_s7 + $0x10] sm:$0xf] }
 0x16f   :  { %1172 = vmatpush.bf16.msra.mxu2 %v2280_v5  ;;  %v2336_v55 = vor.u32 %v2593_v50, %v2333_v53  ;;  %v3403_v5 = vpop.permute.xlu0 %669  ;;  %v2317_v43 = vld [vmem:[%s3968_s7 + $0xa8] sm:$0xf0] }
 0x170   :  { %v709_v18 = vmul.f32 %v3347_v16, %v546_v0  ;;  %v710_v2 = vmul.f32 %v3347_v16, %v595_v4  ;;  %3987 = vst [vmem:[#allocation10_spill] sm:$0xff] %v3403_v5  ;;  %v833_v49 = vrot.slane %v3399_v30, 2 }
 0x171   :  { %1186 = vmatpush.bf16.msra.mxu3 %v2336_v55 }
 0x172   :  { %v730_v24 = vpack.c.bf16 %v710_v2, %v709_v18  ;;  %v756_v18 = vunpack.c.h.bf16 %v729_v22  ;;  %v2573_v22 = vld [vmem:[%s3968_s7 + $0x24] sm:$0xf] }
 0x173   :  { %1173 = vmatpush.bf16.msra.mxu2 %v2272_v52  ;;  %v2256_v42 = vor.u32 %v2573_v22, %v2253_v38  ;;  %v2235_v22 = vld [vmem:[%s3968_s7] sm:$0xf] }
 0x174   :  { %v1266_v62 = vunpack.c.l.b16 %v730_v24  ;;  %v1267_v48 = vunpack.c.h.b16 %v730_v24  ;;  %v757_v63 = vunpack.c.l.bf16 %v730_v24  ;;  %v758_v0 = vunpack.c.h.bf16 %v730_v24  ;;  %v2325_v24 = vld [vmem:[%s3968_s7 + $0xb8] sm:$0xf0] }
 0x175   :  { %v2328_v25 = vor.u32 %v2591_v20, %v2325_v24  ;;  %v2245_v20 = vld [vmem:[%s3968_s7 + $0x18] sm:$0xf0]  ;;  %v2587_v24 = vld [vmem:[%s3968_s7 + $0x94] sm:$0xf] }
 0x176   :  { %v3376_v51 = vpack.c.b16 %v1266_v62, %v1264_v39  ;;  %v3381_v54 = vpack.c.b16 %v1267_v48, %v1265_v44  ;;  %v837_v31 = vmax.f32 %v755_v7, %v757_v63  ;;  %v3401_v37 = vmax.f32 %v756_v18, %v758_v0  ;;  %v2572_v63 = vld [vmem:[%s3968_s7 + $0x14] sm:$0xf0]  ;;  %v2307_v0 = vld [vmem:[%s3968_s7 + $0x90] sm:$0xf] }
 0x177   :  { %1174 = vmatpush.bf16.msra.mxu2 %v2264_v14  ;;  %1187 = vmatpush.bf16.msra.mxu3 %v2328_v25  ;;  %v2320_v44 = vor.u32 %v2589_v59, %v2317_v43  ;;  %v826_v48 = vrot.slane %v3397_v26, 2  ;;  %v2244_v7 = vor.u32 %v2572_v63, %v2243_v58  ;;  %v2248_v14 = vor.u32 %v2571_v13, %v2245_v20  ;;  %v2309_v25 = vld [vmem:[%s3968_s7 + $0x98] sm:$0xf0]  ;;  %v2570_v59 = vld [vmem:[%s3968_s7 + $0x4] sm:$0xf0] }
 0x178   :  { %v838_v57 = vrot.slane %v837_v31, 4  ;;  %v845_v50 = vrot.slane %v3401_v37, 4  ;;  %v2312_v38 = vor.u32 %v2587_v24, %v2309_v25  ;;  %v2236_v43 = vor.u32 %v2570_v59, %v2235_v22  ;;  %v2616_v13 = vld [vmem:[%s3967_s6 + $0x74] sm:$0xf0]  ;;  %v2421_v25 = vld [vmem:[%s3967_s6 + $0x78] sm:$0xf0] }
 0x179   :  { %v548_v4 = vpop.f32.mrf.mxu0  ;;  %v597_v6 = vpop.f32.mrf.mxu1  ;;  %1150 = vmatpush.bf16.msrb.mxu0 %v2244_v7  ;;  %v2301_v7 = vld [vmem:[%s3968_s7 + $0x88] sm:$0xf0]  ;;  %v2631_v22 = vld [vmem:[%s3967_s6 + $0xf4] sm:$0xf] }
 0x17a   :  { %v549_v2 = vadd.f32 %v548_v4, %v3120_v60  ;;  %v598_v11 = vadd.f32 %v597_v6, %v3122_v1  ;;  %v3435_v6 = vpop.permute.xlu1 %674 }
 0x17b   :  { %1175 = vmatpush.bf16.msra.mxu2 %v2256_v42  ;;  %1188 = vmatpush.bf16.msra.mxu3 %v2320_v44  ;;  %3988 = vst [vmem:[#allocation11_spill] sm:$0xff] %v3435_v6 }
 0x17c   :  { %v711_v39 = vmul.f32 %v3403_v5, %v549_v2  ;;  %v712_v62 = vmul.f32 %v3403_v5, %v598_v11  ;;  %v2308_v11 = vor.u32 %v2588_v8, %v2307_v0  ;;  %v2419_v8 = vld [vmem:[%s3967_s6 + $0x70] sm:$0xf] }
 0x17d   :  { %1151 = vmatpush.bf16.msrb.mxu0 %v2236_v43 }
 0x17e   :  { %v3433_v4 = vpack.c.bf16 %v712_v62, %v711_v39  ;;  %v2299_v39 = vld [vmem:[%s3968_s7 + $0x80] sm:$0xf]  ;;  %v2586_v62 = vld [vmem:[%s3968_s7 + $0x84] sm:$0xf0]  ;;  %1163 = vmatpush.bf16.msrb.mxu1 %v2308_v11  ;;  %v2632_v11 = vld [vmem:[%s3967_s6 + $0xf4] sm:$0xf0] }
 0x17f   :  { %1176 = vmatpush.bf16.msra.mxu2 %v2248_v14  ;;  %v2300_v44 = vor.u32 %v2586_v62, %v2299_v39  ;;  %1189 = vmatpush.bf16.msra.mxu3 %v2312_v38  ;;  %v2615_v14 = vld [vmem:[%s3967_s6 + $0x74] sm:$0xf]  ;;  %v2485_v38 = vld [vmem:[%s3967_s6 + $0xf8] sm:$0xf0] }
 0x180   :  { %v759_v58 = vunpack.c.l.bf16 %v3433_v4  ;;  %v760_v63 = vunpack.c.h.bf16 %v3433_v4  ;;  %v1268_v59 = vunpack.c.l.b16 %v3433_v4  ;;  %v2424_v43 = vor.u32 %v2615_v14, %v2421_v25 }
 0x181   :  { %v550_v52 = vpop.f32.mrf.mxu0  ;;  %v599_v53 = vpop.f32.mrf.mxu1 }
 0x182   :  { %v551_v55 = vadd.f32 %v550_v52, %v3120_v60  ;;  %v600_v56 = vadd.f32 %v599_v53, %v3122_v1  ;;  %v2569_v52 = vld [vmem:[%s3968_s7 + $0x4] sm:$0xf]  ;;  %v2237_v53 = vld [vmem:[%s3968_s7 + $0x8] sm:$0xf0]  ;;  %1164 = vmatpush.bf16.msrb.mxu1 %v2300_v44  ;;  %v2630_v44 = vld [vmem:[%s3967_s6 + $0xe4] sm:$0xf0]  ;;  %1566 = vmatpush.bf16.msra.mxu0 %v2424_v43 }
 0x183   :  { %v2240_v0 = vor.u32 %v2569_v52, %v2237_v53  ;;  %v2411_v53 = vld [vmem:[%s3967_s6 + $0x60] sm:$0xf]  ;;  %v2405_v43 = vld [vmem:[%s3967_s6 + $0x58] sm:$0xf0] }
 0x184   :  { %v713_v18 = vmul.f32 %v3435_v6, %v551_v55  ;;  %v714_v2 = vmul.f32 %v3435_v6, %v600_v56  ;;  %v2585_v55 = vld [vmem:[%s3968_s7 + $0x84] sm:$0xf]  ;;  %v3475_v56 = vmax.f32 %v837_v31, %v838_v57 }
 0x185   :  { %v2304_v20 = vor.u32 %v2585_v55, %v2301_v7  ;;  %1177 = vmatpush.bf16.msra.mxu2 %v2240_v0  ;;  %v2614_v55 = vld [vmem:[%s3967_s6 + $0x64] sm:$0xf0]  ;;  %v2475_v7 = vld [vmem:[%s3967_s6 + $0xe0] sm:$0xf]  ;;  %v2613_v0 = vld [vmem:[%s3967_s6 + $0x64] sm:$0xf] }
 0x186   :  { %v732_v42 = vpack.c.bf16 %v714_v2, %v713_v18  ;;  %v2420_v18 = vor.u32 %v2616_v13, %v2419_v8  ;;  %v2483_v2 = vld [vmem:[%s3967_s6 + $0xf0] sm:$0xf]  ;;  %v2413_v13 = vld [vmem:[%s3967_s6 + $0x68] sm:$0xf0]  ;;  %v840_v14 = vrot.slane %v3475_v56, 2 }
 0x187   :  { %v2484_v24 = vor.u32 %v2632_v11, %v2483_v2  ;;  %1190 = vmatpush.bf16.msra.mxu3 %v2304_v20  ;;  %v2476_v20 = vor.u32 %v2630_v44, %v2475_v7  ;;  %v2629_v2 = vld [vmem:[%s3967_s6 + $0xe4] sm:$0xf]  ;;  %v2477_v11 = vld [vmem:[%s3967_s6 + $0xe8] sm:$0xf0]  ;;  %v2627_v7 = vld [vmem:[%s3967_s6 + $0xd4] sm:$0xf] }
 0x188   :  { %v761_v31 = vunpack.c.l.bf16 %v732_v42  ;;  %v762_v57 = vunpack.c.h.bf16 %v732_v42  ;;  %v1270_v39 = vunpack.c.l.b16 %v732_v42  ;;  %v1271_v8 = vunpack.c.h.b16 %v732_v42 }
 0x189   :  { %1468 = vmatpush.bf16.msrb.mxu2 %v2420_v18  ;;  %v1269_v42 = vunpack.c.h.b16 %v3433_v4  ;;  %v2416_v18 = vor.u32 %v2613_v0, %v2413_v13  ;;  %v2480_v25 = vor.u32 %v2629_v2, %v2477_v11  ;;  %v2403_v4 = vld [vmem:[%s3967_s6 + $0x50] sm:$0xf]  ;;  %v2395_v0 = vld [vmem:[%s3967_s6 + $0x40] sm:$0xf]  ;;  %v2397_v2 = vld [vmem:[%s3967_s6 + $0x48] sm:$0xf0]  ;;  %v3585_v11 = vmax.f32 %v3397_v26, %v826_v48 }
 0x18a   :  { %v851_v62 = vmax.f32 %v759_v58, %v761_v31  ;;  %v3507_v52 = vmax.f32 %v760_v63, %v762_v57  ;;  %v2488_v58 = vor.u32 %v2631_v22, %v2485_v38  ;;  %v2412_v63 = vor.u32 %v2614_v55, %v2411_v53  ;;  %v2467_v22 = vld [vmem:[%s3967_s6 + $0xd0] sm:$0xf]  ;;  %v2459_v13 = vld [vmem:[%s3967_s6 + $0xc0] sm:$0xf] }
 0x18b   :  { %v3527_v31 = vpack.c.b16 %v1270_v39, %v1268_v59  ;;  %1517 = vmatpush.bf16.msrb.mxu3 %v2484_v24  ;;  %v2612_v24 = vld [vmem:[%s3967_s6 + $0x54] sm:$0xf0]  ;;  %v3546_v38 = vpack.c.b16 %v1271_v8, %v1269_v42  ;;  %v2611_v39 = vld [vmem:[%s3967_s6 + $0x54] sm:$0xf]  ;;  %v2469_v8 = vld [vmem:[%s3967_s6 + $0xd8] sm:$0xf0]  ;;  %1567 = vmatpush.bf16.msra.mxu0 %v2416_v18 }
 0x18c   :  { %v852_v57 = vrot.slane %v851_v62, 4  ;;  %1615 = vmatpush.bf16.msra.mxu1 %v2488_v58  ;;  %v2628_v59 = vld [vmem:[%s3967_s6 + $0xd4] sm:$0xf0]  ;;  %v859_v53 = vrot.slane %v3507_v52, 4  ;;  %v2404_v55 = vor.u32 %v2612_v24, %v2403_v4  ;;  %v2408_v44 = vor.u32 %v2611_v39, %v2405_v43  ;;  %v2609_v18 = vld [vmem:[%s3967_s6 + $0x44] sm:$0xf] }
 0x18d   :  { %1469 = vmatpush.bf16.msrb.mxu2 %v2412_v63  ;;  %v2468_v58 = vor.u32 %v2628_v59, %v2467_v22  ;;  %v2610_v63 = vld [vmem:[%s3967_s6 + $0x44] sm:$0xf0]  ;;  %v2472_v42 = vor.u32 %v2627_v7, %v2469_v8  ;;  %v2625_v22 = vld [vmem:[%s3967_s6 + $0xc4] sm:$0xf]  ;;  %v2461_v59 = vld [vmem:[%s3967_s6 + $0xc8] sm:$0xf0]  ;;  %v3599_v39 = vmax.f32 %v3475_v56, %v840_v14  ;;  %v2400_v14 = vor.u32 %v2609_v18, %v2397_v2 }
 0x18e   :  { %v3601_v26 = vmax.f32 %v851_v62, %v852_v57  ;;  %v2396_v43 = vor.u32 %v2610_v63, %v2395_v0  ;;  %v3611_v7 = vmax.f32 %v3507_v52, %v859_v53  ;;  %v2464_v62 = vor.u32 %v2625_v22, %v2461_v59  ;;  %v3613_v57 = vpop.permute.xlu2 %679  ;;  %v2608_v63 = vld [vmem:[%s3967_s6 + $0x34] sm:$0xf0]  ;;  %v2607_v18 = vld [vmem:[%s3967_s6 + $0x34] sm:$0xf]  ;;  %v2389_v2 = vld [vmem:[%s3967_s6 + $0x38] sm:$0xf0] }
 0x18f   :  { %1518 = vmatpush.bf16.msrb.mxu3 %v2476_v20  ;;  %v2626_v20 = vld [vmem:[%s3967_s6 + $0xc4] sm:$0xf0]  ;;  %1568 = vmatpush.bf16.msra.mxu0 %v2408_v44  ;;  %3989 = vst [vmem:[#allocation12_spill] sm:$0xff] %v3613_v57  ;;  %v2387_v44 = vld [vmem:[%s3967_s6 + $0x30] sm:$0xf]  ;;  %v2392_v59 = vor.u32 %v2607_v18, %v2389_v2 }
 0x190   :  { %1616 = vmatpush.bf16.msra.mxu1 %v2480_v25  ;;  %v3590_v25 = vmax.f32 %v3401_v37, %v845_v50  ;;  %v3606_v37 = vmax.f32 %v3399_v30, %v833_v49  ;;  %v2460_v56 = vor.u32 %v2626_v20, %v2459_v13  ;;  %v854_v53 = vrot.slane %v3601_v26, 2  ;;  %v2451_v13 = vld [vmem:[%s3967_s6 + $0xb0] sm:$0xf]  ;;  %v2624_v20 = vld [vmem:[%s3967_s6 + $0xb4] sm:$0xf0] }
 0x191   :  { %1470 = vmatpush.bf16.msrb.mxu2 %v2404_v55  ;;  %v2452_v22 = vor.u32 %v2624_v20, %v2451_v13  ;;  %v2443_v13 = vld [vmem:[%s3967_s6 + $0xa0] sm:$0xf]  ;;  %v2622_v20 = vld [vmem:[%s3967_s6 + $0xa4] sm:$0xf0]  ;;  %v2621_v18 = vld [vmem:[%s3967_s6 + $0xa4] sm:$0xf] }
 0x192   :  { %v553_v4 = vpop.f32.mrf.mxu0  ;;  %v602_v24 = vpop.f32.mrf.mxu1  ;;  %v847_v55 = vrot.slane %v3590_v25, 2 }
 0x193   :  { %v554_v48 = vadd.f32 %v553_v4, %v3120_v60  ;;  %v603_v50 = vadd.f32 %v602_v24, %v3122_v1  ;;  %1519 = vmatpush.bf16.msrb.mxu3 %v2468_v58  ;;  %v861_v58 = vrot.slane %v3611_v7, 2  ;;  %1569 = vmatpush.bf16.msra.mxu0 %v2400_v14 }
 0x194   :  { %1617 = vmatpush.bf16.msra.mxu1 %v2472_v42  ;;  %v2388_v42 = vor.u32 %v2608_v63, %v2387_v44  ;;  %v2606_v63 = vld [vmem:[%s3967_s6 + $0x24] sm:$0xf0] }
 0x195   :  { %v715_v0 = vmul.f32 %v3613_v57, %v554_v48  ;;  %v716_v52 = vmul.f32 %v3613_v57, %v603_v50  ;;  %1471 = vmatpush.bf16.msrb.mxu2 %v2396_v43  ;;  %v2623_v48 = vld [vmem:[%s3967_s6 + $0xb4] sm:$0xf]  ;;  %v2453_v50 = vld [vmem:[%s3967_s6 + $0xb8] sm:$0xf0]  ;;  %v2379_v43 = vld [vmem:[%s3967_s6 + $0x20] sm:$0xf] }
 0x196   :  { %v2456_v44 = vor.u32 %v2623_v48, %v2453_v50  ;;  %v2604_v48 = vld [vmem:[%s3967_s6 + $0x14] sm:$0xf0]  ;;  %v855_v50 = vmax.f32 %v3601_v26, %v854_v53  ;;  %v862_v26 = vmax.f32 %v3611_v7, %v861_v58  ;;  %v2619_v53 = vld [vmem:[%s3967_s6 + $0x94] sm:$0xf]  ;;  %v2363_v58 = vld [vmem:[%s3967_s6] sm:$0xf] }
 0x197   :  { %1520 = vmatpush.bf16.msrb.mxu3 %v2460_v56  ;;  %v3650_v56 = vpack.c.bf16 %v716_v52, %v715_v0  ;;  %v3663_v0 = vpop.permute.xlu0 %684  ;;  %1570 = vmatpush.bf16.msra.mxu0 %v2392_v59  ;;  %v2605_v52 = vld [vmem:[%s3967_s6 + $0x24] sm:$0xf]  ;;  %v2371_v59 = vld [vmem:[%s3967_s6 + $0x10] sm:$0xf] }
 0x198   :  { %1618 = vmatpush.bf16.msra.mxu1 %v2464_v62  ;;  %3990 = vst [vmem:[#allocation13_spill] sm:$0xff] %v3663_v0  ;;  %v863_v5 = vrot.slane %v862_v26, 1 }
 0x199   :  { %1472 = vmatpush.bf16.msrb.mxu2 %v2388_v42  ;;  %v2381_v42 = vld [vmem:[%s3967_s6 + $0x28] sm:$0xf0] }
 0x19a   :  { %v555_v4 = vpop.f32.mrf.mxu0  ;;  %v604_v24 = vpop.f32.mrf.mxu1 }
 0x19b   :  { %v556_v14 = vadd.f32 %v555_v4, %v3120_v60  ;;  %v605_v62 = vadd.f32 %v604_v24, %v3122_v1  ;;  %1521 = vmatpush.bf16.msrb.mxu3 %v2452_v22  ;;  %v2380_v60 = vor.u32 %v2606_v63, %v2379_v43  ;;  %v2444_v1 = vor.u32 %v2622_v20, %v2443_v13  ;;  %v2445_v22 = vld [vmem:[%s3967_s6 + $0xa8] sm:$0xf0]  ;;  %v2603_v63 = vld [vmem:[%s3967_s6 + $0x14] sm:$0xf] }
 0x19c   :  { %1619 = vmatpush.bf16.msra.mxu1 %v2456_v44  ;;  %v2384_v24 = vor.u32 %v2605_v52, %v2381_v42  ;;  %v848_v43 = vmax.f32 %v3590_v25, %v847_v55  ;;  %v2620_v44 = vld [vmem:[%s3967_s6 + $0x94] sm:$0xf0]  ;;  %v763_v13 = vunpack.c.l.bf16 %v3650_v56  ;;  %v2372_v25 = vor.u32 %v2604_v48, %v2371_v59  ;;  %v2373_v55 = vld [vmem:[%s3967_s6 + $0x18] sm:$0xf0]  ;;  %v2601_v48 = vld [vmem:[%s3967_s6 + $0x4] sm:$0xf] }
 0x19d   :  { %v717_v2 = vmul.f32 %v3663_v0, %v556_v14  ;;  %v718_v4 = vmul.f32 %v3663_v0, %v605_v62  ;;  %v2448_v14 = vor.u32 %v2621_v18, %v2445_v22  ;;  %v2435_v62 = vld [vmem:[%s3967_s6 + $0x90] sm:$0xf]  ;;  %1473 = vmatpush.bf16.msrb.mxu2 %v2380_v60  ;;  %v2437_v52 = vld [vmem:[%s3967_s6 + $0x98] sm:$0xf0]  ;;  %v764_v42 = vunpack.c.h.bf16 %v3650_v56  ;;  %v2602_v60 = vld [vmem:[%s3967_s6 + $0x4] sm:$0xf0] }
 0x19e   :  { %1571 = vmatpush.bf16.msra.mxu0 %v2384_v24  ;;  %v2436_v18 = vor.u32 %v2620_v44, %v2435_v62  ;;  %v2376_v7 = vor.u32 %v2603_v63, %v2373_v55  ;;  %v2618_v24 = vld [vmem:[%s3967_s6 + $0x84] sm:$0xf0]  ;;  %v2365_v62 = vld [vmem:[%s3967_s6 + $0x8] sm:$0xf0]  ;;  %v856_v63 = vrot.slane %v855_v50, 1  ;;  %v849_v55 = vrot.slane %v848_v43, 1 }
 0x19f   :  { %v734_v20 = vpack.c.bf16 %v718_v4, %v717_v2  ;;  %1522 = vmatpush.bf16.msrb.mxu3 %v2444_v1  ;;  %v2427_v2 = vld [vmem:[%s3967_s6 + $0x80] sm:$0xf]  ;;  %v1272_v4 = vunpack.c.l.b16 %v3650_v56  ;;  %v2440_v1 = vor.u32 %v2619_v53, %v2437_v52  ;;  %v2429_v53 = vld [vmem:[%s3967_s6 + $0x88] sm:$0xf0]  ;;  %v1273_v52 = vunpack.c.h.b16 %v3650_v56 }
 0x1a0   :  { %1620 = vmatpush.bf16.msra.mxu1 %v2448_v14  ;;  %v2617_v14 = vld [vmem:[%s3967_s6 + $0x84] sm:$0xf]  ;;  %v2364_v0 = vor.u32 %v2602_v60, %v2363_v58  ;;  %v2428_v6 = vor.u32 %v2618_v24, %v2427_v2  ;;  %v2368_v40 = vor.u32 %v2601_v48, %v2365_v62  ;;  %v3991_v56 = vrot.slane %v3585_v11, 1 }
 0x1a1   :  { %v765_v22 = vunpack.c.l.bf16 %v734_v20  ;;  %v766_v59 = vunpack.c.h.bf16 %v734_v20  ;;  %v1274_v44 = vunpack.c.l.b16 %v734_v20  ;;  %v1275_v49 = vunpack.c.h.b16 %v734_v20  ;;  %1474 = vmatpush.bf16.msrb.mxu2 %v2372_v25 }
 0x1a2   :  { %1572 = vmatpush.bf16.msra.mxu0 %v2376_v7  ;;  %v2432_v46 = vor.u32 %v2617_v14, %v2429_v53  ;;  %v3992_v20 = vrot.slane %v3606_v37, 1  ;;  %v850_v58 = vmax.f32 %v848_v43, %v849_v55  ;;  %v857_v60 = vmax.f32 %v855_v50, %v856_v63 }
 0x1a3   :  { %v865_v8 = vmax.f32 %v763_v13, %v765_v22  ;;  %v872_v30 = vmax.f32 %v764_v42, %v766_v59  ;;  %v3734_v57 = vpack.c.b16 %v1274_v44, %v1272_v4  ;;  %1523 = vmatpush.bf16.msrb.mxu3 %v2436_v18  ;;  %v3736_v33 = vpack.c.b16 %v1275_v49, %v1273_v52 }
 0x1a4   :  { %1621 = vmatpush.bf16.msra.mxu1 %v2440_v1  ;;  %v829_v13 = vmax.f32 %v3585_v11, %v3991_v56  ;;  %v836_v25 = vmax.f32 %v3606_v37, %v3992_v20  ;;  %v3993_v42 = vrot.slane %v3599_v39, 1  ;;  %v864_v2 = vmax.f32 %v862_v26, %v863_v5 }
 0x1a5   :  { %v866_v16 = vrot.slane %v865_v8, 4  ;;  %v873_v41 = vrot.slane %v872_v30, 4  ;;  %1475 = vmatpush.bf16.msrb.mxu2 %v2364_v0  ;;  %v890_v48 = vpack.c.bf16 %v850_v58, %v850_v58  ;;  %v891_v62 = vpack.c.bf16 %v857_v60, %v857_v60 }
 0x1a6   :  { %v843_v18 = vmax.f32 %v3599_v39, %v3993_v42  ;;  %1573 = vmatpush.bf16.msra.mxu0 %v2368_v40  ;;  %v887_v11 = vpack.c.bf16 %v829_v13, %v829_v13  ;;  %v888_v59 = vpack.c.bf16 %v836_v25, %v836_v25  ;;  %v892_v44 = vpack.c.bf16 %v864_v2, %v864_v2 }
 0x1a7   :  { %v867_v7 = vmax.f32 %v865_v8, %v866_v16  ;;  %v874_v49 = vmax.f32 %v872_v30, %v873_v41  ;;  %1524 = vmatpush.bf16.msrb.mxu3 %v2428_v6  ;;  %v954_v40 = vunpack.c.l.b16 %v890_v48  ;;  %v955_v0 = vunpack.c.l.b16 %v891_v62  ;;  %v2638_v48 = vld [vmem:[%s3970_s9 + $0x28] sm:$0xff] }
 0x1a8   :  { %1622 = vmatpush.bf16.msra.mxu1 %v2432_v46  ;;  %v889_v24 = vpack.c.bf16 %v843_v18, %v843_v18  ;;  %v951_v8 = vunpack.c.l.b16 %v887_v11  ;;  %v952_v41 = vunpack.c.l.b16 %v888_v59  ;;  %v956_v46 = vunpack.c.l.b16 %v892_v44  ;;  %v2648_v18 = vld [vmem:[%s3970_s9 + $0x78] sm:$0xff]  ;;  %v2647_v11 = vld [vmem:[%s3970_s9 + $0x70] sm:$0xff]  ;;  %v2646_v62 = vld [vmem:[%s3970_s9 + $0x68] sm:$0xff] }
 0x1a9   :  { %v868_v4 = vrot.slane %v867_v7, 2  ;;  %v875_v22 = vrot.slane %v874_v49, 2  ;;  %v1247_v58 = vunpack.c.h.b16 %v3145_v29  ;;  %v1245_v60 = vunpack.c.h.b16 %v3136_v17  ;;  %v2633_v44 = vld [vmem:[%s3970_s9] sm:$0xff] }
 0x1aa   :  { %v953_v5 = vunpack.c.l.b16 %v889_v24  ;;  %v966_v26 = vsel %vm965_vm3, %v951_v8, %v3293_v28  ;;  %v976_v63 = vsel %vm965_vm3, %v952_v41, %v3297_v32  ;;  %v2640_v32 = vld [vmem:[%s3970_s9 + $0x38] sm:$0xff]  ;;  %v1248_v59 = vunpack.c.l.b16 %v3157_v45 }
 0x1ab   :  { %v869_v1 = vmax.f32 %v867_v7, %v868_v4  ;;  %v876_v37 = vmax.f32 %v874_v49, %v875_v22  ;;  %v977_v52 = vsel %vm967_vm4, %v954_v40, %v976_v63  ;;  %v1246_v7 = vunpack.c.l.b16 %v3145_v29  ;;  %v2639_v22 = vld [vmem:[%s3970_s9 + $0x30] sm:$0xff]  ;;  %v1748_v63 = vld [vmem:[%s3969_s8] sm:$0x3] }
 0x1ac   :  { %v968_v14 = vsel %vm967_vm4, %v953_v5, %v966_v26  ;;  %v978_v13 = vsel %vm969_vm5, %v956_v46, %v977_v52  ;;  %v1244_v49 = vunpack.c.l.b16 %v3136_v17  ;;  %v1277_v4 = vpack.c.b16 %v1247_v58, %v1245_v60 }
 0x1ad   :  { %v870_v39 = vrot.slane %v869_v1, 1  ;;  %v877_v16 = vrot.slane %v876_v37, 1  ;;  %v970_v56 = vsel %vm969_vm5, %v955_v0, %v968_v14  ;;  %v1250_v29 = vunpack.c.l.b16 %v3174_v61 }
 0x1ae   :  { %v1276_v2 = vpack.c.b16 %v1246_v7, %v1244_v49  ;;  %v1251_v17 = vunpack.c.h.b16 %v3174_v61  ;;  %v2645_v61 = vld [vmem:[%s3970_s9 + $0x60] sm:$0xff]  ;;  %v3864_v49 = vperm.slane %v1748_v63, 0 }
 0x1af   :  { %v871_v30 = vmax.f32 %v869_v1, %v870_v39  ;;  %v878_v6 = vmax.f32 %v876_v37, %v877_v16  ;;  %v1249_v1 = vunpack.c.h.b16 %v3157_v45  ;;  %v1278_v24 = vpack.c.b16 %v1250_v29, %v1248_v59  ;;  %v2637_v45 = vld [vmem:[%s3970_s9 + $0x20] sm:$0xff] }
 0x1b0   :  { %v2641_v39 = vld [vmem:[%s3970_s9 + $0x40] sm:$0xff] }
 0x1b1   :  { %v893_v50 = vpack.c.bf16 %v871_v30, %v871_v30  ;;  %v894_v43 = vpack.c.bf16 %v878_v6, %v878_v6  ;;  %v1279_v37 = vpack.c.b16 %v1251_v17, %v1249_v1 }
 0x1b3   :  { %v957_v55 = vunpack.c.l.b16 %v893_v50  ;;  %v958_v53 = vunpack.c.l.b16 %v894_v43 }
 0x1b5   :  { %v972_v20 = vsel %vm971_vm6, %v957_v55, %v970_v56  ;;  %v979_v25 = vsel %vm971_vm6, %v958_v53, %v978_v13  ;;  %v3860_v53 = vperm.slane %v1748_v63, 1 }
 0x1b6   :  { %v980_v42 = vpack.c.b16 %v972_v20, %v972_v20  ;;  %v981_v28 = vpack.c.b16 %v979_v25, %v979_v25 }
 0x1b8   :  { %1152 = vmatmul.bf16.vlgmr.msrb.gmra.mxu0 %v980_v42  ;;  %1165 = vmatmul.bf16.vlgmr.msrb.gmra.mxu1 %v981_v28 }
 0x1b9   :  { %1178 = vmatmul.bf16.vlgmr.msra.gmra.mxu2 %v980_v42  ;;  %1191 = vmatmul.bf16.vlgmr.msra.gmra.mxu3 %v981_v28 }
 0x1ba   :  { %1966 = vmatpush.bf16.msra.mxu2 %v2640_v32  ;;  %2015 = vmatpush.bf16.msra.mxu3 %v2648_v18 }
 0x1be   :  { %1967 = vmatpush.bf16.msra.mxu2 %v2639_v22  ;;  %2016 = vmatpush.bf16.msra.mxu3 %v2647_v11 }
 0x1c2   :  { %1968 = vmatpush.bf16.msra.mxu2 %v2638_v48  ;;  %2017 = vmatpush.bf16.msra.mxu3 %v2646_v62 }
 0x1c6   :  { %1969 = vmatpush.bf16.msra.mxu2 %v2637_v45  ;;  %2018 = vmatpush.bf16.msra.mxu3 %v2645_v61 }
 0x1c8   :  { %1574 = vmatmul.bf16.vlgmr.msra.gmra.mxu0 %v1276_v2  ;;  %1623 = vmatmul.bf16.vlgmr.msra.gmra.mxu1 %v1277_v4 }
 0x1c9   :  { %1476 = vmatmul.bf16.vlgmr.msrb.gmra.mxu2 %v1276_v2  ;;  %1525 = vmatmul.bf16.vlgmr.msrb.gmra.mxu3 %v1277_v4 }
 0x1d8   :  { %1579 = vmatmul.bf16.gmra.mxu0 %v1278_v24  ;;  %1628 = vmatmul.bf16.gmra.mxu1 %v1279_v37 }
 0x1d9   :  { %1481 = vmatmul.bf16.gmra.mxu2 %v1278_v24  ;;  %1530 = vmatmul.bf16.gmra.mxu3 %v1279_v37 }
 0x1e8   :  { %1584 = vmatmul.bf16.gmra.mxu0 %v3195_v10  ;;  %1633 = vmatmul.bf16.gmra.mxu1 %v3197_v12 }
 0x1e9   :  { %1486 = vmatmul.bf16.gmra.mxu2 %v3195_v10  ;;  %1535 = vmatmul.bf16.gmra.mxu3 %v3197_v12  ;;  %v2636_v10 = vld [vmem:[%s3970_s9 + $0x18] sm:$0xff] }
 0x1ea   :  { %v2644_v12 = vld [vmem:[%s3970_s9 + $0x58] sm:$0xff]  ;;  %1970 = vmatpush.bf16.msra.mxu2 %v2636_v10 }
 0x1eb   :  { %2019 = vmatpush.bf16.msra.mxu3 %v2644_v12 }
 0x1f8   :  { %1589 = vmatmul.bf16.gmra.mxu0 %v3243_v19  ;;  %1638 = vmatmul.bf16.gmra.mxu1 %v3245_v23 }
 0x1f9   :  { %1491 = vmatmul.bf16.gmra.mxu2 %v3243_v19  ;;  %1540 = vmatmul.bf16.gmra.mxu3 %v3245_v23  ;;  %v2635_v19 = vld [vmem:[%s3970_s9 + $0x10] sm:$0xff] }
 0x1fa   :  { %v2643_v23 = vld [vmem:[%s3970_s9 + $0x50] sm:$0xff]  ;;  %1971 = vmatpush.bf16.msra.mxu2 %v2635_v19 }
 0x1fb   :  { %2020 = vmatpush.bf16.msra.mxu3 %v2643_v23 }
 0x208   :  { %1594 = vmatmul.bf16.gmra.mxu0 %v3299_v34  ;;  %1643 = vmatmul.bf16.gmra.mxu1 %v3301_v36 }
 0x209   :  { %1496 = vmatmul.bf16.gmra.mxu2 %v3299_v34  ;;  %1545 = vmatmul.bf16.gmra.mxu3 %v3301_v36  ;;  %v2634_v34 = vld [vmem:[%s3970_s9 + $0x8] sm:$0xff] }
 0x20a   :  { %v2642_v36 = vld [vmem:[%s3970_s9 + $0x48] sm:$0xff]  ;;  %1972 = vmatpush.bf16.msra.mxu2 %v2634_v34 }
 0x20b   :  { %2021 = vmatpush.bf16.msra.mxu3 %v2642_v36 }
 0x20e   :  { %1973 = vmatpush.bf16.msra.mxu2 %v2633_v44 }
 0x20f   :  { %2022 = vmatpush.bf16.msra.mxu3 %v2641_v39 }
 0x218   :  { %1599 = vmatmul.bf16.gmra.mxu0 %v3376_v51  ;;  %1648 = vmatmul.bf16.gmra.mxu1 %v3381_v54 }
 0x219   :  { %1501 = vmatmul.bf16.gmra.mxu2 %v3376_v51  ;;  %1550 = vmatmul.bf16.gmra.mxu3 %v3381_v54 }
 0x228   :  { %1604 = vmatmul.bf16.gmra.mxu0 %v3527_v31  ;;  %1653 = vmatmul.bf16.gmra.mxu1 %v3546_v38 }
 0x229   :  { %1506 = vmatmul.bf16.gmra.mxu2 %v3527_v31  ;;  %1555 = vmatmul.bf16.gmra.mxu3 %v3546_v38 }
 0x235   :  { %v1153_v51 = vpop.f32.mrf.mxu0  ;;  %v1166_v54 = vpop.f32.mrf.mxu1 }
 0x236   :  { %v3839_v5 = vadd.f32 %v1166_v54, %v1153_v51 }
 0x238   :  { %1609 = vmatmul.bf16.gmra.mxu0 %v3734_v57  ;;  %1658 = vmatmul.bf16.gmra.mxu1 %v3736_v33 }
 0x239   :  { %1511 = vmatmul.bf16.gmra.mxu2 %v3734_v57  ;;  %1560 = vmatmul.bf16.gmra.mxu3 %v3736_v33 }
 0x23c   :  { %v1179_v31 = vpop.f32.mrf.mxu2  ;;  %v1192_v38 = vpop.f32.mrf.mxu3 }
 0x23d   :  { %v1193_v16 = vadd.f32 %v1192_v38, %v1179_v31  ;;  %v1155_v8 = vpop.f32.mrf.mxu0  ;;  %v1168_v41 = vpop.f32.mrf.mxu1 }
 0x23f   :  { %v3837_v30 = vrot.slane %v1193_v16, 7 }
 0x241   :  { %v3844_v6 = vsel %vm967_vm4, %v3839_v5, %v3837_v30  ;;  %v3849_v33 = vsel %vm969_vm5, %v3839_v5, %v3837_v30  ;;  %v3853_v50 = vsel %vm1681_vm7, %v3837_v30, %v3839_v5  ;;  %v1668_v43 = vsel %vm1667_vm8, %v3839_v5, %v3837_v30 }
 0x242   :  { %v1685_v55 = vperm.slane %v1668_v43, 1  ;;  %v1684_v18 = vperm.slane %v1668_v43, 0  ;;  %v1669_v60 = vsel %vm959_vm0, %v3839_v5, %v3837_v30 }
 0x243   :  { %v1670_v24 = vrot.slane %v1669_v60, 1 }
 0x244   :  { %v1181_v57 = vpop.f32.mrf.mxu2  ;;  %v1194_v40 = vpop.f32.mrf.mxu3 }
 0x245   :  { %v1575_v0 = vpop.f32.mrf.mxu0  ;;  %v1624_v46 = vpop.f32.mrf.mxu1  ;;  %v1687_v61 = vperm.slane %v1670_v24, 1  ;;  %v1686_v16 = vperm.slane %v1670_v24, 0  ;;  %v1671_v57 = vsel %vm961_vm1, %v3839_v5, %v3837_v30 }
 0x246   :  { %v1625_v26 = vadd.f32 %v1624_v46, %v1575_v0 }
 0x248   :  { %v1717_v14 = vadd.f32 %v1685_v55, %v1625_v26 }
 0x24a   :  { %v1755_v28 = vadd.f32 %v3860_v53, %v1717_v14  ;;  %v1672_v14 = vrot.slane %v1671_v57, 2 }
 0x24c   :  { %v1477_v52 = vpop.f32.mrf.mxu2  ;;  %v1526_v56 = vpop.f32.mrf.mxu3  ;;  %v1787_v2 = vmax.f32 %v1755_v28, 0.0 }
 0x24d   :  { %v1577_v13 = vpop.f32.mrf.mxu0  ;;  %v1626_v20 = vpop.f32.mrf.mxu1  ;;  %v1527_v42 = vadd.f32 %v1526_v56, %v1477_v52 }
 0x24e   :  { %v1627_v25 = vadd.f32 %v1626_v20, %v1577_v13 }
 0x24f   :  { %v1716_v58 = vadd.f32 %v1684_v18, %v1527_v42  ;;  %v1689_v42 = vperm.slane %v1672_v14, 1 }
 0x250   :  { %v1719_v32 = vadd.f32 %v1685_v55, %v1627_v25 }
 0x251   :  { %v1754_v37 = vadd.f32 %v3864_v49, %v1716_v58 }
 0x252   :  { %v1757_v7 = vadd.f32 %v3860_v53, %v1719_v32 }
 0x253   :  { %v1786_v10 = vmax.f32 %v1754_v37, 0.0  ;;  %v1673_v37 = vsel %vm963_vm2, %v3839_v5, %v3837_v30 }
 0x254   :  { %v1789_v4 = vmax.f32 %v1757_v7, 0.0  ;;  %v1479_v22 = vpop.f32.mrf.mxu2  ;;  %v1528_v11 = vpop.f32.mrf.mxu3 }
 0x255   :  { %v1529_v29 = vadd.f32 %v1528_v11, %v1479_v22  ;;  %v1580_v17 = vpop.f32.mrf.mxu0  ;;  %v1629_v59 = vpop.f32.mrf.mxu1 }
 0x256   :  { %v1819_v1 = vpack.c.bf16 %v1789_v4, %v1787_v2  ;;  %v1630_v62 = vadd.f32 %v1629_v59, %v1580_v17  ;;  %v1688_v59 = vperm.slane %v1672_v14, 0 }
 0x257   :  { %v1718_v48 = vadd.f32 %v1684_v18, %v1529_v29 }
 0x258   :  { %2023 = vmatmul.bf16.vlgmr.msra.gmra.mxu3 %v1819_v1  ;;  %v1721_v19 = vadd.f32 %v1687_v61, %v1630_v62 }
 0x259   :  { %v1756_v45 = vadd.f32 %v3864_v49, %v1718_v48 }
 0x25a   :  { %v1759_v38 = vadd.f32 %v3860_v53, %v1721_v19 }
 0x25b   :  { %v1788_v12 = vmax.f32 %v1756_v45, 0.0 }
 0x25c   :  { %v1482_v23 = vpop.f32.mrf.mxu2  ;;  %v1531_v34 = vpop.f32.mrf.mxu3  ;;  %v1791_v46 = vmax.f32 %v1759_v38, 0.0 }
 0x25d   :  { %v1582_v36 = vpop.f32.mrf.mxu0  ;;  %v1631_v51 = vpop.f32.mrf.mxu1  ;;  %v1818_v54 = vpack.c.bf16 %v1788_v12, %v1786_v10  ;;  %v1532_v39 = vadd.f32 %v1531_v34, %v1482_v23  ;;  %v1674_v23 = vrot.slane %v1673_v37, 3 }
 0x25e   :  { %v1632_v44 = vadd.f32 %v1631_v51, %v1582_v36 }
 0x25f   :  { %1974 = vmatmul.bf16.vlgmr.msra.gmra.mxu2 %v1818_v54  ;;  %v1720_v41 = vadd.f32 %v1686_v16, %v1532_v39  ;;  %v1691_v39 = vperm.slane %v1674_v23, 1 }
 0x260   :  { %v1723_v31 = vadd.f32 %v1687_v61, %v1632_v44 }
 0x261   :  { %v1758_v13 = vadd.f32 %v3864_v49, %v1720_v41 }
 0x262   :  { %v1761_v8 = vadd.f32 %v3860_v53, %v1723_v31 }
 0x263   :  { %v1790_v28 = vmax.f32 %v1758_v13, 0.0 }
 0x264   :  { %v1484_v40 = vpop.f32.mrf.mxu2  ;;  %v1533_v0 = vpop.f32.mrf.mxu3  ;;  %v1793_v43 = vmax.f32 %v1761_v8, 0.0 }
 0x265   :  { %v1534_v26 = vadd.f32 %v1533_v0, %v1484_v40  ;;  %v1585_v63 = vpop.f32.mrf.mxu0  ;;  %v1634_v55 = vpop.f32.mrf.mxu1 }
 0x266   :  { %v1821_v52 = vpack.c.bf16 %v1793_v43, %v1791_v46  ;;  %v1635_v20 = vadd.f32 %v1634_v55, %v1585_v63  ;;  %v1690_v55 = vperm.slane %v1674_v23, 0 }
 0x267   :  { %v1722_v56 = vadd.f32 %v1686_v16, %v1534_v26 }
 0x268   :  { %2028 = vmatmul.bf16.gmra.mxu3 %v1821_v52  ;;  %v1725_v18 = vadd.f32 %v1689_v42, %v1635_v20 }
 0x269   :  { %v1760_v25 = vadd.f32 %v3864_v49, %v1722_v56  ;;  %v1675_v56 = vsel %vm965_vm3, %v3839_v5, %v3837_v30 }
 0x26a   :  { %v1763_v17 = vadd.f32 %v3860_v53, %v1725_v18 }
 0x26b   :  { %v1792_v32 = vmax.f32 %v1760_v25, 0.0 }
 0x26c   :  { %v1487_v7 = vpop.f32.mrf.mxu2  ;;  %v1536_v58 = vpop.f32.mrf.mxu3  ;;  %v1795_v45 = vmax.f32 %v1763_v17, 0.0 }
 0x26d   :  { %v1587_v60 = vpop.f32.mrf.mxu0  ;;  %v1636_v2 = vpop.f32.mrf.mxu1  ;;  %v1820_v4 = vpack.c.bf16 %v1792_v32, %v1790_v28  ;;  %v1537_v11 = vadd.f32 %v1536_v58, %v1487_v7  ;;  %v1676_v7 = vrot.slane %v1675_v56, 4 }
 0x26e   :  { %v1637_v22 = vadd.f32 %v1636_v2, %v1587_v60 }
 0x26f   :  { %1979 = vmatmul.bf16.gmra.mxu2 %v1820_v4  ;;  %v1724_v24 = vadd.f32 %v1688_v59, %v1537_v11  ;;  %v1693_v11 = vperm.slane %v1676_v7, 1 }
 0x270   :  { %v1727_v29 = vadd.f32 %v1689_v42, %v1637_v22 }
 0x271   :  { %v1762_v51 = vadd.f32 %v3864_v49, %v1724_v24 }
 0x272   :  { %v1765_v1 = vadd.f32 %v3860_v53, %v1727_v29 }
 0x273   :  { %v1794_v31 = vmax.f32 %v1762_v51, 0.0 }
 0x274   :  { %v1489_v48 = vpop.f32.mrf.mxu2  ;;  %v1538_v62 = vpop.f32.mrf.mxu3  ;;  %v1797_v61 = vmax.f32 %v1765_v1, 0.0 }
 0x275   :  { %v1539_v10 = vadd.f32 %v1538_v62, %v1489_v48  ;;  %v1590_v12 = vpop.f32.mrf.mxu0  ;;  %v1639_v19 = vpop.f32.mrf.mxu1 }
 0x276   :  { %v1823_v34 = vpack.c.bf16 %v1797_v61, %v1795_v45  ;;  %v1640_v54 = vadd.f32 %v1639_v19, %v1590_v12 }
 0x277   :  { %v1726_v36 = vadd.f32 %v1688_v59, %v1539_v10  ;;  %v1692_v10 = vperm.slane %v1676_v7, 0 }
 0x278   :  { %2033 = vmatmul.bf16.gmra.mxu3 %v1823_v34  ;;  %v1729_v16 = vadd.f32 %v1691_v39, %v1640_v54 }
 0x279   :  { %v1764_v44 = vadd.f32 %v3864_v49, %v1726_v36 }
 0x27a   :  { %v1767_v26 = vadd.f32 %v3860_v53, %v1729_v16 }
 0x27b   :  { %v1796_v38 = vmax.f32 %v1764_v44, 0.0 }
 0x27c   :  { %v1492_v8 = vpop.f32.mrf.mxu2  ;;  %v1541_v41 = vpop.f32.mrf.mxu3  ;;  %v1799_v13 = vmax.f32 %v1767_v26, 0.0 }
 0x27d   :  { %v1592_v57 = vpop.f32.mrf.mxu0  ;;  %v1641_v40 = vpop.f32.mrf.mxu1  ;;  %v1822_v0 = vpack.c.bf16 %v1796_v38, %v1794_v31  ;;  %v1542_v43 = vadd.f32 %v1541_v41, %v1492_v8  ;;  %v1678_v31 = vrot.slane %v3844_v6, 5 }
 0x27e   :  { %v1642_v46 = vadd.f32 %v1641_v40, %v1592_v57 }
 0x27f   :  { %1984 = vmatmul.bf16.gmra.mxu2 %v1822_v0  ;;  %v1728_v52 = vadd.f32 %v1690_v55, %v1542_v43  ;;  %v1695_v40 = vperm.slane %v1678_v31, 1 }
 0x280   :  { %v1731_v63 = vadd.f32 %v1691_v39, %v1642_v46 }
 0x281   :  { %v1766_v60 = vadd.f32 %v3864_v49, %v1728_v52 }
 0x282   :  { %v1769_v14 = vadd.f32 %v3860_v53, %v1731_v63 }
 0x283   :  { %v1798_v29 = vmax.f32 %v1766_v60, 0.0 }
 0x284   :  { %v1801_v20 = vmax.f32 %v1769_v14, 0.0  ;;  %v1494_v25 = vpop.f32.mrf.mxu2  ;;  %v1543_v42 = vpop.f32.mrf.mxu3 }
 0x285   :  { %v1544_v28 = vadd.f32 %v1543_v42, %v1494_v25  ;;  %v1595_v32 = vpop.f32.mrf.mxu0  ;;  %v1644_v18 = vpop.f32.mrf.mxu1  ;;  %v1694_v25 = vperm.slane %v1678_v31, 0 }
 0x286   :  { %v1825_v58 = vpack.c.bf16 %v1801_v20, %v1799_v13  ;;  %v1645_v4 = vadd.f32 %v1644_v18, %v1595_v32 }
 0x287   :  { %v1730_v2 = vadd.f32 %v1690_v55, %v1544_v28 }
 0x288   :  { %2038 = vmatmul.bf16.gmra.mxu3 %v1825_v58  ;;  %v1733_v30 = vadd.f32 %v1693_v11, %v1645_v4 }
 0x289   :  { %v1768_v22 = vadd.f32 %v3864_v49, %v1730_v2 }
 0x28a   :  { %v1771_v45 = vadd.f32 %v3860_v53, %v1733_v30 }
 0x28b   :  { %v1800_v17 = vmax.f32 %v1768_v22, 0.0  ;;  %v1680_v22 = vrot.slane %v3849_v33, 6 }
 0x28c   :  { %v1497_v5 = vpop.f32.mrf.mxu2  ;;  %v1546_v59 = vpop.f32.mrf.mxu3  ;;  %v1803_v23 = vmax.f32 %v1771_v45, 0.0 }
 0x28d   :  { %v1597_v1 = vpop.f32.mrf.mxu0  ;;  %v1646_v24 = vpop.f32.mrf.mxu1  ;;  %v1824_v37 = vpack.c.bf16 %v1800_v17, %v1798_v29  ;;  %v1547_v62 = vadd.f32 %v1546_v59, %v1497_v5  ;;  %v1697_v59 = vperm.slane %v1680_v22, 1 }
 0x28e   :  { %v1647_v48 = vadd.f32 %v1646_v24, %v1597_v1 }
 0x28f   :  { %1989 = vmatmul.bf16.gmra.mxu2 %v1824_v37  ;;  %v1732_v19 = vadd.f32 %v1692_v10, %v1547_v62 }
 0x290   :  { %v1735_v61 = vadd.f32 %v1693_v11, %v1647_v48 }
 0x291   :  { %v1770_v16 = vadd.f32 %v3864_v49, %v1732_v19 }
 0x292   :  { %v1773_v12 = vadd.f32 %v3860_v53, %v1735_v61 }
 0x293   :  { %v1802_v0 = vmax.f32 %v1770_v16, 0.0 }
 0x294   :  { %v1805_v34 = vmax.f32 %v1773_v12, 0.0  ;;  %v1499_v36 = vpop.f32.mrf.mxu2  ;;  %v1548_v51 = vpop.f32.mrf.mxu3 }
 0x295   :  { %v1549_v54 = vadd.f32 %v1548_v51, %v1499_v36  ;;  %v1600_v44 = vpop.f32.mrf.mxu0  ;;  %v1649_v39 = vpop.f32.mrf.mxu1 }
 0x296   :  { %v1827_v38 = vpack.c.bf16 %v1805_v34, %v1803_v23  ;;  %v1650_v41 = vadd.f32 %v1649_v39, %v1600_v44  ;;  %v1696_v34 = vperm.slane %v1680_v22, 0 }
 0x297   :  { %v1734_v8 = vadd.f32 %v1692_v10, %v1549_v54 }
 0x298   :  { %2043 = vmatmul.bf16.gmra.mxu3 %v1827_v38  ;;  %v1737_v43 = vadd.f32 %v1695_v40, %v1650_v41  ;;  %v1683_v41 = vrot.slane %v3853_v50, 7 }
 0x299   :  { %v1772_v57 = vadd.f32 %v3864_v49, %v1734_v8 }
 0x29a   :  { %v1775_v6 = vadd.f32 %v3860_v53, %v1737_v43 }
 0x29b   :  { %v1804_v46 = vmax.f32 %v1772_v57, 0.0 }
 0x29c   :  { %v1502_v26 = vpop.f32.mrf.mxu2  ;;  %v1551_v63 = vpop.f32.mrf.mxu3  ;;  %v1807_v32 = vmax.f32 %v1775_v6, 0.0 }
 0x29d   :  { %v1602_v55 = vpop.f32.mrf.mxu0  ;;  %v1651_v14 = vpop.f32.mrf.mxu1  ;;  %v1826_v52 = vpack.c.bf16 %v1804_v46, %v1802_v0  ;;  %v1552_v13 = vadd.f32 %v1551_v63, %v1502_v26  ;;  %v1699_v26 = vperm.slane %v1683_v41, 1 }
 0x29e   :  { %v1652_v56 = vadd.f32 %v1651_v14, %v1602_v55 }
 0x29f   :  { %1994 = vmatmul.bf16.gmra.mxu2 %v1826_v52  ;;  %v1736_v28 = vadd.f32 %v1694_v25, %v1552_v13 }
 0x2a0   :  { %v1739_v20 = vadd.f32 %v1695_v40, %v1652_v56 }
 0x2a1   :  { %v1774_v29 = vadd.f32 %v3864_v49, %v1736_v28 }
 0x2a2   :  { %v1777_v42 = vadd.f32 %v3860_v53, %v1739_v20 }
 0x2a3   :  { %v1806_v1 = vmax.f32 %v1774_v29, 0.0 }
 0x2a4   :  { %v1809_v18 = vmax.f32 %v1777_v42, 0.0  ;;  %v1504_v7 = vpop.f32.mrf.mxu2  ;;  %v1553_v58 = vpop.f32.mrf.mxu3 }
 0x2a5   :  { %v1554_v60 = vadd.f32 %v1553_v58, %v1504_v7  ;;  %v1605_v2 = vpop.f32.mrf.mxu0  ;;  %v1654_v4 = vpop.f32.mrf.mxu1 }
 0x2a6   :  { %v1829_v11 = vpack.c.bf16 %v1809_v18, %v1807_v32  ;;  %v1655_v30 = vadd.f32 %v1654_v4, %v1605_v2  ;;  %v1698_v32 = vperm.slane %v1683_v41, 0 }
 0x2a7   :  { %v1738_v17 = vadd.f32 %v1694_v25, %v1554_v60 }
 0x2a8   :  { %2048 = vmatmul.bf16.gmra.mxu3 %v1829_v11  ;;  %v1741_v37 = vadd.f32 %v1697_v59, %v1655_v30 }
 0x2a9   :  { %v1776_v5 = vadd.f32 %v3864_v49, %v1738_v17 }
 0x2aa   :  { %v1779_v33 = vadd.f32 %v3860_v53, %v1741_v37 }
 0x2ab   :  { %v1808_v24 = vmax.f32 %v1776_v5, 0.0 }
 0x2ac   :  { %v1507_v48 = vpop.f32.mrf.mxu2  ;;  %v1556_v62 = vpop.f32.mrf.mxu3  ;;  %v1811_v54 = vmax.f32 %v1779_v33, 0.0 }
 0x2ad   :  { %v1607_v45 = vpop.f32.mrf.mxu0  ;;  %v1656_v61 = vpop.f32.mrf.mxu1  ;;  %v1828_v10 = vpack.c.bf16 %v1808_v24, %v1806_v1  ;;  %v1557_v19 = vadd.f32 %v1556_v62, %v1507_v48 }
 0x2ae   :  { %v1657_v12 = vadd.f32 %v1656_v61, %v1607_v45 }
 0x2af   :  { %1999 = vmatmul.bf16.gmra.mxu2 %v1828_v10  ;;  %v1740_v51 = vadd.f32 %v1696_v34, %v1557_v19 }
 0x2b0   :  { %v1743_v23 = vadd.f32 %v1697_v59, %v1657_v12 }
 0x2b1   :  { %v1778_v40 = vadd.f32 %v3864_v49, %v1740_v51 }
 0x2b2   :  { %v1781_v36 = vadd.f32 %v3860_v53, %v1743_v23 }
 0x2b3   :  { %v1810_v63 = vmax.f32 %v1778_v40, 0.0 }
 0x2b4   :  { %v1813_v44 = vmax.f32 %v1781_v36, 0.0  ;;  %v1509_v39 = vpop.f32.mrf.mxu2  ;;  %v1558_v31 = vpop.f32.mrf.mxu3 }
 0x2b5   :  { %v1559_v38 = vadd.f32 %v1558_v31, %v1509_v39  ;;  %v1610_v16 = vpop.f32.mrf.mxu0  ;;  %v1659_v8 = vpop.f32.mrf.mxu1 }
 0x2b6   :  { %v1831_v57 = vpack.c.bf16 %v1813_v44, %v1811_v54  ;;  %v1660_v46 = vadd.f32 %v1659_v8, %v1610_v16 }
 0x2b7   :  { %v1742_v0 = vadd.f32 %v1696_v34, %v1559_v38 }
 0x2b8   :  { %2053 = vmatmul.bf16.gmra.mxu3 %v1831_v57  ;;  %v1745_v14 = vadd.f32 %v1699_v26, %v1660_v46 }
 0x2b9   :  { %v1780_v43 = vadd.f32 %v3864_v49, %v1742_v0 }
 0x2ba   :  { %v1783_v50 = vadd.f32 %v3860_v53, %v1745_v14 }
 0x2bb   :  { %v1812_v55 = vmax.f32 %v1780_v43, 0.0 }
 0x2bc   :  { %v1512_v52 = vpop.f32.mrf.mxu2  ;;  %v1561_v56 = vpop.f32.mrf.mxu3  ;;  %v1815_v58 = vmax.f32 %v1783_v50, 0.0 }
 0x2bd   :  { %v1612_v13 = vpop.f32.mrf.mxu0  ;;  %v1661_v6 = vpop.f32.mrf.mxu1  ;;  %v1830_v20 = vpack.c.bf16 %v1812_v55, %v1810_v63  ;;  %v1562_v42 = vadd.f32 %v1561_v56, %v1512_v52 }
 0x2be   :  { %v1662_v25 = vadd.f32 %v1661_v6, %v1612_v13 }
 0x2bf   :  { %2004 = vmatmul.bf16.gmra.mxu2 %v1830_v20  ;;  %v1744_v7 = vadd.f32 %v1698_v32, %v1562_v42 }
 0x2c0   :  { %v1747_v28 = vadd.f32 %v1699_v26, %v1662_v25 }
 0x2c1   :  { %v1782_v29 = vadd.f32 %v3864_v49, %v1744_v7 }
 0x2c2   :  { %v1785_v18 = vadd.f32 %v3860_v53, %v1747_v28  ;;  %v3914_v53 = vld [vmem:[%s3971_s10] ss:$0 sm:$0xff]  ;;  %s2726_s10 = smov [#allocation2]  }
 0x2c3   :  { %v1814_v5 = vmax.f32 %v1782_v29, 0.0  ;;  %s2158_s15 = sshll.u32 %s2726_s10, 4  ;;  %s2159_s15 = int_to_ptr.vmem [resolvable:$true] %s2158_s15 }
 0x2c4   :  { %v1817_v60 = vmax.f32 %v1785_v18, 0.0  ;;  %v1514_v2 = vpop.f32.mrf.mxu2  ;;  %v1563_v4 = vpop.f32.mrf.mxu3 }
 0x2c5   :  { %v1564_v22 = vadd.f32 %v1563_v4, %v1514_v2 }
 0x2c6   :  { %v1833_v11 = vpack.c.bf16 %v1817_v60, %v1815_v58 }
 0x2c7   :  { %v1746_v17 = vadd.f32 %v1698_v32, %v1564_v22 }
 0x2c8   :  { %2058 = vmatmul.bf16.gmra.mxu3 %v1833_v11 }
 0x2c9   :  { %v1784_v30 = vadd.f32 %v3864_v49, %v1746_v17 }
 0x2cb   :  { %v1816_v59 = vmax.f32 %v1784_v30, 0.0 }
 0x2cd   :  { %v1832_v1 = vpack.c.bf16 %v1816_v59, %v1814_v5 }
 0x2cf   :  { %2009 = vmatmul.bf16.gmra.mxu2 %v1832_v1 }
 0x2db   :  { %v2024_v24 = vpop.f32.mrf.mxu3 }
 0x2e2   :  { %v1975_v37 = vpop.f32.mrf.mxu2 }
 0x2e3   :  { %v1976_v48 = vadd.f32 %v3914_v53, %v1975_v37  ;;  %v2026_v62 = vpop.f32.mrf.mxu3 }
 0x2e5   :  { %v2025_v45 = vadd.f32 %v2024_v24, %v1976_v48 }
 0x2e7   :  { %v2064_v19 = vmul.f32 %v2025_v45, %v3126_v3 }
 0x2ea   :  { %v1977_v61 = vpop.f32.mrf.mxu2 }
 0x2eb   :  { %v1978_v10 = vadd.f32 %v3914_v53, %v1977_v61  ;;  %v2029_v12 = vpop.f32.mrf.mxu3 }
 0x2ed   :  { %v2027_v49 = vadd.f32 %v2026_v62, %v1978_v10 }
 0x2ef   :  { %v2065_v33 = vmul.f32 %v2027_v49, %v3139_v21 }
 0x2f1   :  { %v2080_v23 = vmax.f32 %v2064_v19, %v2065_v33 }
 0x2f2   :  { %v1980_v34 = vpop.f32.mrf.mxu2 }
 0x2f3   :  { %v1981_v36 = vadd.f32 %v3914_v53, %v1980_v34  ;;  %v2031_v51 = vpop.f32.mrf.mxu3  ;;  %v2081_v44 = vrot.slane %v2080_v23, 4 }
 0x2f5   :  { %v2030_v54 = vadd.f32 %v2029_v12, %v1981_v36  ;;  %v2082_v16 = vmax.f32 %v2080_v23, %v2081_v44 }
 0x2f7   :  { %v2066_v41 = vmul.f32 %v2030_v54, %v3151_v35  ;;  %v2083_v3 = vrot.slane %v2082_v16, 2 }
 0x2f9   :  { %v2084_v26 = vmax.f32 %v2082_v16, %v2083_v3 }
 0x2fa   :  { %v1982_v39 = vpop.f32.mrf.mxu2 }
 0x2fb   :  { %v1983_v31 = vadd.f32 %v3914_v53, %v1982_v39  ;;  %v2034_v38 = vpop.f32.mrf.mxu3  ;;  %v2085_v52 = vrot.slane %v2084_v26, 1 }
 0x2fd   :  { %v2032_v8 = vadd.f32 %v2031_v51, %v1983_v31  ;;  %v2086_v25 = vmax.f32 %v2084_v26, %v2085_v52  ;;  %v3996_v52 = vld [vmem:[#allocation9_spill] sm:$0xff] }
 0x2ff   :  { %v2067_v57 = vmul.f32 %v2032_v8, %v3159_v47 }
 0x301   :  { %v2087_v40 = vmax.f32 %v2066_v41, %v2067_v57 }
 0x302   :  { %v1985_v21 = vpop.f32.mrf.mxu2 }
 0x303   :  { %v2088_v0 = vrot.slane %v2087_v40, 4  ;;  %v1986_v46 = vadd.f32 %v3914_v53, %v1985_v21  ;;  %v2036_v43 = vpop.f32.mrf.mxu3 }
 0x305   :  { %v2089_v63 = vmax.f32 %v2087_v40, %v2088_v0  ;;  %v2035_v55 = vadd.f32 %v2034_v38, %v1986_v46 }
 0x307   :  { %v2090_v14 = vrot.slane %v2089_v63, 2  ;;  %v2068_v28 = vmul.f32 %v2035_v55, %v3183_v9 }
 0x309   :  { %v2091_v56 = vmax.f32 %v2089_v63, %v2090_v14  ;;  %v3995_v63 = vld [vmem:[#allocation7_spill] sm:$0xff] }
 0x30a   :  { %v1987_v13 = vpop.f32.mrf.mxu2 }
 0x30b   :  { %v2092_v6 = vrot.slane %v2091_v56, 1  ;;  %v1988_v20 = vadd.f32 %v3914_v53, %v1987_v13  ;;  %v2039_v35 = vpop.f32.mrf.mxu3 }
 0x30d   :  { %v2093_v47 = vmax.f32 %v2091_v56, %v2092_v6  ;;  %v2037_v42 = vadd.f32 %v2036_v43, %v1988_v20  ;;  %v3997_v6 = vld [vmem:[#allocation6_spill] sm:$0xff] }
 0x30f   :  { %v2144_v50 = vsel %vm959_vm0, %v2093_v47, %v2086_v25  ;;  %v2069_v32 = vmul.f32 %v2037_v42, %v3189_v15  ;;  %v3994_v15 = vld [vmem:[#allocation5_spill] sm:$0xff]  ;;  %v3999_v47 = vld [vmem:[#allocation11_spill] sm:$0xff] }
 0x311   :  { %v2094_v18 = vmax.f32 %v2068_v28, %v2069_v32  ;;  %v4000_v28 = vld [vmem:[#allocation10_spill] sm:$0xff] }
 0x312   :  { %v1990_v7 = vpop.f32.mrf.mxu2 }
 0x313   :  { %v2095_v58 = vrot.slane %v2094_v18, 4  ;;  %v1991_v60 = vadd.f32 %v3914_v53, %v1990_v7  ;;  %v2041_v2 = vpop.f32.mrf.mxu3 }
 0x315   :  { %v2096_v4 = vmax.f32 %v2094_v18, %v2095_v58  ;;  %v2040_v22 = vadd.f32 %v2039_v35, %v1991_v60  ;;  %v3998_v35 = vld [vmem:[#allocation8_spill] sm:$0xff] }
 0x317   :  { %v2097_v11 = vrot.slane %v2096_v4, 2  ;;  %v2070_v9 = vmul.f32 %v2040_v22, %v3213_v27 }
 0x319   :  { %v2098_v29 = vmax.f32 %v2096_v4, %v2097_v11 }
 0x31a   :  { %v1992_v17 = vpop.f32.mrf.mxu2 }
 0x31b   :  { %v2099_v30 = vrot.slane %v2098_v29, 1  ;;  %v1993_v5 = vadd.f32 %v3914_v53, %v1992_v17  ;;  %v2044_v59 = vpop.f32.mrf.mxu3 }
 0x31d   :  { %v2100_v1 = vmax.f32 %v2098_v29, %v2099_v30  ;;  %v2042_v24 = vadd.f32 %v2041_v2, %v1993_v5 }
 0x31f   :  { %v2071_v37 = vmul.f32 %v2042_v24, %v3994_v15  ;;  %v2145_v48 = vsel %vm961_vm1, %v2100_v1, %v2144_v50 }
 0x321   :  { %v2101_v62 = vmax.f32 %v2070_v9, %v2071_v37 }
 0x322   :  { %v1995_v45 = vpop.f32.mrf.mxu2 }
 0x323   :  { %v2102_v61 = vrot.slane %v2101_v62, 4  ;;  %v2046_v10 = vpop.f32.mrf.mxu3  ;;  %v1996_v8 = vadd.f32 %v3914_v53, %v1995_v45 }
 0x325   :  { %v2103_v12 = vmax.f32 %v2101_v62, %v2102_v61  ;;  %v2045_v0 = vadd.f32 %v2044_v59, %v1996_v8  ;;  %v4001_v62 = vld [vmem:[#allocation12_spill] sm:$0xff]  ;;  %v4002_v61 = vld [vmem:[#allocation13_spill] sm:$0xff] }
 0x327   :  { %v2104_v49 = vrot.slane %v2103_v12, 2  ;;  %v2072_v20 = vmul.f32 %v2045_v0, %v3997_v6 }
 0x329   :  { %v2105_v19 = vmax.f32 %v2103_v12, %v2104_v49 }
 0x32a   :  { %v1997_v33 = vpop.f32.mrf.mxu2 }
 0x32b   :  { %v2106_v23 = vrot.slane %v2105_v19, 1  ;;  %v2049_v34 = vpop.f32.mrf.mxu3  ;;  %v1998_v38 = vadd.f32 %v3914_v53, %v1997_v33 }
 0x32d   :  { %v2107_v36 = vmax.f32 %v2105_v19, %v2106_v23  ;;  %v2047_v57 = vadd.f32 %v2046_v10, %v1998_v38 }
 0x32f   :  { %v3935_v51 = vsel %vm963_vm2, %v2107_v36, %v2145_v48  ;;  %v2073_v55 = vmul.f32 %v2047_v57, %v3995_v63 }
 0x331   :  { %v2108_v50 = vmax.f32 %v2072_v20, %v2073_v55 }
 0x332   :  { %v2000_v54 = vpop.f32.mrf.mxu2 }
 0x333   :  { %v2051_v27 = vpop.f32.mrf.mxu3  ;;  %v2001_v41 = vadd.f32 %v3914_v53, %v2000_v54  ;;  %v2109_v2 = vrot.slane %v2108_v50, 4 }
 0x335   :  { %v2050_v43 = vadd.f32 %v2049_v34, %v2001_v41  ;;  %v2110_v29 = vmax.f32 %v2108_v50, %v2109_v2 }
 0x337   :  { %v2074_v25 = vmul.f32 %v2050_v43, %v3998_v35  ;;  %v2111_v24 = vrot.slane %v2110_v29, 2 }
 0x339   :  { %v2112_v12 = vmax.f32 %v2110_v29, %v2111_v24 }
 0x33a   :  { %v2002_v44 = vpop.f32.mrf.mxu2 }
 0x33b   :  { %v2054_v39 = vpop.f32.mrf.mxu3  ;;  %v2003_v16 = vadd.f32 %v3914_v53, %v2002_v44  ;;  %v2113_v34 = vrot.slane %v2112_v12, 1 }
 0x33d   :  { %v2052_v21 = vadd.f32 %v2051_v27, %v2003_v16 }
 0x33f   :  { %v2075_v56 = vmul.f32 %v2052_v21, %v3996_v52 }
 0x341   :  { %v2115_v18 = vmax.f32 %v2074_v25, %v2075_v56 }
 0x342   :  { %v2005_v31 = vpop.f32.mrf.mxu2 }
 0x343   :  { %v2006_v3 = vadd.f32 %v3914_v53, %v2005_v31  ;;  %v2056_v40 = vpop.f32.mrf.mxu3  ;;  %v2116_v4 = vrot.slane %v2115_v18, 4 }
 0x345   :  { %v2055_v14 = vadd.f32 %v2054_v39, %v2006_v3  ;;  %v2117_v17 = vmax.f32 %v2115_v18, %v2116_v4 }
 0x347   :  { %v2076_v32 = vmul.f32 %v2055_v14, %v4000_v28  ;;  %v2118_v15 = vrot.slane %v2117_v17, 2 }
 0x349   :  { %v2119_v49 = vmax.f32 %v2117_v17, %v2118_v15 }
 0x34a   :  { %v2007_v46 = vpop.f32.mrf.mxu2 }
 0x34b   :  { %v2008_v26 = vadd.f32 %v3914_v53, %v2007_v46  ;;  %v2059_v58 = vpop.f32.mrf.mxu3  ;;  %v2120_v36 = vrot.slane %v2119_v49, 1 }
 0x34d   :  { %v2057_v13 = vadd.f32 %v2056_v40, %v2008_v26  ;;  %v2121_v39 = vmax.f32 %v2119_v49, %v2120_v36 }
 0x34f   :  { %v2077_v42 = vmul.f32 %v2057_v13, %v3999_v47 }
 0x351   :  { %v2122_v7 = vmax.f32 %v2076_v32, %v2077_v42 }
 0x352   :  { %v2010_v60 = vpop.f32.mrf.mxu2 }
 0x353   :  { %v2123_v22 = vrot.slane %v2122_v7, 4  ;;  %v2011_v11 = vadd.f32 %v3914_v53, %v2010_v60  ;;  %v2061_v9 = vpop.f32.mrf.mxu3 }
 0x355   :  { %v2124_v30 = vmax.f32 %v2122_v7, %v2123_v22  ;;  %v2060_v59 = vadd.f32 %v2059_v58, %v2011_v11 }
 0x357   :  { %v2125_v48 = vrot.slane %v2124_v30, 2  ;;  %v2078_v45 = vmul.f32 %v2060_v59, %v4001_v62 }
 0x359   :  { %v2126_v33 = vmax.f32 %v2124_v30, %v2125_v48 }
 0x35a   :  { %v2012_v5 = vpop.f32.mrf.mxu2 }
 0x35b   :  { %v2013_v1 = vadd.f32 %v3914_v53, %v2012_v5  ;;  %v2127_v27 = vrot.slane %v2126_v33, 1  ;;  %v2114_v53 = vmax.f32 %v2112_v12, %v2113_v34 }
 0x35d   :  { %v2062_v37 = vadd.f32 %v2061_v9, %v2013_v1  ;;  %v2128_v38 = vmax.f32 %v2126_v33, %v2127_v27  ;;  %v2147_v8 = vsel %vm965_vm3, %v2114_v53, %v3935_v51 }
 0x35e   :  { %v2148_v57 = vsel %vm967_vm4, %v2121_v39, %v2147_v8 }
 0x35f   :  { %v2079_v10 = vmul.f32 %v2062_v37, %v4002_v61  ;;  %v2149_v3 = vsel %vm969_vm5, %v2128_v38, %v2148_v57 }
 0x361   :  { %v2129_v19 = vmax.f32 %v2078_v45, %v2079_v10 }
 0x363   :  { %v2130_v23 = vrot.slane %v2129_v19, 4 }
 0x365   :  { %v2131_v54 = vmax.f32 %v2129_v19, %v2130_v23 }
 0x367   :  { %v2132_v44 = vrot.slane %v2131_v54, 2 }
 0x369   :  { %v2133_v31 = vmax.f32 %v2131_v54, %v2132_v44 }
 0x36b   :  { %v2134_v16 = vrot.slane %v2133_v31, 1 }
 0x36d   :  { %v2135_v41 = vmax.f32 %v2133_v31, %v2134_v16 }
 0x36f   :  { %v2150_v40 = vsel %vm971_vm6, %v2135_v41, %v2149_v3 }
 0x370   :  { %2152 = vst [vmem:[#allocation2] sm:$0xff] %v2150_v40 }
 0x371   :  { %2163 = dma.vmem_to_hbm [thread:$0]  %s2159_s15, 128, %s2161_s17, [#allocation3]  }
 0x372   :  { %2721 = dma.done.wait [#allocation3], 128  }
 0x373   :  { %2722 = vsyncadd [#allocation3], 4294967168 }
 0x374   :  { %2168 = vsyncpa [#allocation3], 1 }

// kernel: _points_encoder_impl.1
= control target key start
LH: loop header
LB: loop body
LE: loop exit
PB: predicated region body
PF: predicated region fallthrough
CT: control target
= control target key end

     0   :  { %v2723_v1 = vmov 1   ;;  %v2724_v2 = vmov 0   ;;  %s3961_s0 = inlined_call_operand.vmem [shape: f32[8,16,3], index: 0, kind: input, shape index: {}]   ;;  %s3962_s1 = inlined_call_operand.vmem [shape: f32[8,16,1], index: 1, kind: input, shape index: {}]   ;;  %s3963_s2 = inlined_call_operand.vmem [shape: f32[3,128], index: 2, kind: input, shape index: {}]   ;;  %s3964_s3 = inlined_call_operand.vmem [shape: f32[1,128], index: 3, kind: input, shape index: {}]   ;;  %s3965_s4 = inlined_call_operand.vmem [shape: bf16[128,256], index: 4, kind: input, shape index: {}]   ;;  %s3966_s5 = inlined_call_operand.vmem [shape: f32[1,256], index: 5, kind: input, shape index: {}]   ;;  %s3967_s6 = inlined_call_operand.vmem [shape: bf16[256,256], index: 6, kind: input, shape index: {}]   ;;  %s3968_s7 = inlined_call_operand.vmem [shape: bf16[256,256], index: 7, kind: input, shape index: {}]   ;;  %s3969_s8 = inlined_call_operand.vmem [shape: f32[1,256], index: 8, kind: input, shape index: {}]   ;;  %s3970_s9 = inlined_call_operand.vmem [shape: bf16[256,128], index: 9, kind: input, shape index: {}]   ;;  %s3971_s10 = inlined_call_operand.vmem [shape: f32[1,128], index: 10, kind: input, shape index: {}]   ;;  %s3972_s11 = inlined_call_operand.hbm [shape: f32[1,8,128], index: 11, kind: output, shape index: {}]  }
   0x1   :  { %v39_v0 = vld [vmem:[%s3961_s0] sm:$0xff]  ;;  %2654 = vset.pattern.permute.xlu1 %v2723_v1  ;;  %2653 = vset.pattern.permute.xlu0 %v2724_v2 }
   0x2   :  { %190 = vperm.xlu1 %2654, %v39_v0   ;;  %74 = vperm.xlu0 %2653, %v39_v0  }
   0x3   :  { %16 = vsyncpa [#allocation3], 0  ;;  %v2725_v3 = vmov 2   ;;  %v40_v4 = vld [vmem:[%s3961_s0 + $0x8] sm:$0xff]  ;;  %v41_v5 = vld [vmem:[%s3961_s0 + $0x10] sm:$0xff]  ;;  %vm959_vm0 = vcmask 1041409  }
   0x4   :  { %2655 = vset.pattern.permute.xlu2 %v2725_v3  ;;  %v42_v6 = vld [vmem:[%s3961_s0 + $0x18] sm:$0xff]  ;;  %v43_v7 = vld [vmem:[%s3961_s0 + $0x20] sm:$0xff]  ;;  %v44_v8 = vld [vmem:[%s3961_s0 + $0x28] sm:$0xff]  ;;  %vm961_vm1 = vcmask 1042434   ;;  %vm963_vm2 = vcmask 1043459   ;;  %vm965_vm3 = vcmask 1044484  }
   0x5   :  { %287 = vperm.xlu2 %2655, %v39_v0   ;;  %v45_v9 = vld [vmem:[%s3961_s0 + $0x30] sm:$0xff]  ;;  %v46_v10 = vld [vmem:[%s3961_s0 + $0x38] sm:$0xff]  ;;  %v2829_v11 = vld [vmem:[%s3961_s0 + $0x48] sm:$0xff]  ;;  %vm967_vm4 = vcmask 1045509   ;;  %vm969_vm5 = vcmask 1046534   ;;  %vm971_vm6 = vcmask 1047559  }
   0x6   :  { %v2838_v12 = vld [vmem:[%s3961_s0 + $0x50] sm:$0xff]  ;;  %v2568_v14 = vld [vmem:[%s3965_s4 + $0x74] sm:$0xf0]  ;;  %v2229_v17 = vld [vmem:[%s3965_s4 + $0x78] sm:$0xf0]  ;;  %vm1681_vm7 = vcmask 1046528  }
   0x7   :  { %v2227_v13 = vld [vmem:[%s3965_s4 + $0x70] sm:$0xf]  ;;  %v2567_v15 = vld [vmem:[%s3965_s4 + $0x74] sm:$0xf]  ;;  %v47_v19 = vld [vmem:[%s3961_s0 + $0x40] sm:$0xff]  ;;  %vm1667_vm8 = vcmask 1040384  }
   0x8   :  { %v2228_v16 = vor.u32 %v2568_v14, %v2227_v13  ;;  %v2232_v18 = vor.u32 %v2567_v15, %v2229_v17  ;;  %v2219_v20 = vld [vmem:[%s3965_s4 + $0x60] sm:$0xf]  ;;  %v2566_v21 = vld [vmem:[%s3965_s4 + $0x64] sm:$0xf0]  ;;  %v2565_v22 = vld [vmem:[%s3965_s4 + $0x64] sm:$0xf] }
   0x9   :  { %v2870_v23 = vld [vmem:[%s3961_s0 + $0x58] sm:$0xff]  ;;  %v2220_v24 = vor.u32 %v2566_v21, %v2219_v20  ;;  %v2221_v25 = vld [vmem:[%s3965_s4 + $0x68] sm:$0xf0]  ;;  %v2211_v27 = vld [vmem:[%s3965_s4 + $0x50] sm:$0xf]  ;;  %s2160_s17 = sshll.u32 %s3972_s11, 4  ;;  %s2161_s17 = int_to_ptr.hbm [resolvable:$true] %s2160_s17 }
   0xa   :  { %194 = vperm.xlu1 %2654, %v40_v4   ;;  %79 = vperm.xlu0 %2653, %v40_v4   ;;  %v2224_v26 = vor.u32 %v2565_v22, %v2221_v25  ;;  %v2564_v28 = vld [vmem:[%s3965_s4 + $0x54] sm:$0xf0]  ;;  %v2563_v29 = vld [vmem:[%s3965_s4 + $0x54] sm:$0xf]  ;;  %v2213_v31 = vld [vmem:[%s3965_s4 + $0x58] sm:$0xf0] }
   0xb   :  { %509 = vmatpush.bf16.msra.mxu0 %v2228_v16  ;;  %558 = vmatpush.bf16.msra.mxu1 %v2232_v18  ;;  %v2212_v30 = vor.u32 %v2564_v28, %v2211_v27  ;;  %v2216_v32 = vor.u32 %v2563_v29, %v2213_v31  ;;  %v2203_v33 = vld [vmem:[%s3965_s4 + $0x40] sm:$0xf]  ;;  %v2562_v34 = vld [vmem:[%s3965_s4 + $0x44] sm:$0xf0]  ;;  %v2561_v36 = vld [vmem:[%s3965_s4 + $0x44] sm:$0xf] }
   0xc   :  { %v2204_v35 = vor.u32 %v2562_v34, %v2203_v33  ;;  %v2205_v37 = vld [vmem:[%s3965_s4 + $0x48] sm:$0xf0]  ;;  %v2907_v39 = vld [vmem:[%s3961_s0 + $0x60] sm:$0xff]  ;;  %v2195_v40 = vld [vmem:[%s3965_s4 + $0x30] sm:$0xf] }
   0xd   :  { %291 = vperm.xlu2 %2655, %v40_v4   ;;  %v2208_v38 = vor.u32 %v2561_v36, %v2205_v37  ;;  %v2560_v41 = vld [vmem:[%s3965_s4 + $0x34] sm:$0xf0]  ;;  %v2559_v42 = vld [vmem:[%s3965_s4 + $0x34] sm:$0xf]  ;;  %v2197_v44 = vld [vmem:[%s3965_s4 + $0x38] sm:$0xf0] }
   0xe   :  { %v2196_v43 = vor.u32 %v2560_v41, %v2195_v40  ;;  %v2200_v45 = vor.u32 %v2559_v42, %v2197_v44  ;;  %v2187_v46 = vld [vmem:[%s3965_s4 + $0x20] sm:$0xf]  ;;  %v2558_v47 = vld [vmem:[%s3965_s4 + $0x24] sm:$0xf0]  ;;  %v2557_v48 = vld [vmem:[%s3965_s4 + $0x24] sm:$0xf] }
   0xf   :  { %510 = vmatpush.bf16.msra.mxu0 %v2220_v24  ;;  %559 = vmatpush.bf16.msra.mxu1 %v2224_v26  ;;  %v2188_v49 = vor.u32 %v2558_v47, %v2187_v46  ;;  %v2189_v50 = vld [vmem:[%s3965_s4 + $0x28] sm:$0xf0]  ;;  %v2179_v53 = vld [vmem:[%s3965_s4 + $0x10] sm:$0xf]  ;;  %v2556_v54 = vld [vmem:[%s3965_s4 + $0x14] sm:$0xf0] }
  0x10   :  { %v2192_v51 = vor.u32 %v2557_v48, %v2189_v50  ;;  %v52_v52 = vld [vmem:[%s3961_s0 + $0x68] sm:$0xff]  ;;  %v2555_v55 = vld [vmem:[%s3965_s4 + $0x14] sm:$0xf]  ;;  %v2180_v56 = vor.u32 %v2556_v54, %v2179_v53  ;;  %v2181_v57 = vld [vmem:[%s3965_s4 + $0x18] sm:$0xf0] }
  0x11   :  { %v2184_v59 = vor.u32 %v2555_v55, %v2181_v57  ;;  %v2171_v60 = vld [vmem:[%s3965_s4] sm:$0xf]  ;;  %v2554_v61 = vld [vmem:[%s3965_s4 + $0x4] sm:$0xf0]  ;;  %v2553_v62 = vld [vmem:[%s3965_s4 + $0x4] sm:$0xf] }
  0x12   :  { %2656 = vset.pattern.permute.xlu1 %v2724_v2  ;;  %84 = vperm.xlu0 %2653, %v41_v5   ;;  %v2172_v63 = vor.u32 %v2554_v61, %v2171_v60  ;;  %v2173_v0 = vld [vmem:[%s3965_s4 + $0x8] sm:$0xf0]  ;;  %v54_v41 = vld [vmem:[%s3961_s0 + $0x78] sm:$0xff] }
  0x13   :  { %89 = vperm.xlu1 %2656, %v42_v6   ;;  %511 = vmatpush.bf16.msra.mxu0 %v2212_v30  ;;  %v2176_v4 = vor.u32 %v2553_v62, %v2173_v0 }
  0x14   :  { %560 = vmatpush.bf16.msra.mxu1 %v2216_v32 }
  0x15   :  { %2657 = vset.pattern.permute.xlu2 %v2723_v1 }
  0x16   :  { %198 = vperm.xlu2 %2657, %v41_v5  }
  0x17   :  { %512 = vmatpush.bf16.msra.mxu0 %v2204_v35 }
  0x18   :  { %561 = vmatpush.bf16.msra.mxu1 %v2208_v38 }
  0x1a   :  { %2658 = vset.pattern.permute.xlu0 %v2723_v1 }
  0x1b   :  { %2659 = vset.pattern.permute.xlu1 %v2725_v3  ;;  %202 = vperm.xlu0 %2658, %v42_v6  }
  0x1c   :  { %295 = vperm.xlu1 %2659, %v41_v5   ;;  %513 = vmatpush.bf16.msra.mxu0 %v2196_v43  ;;  %v2972_v5 = vld [vmem:[%s3961_s0 + $0x70] sm:$0xff] }
  0x1d   :  { %562 = vmatpush.bf16.msra.mxu1 %v2200_v45 }
  0x1e   :  { %2660 = vset.pattern.permute.xlu2 %v2725_v3 }
  0x1f   :  { %299 = vperm.xlu2 %2660, %v42_v6  }
  0x20   :  { %514 = vmatpush.bf16.msra.mxu0 %v2188_v49 }
  0x21   :  { %563 = vmatpush.bf16.msra.mxu1 %v2192_v51 }
  0x23   :  { %206 = vperm.xlu0 %2658, %v43_v7  }
  0x24   :  { %2661 = vset.pattern.permute.xlu1 %v2724_v2  ;;  %515 = vmatpush.bf16.msra.mxu0 %v2180_v56 }
  0x25   :  { %94 = vperm.xlu1 %2661, %v43_v7   ;;  %564 = vmatpush.bf16.msra.mxu1 %v2184_v59  ;;  %v55_v59 = vld [vmem:[%s3962_s1] sm:$0xff] }
  0x27   :  { %2662 = vset.pattern.permute.xlu2 %v2724_v2 }
  0x28   :  { %99 = vperm.xlu2 %2662, %v44_v8   ;;  %516 = vmatpush.bf16.msra.mxu0 %v2172_v63 }
  0x29   :  { %565 = vmatpush.bf16.msra.mxu1 %v2176_v4 }
  0x2b   :  { %2665 = vset.pattern.permute.xlu0 %v2725_v3 }
  0x2c   :  { %307 = vperm.xlu0 %2665, %v44_v8  }
  0x2d   :  { %2663 = vset.pattern.permute.xlu1 %v2723_v1 }
  0x2e   :  { %210 = vperm.xlu1 %2663, %v44_v8  }
  0x30   :  { %2664 = vset.pattern.permute.xlu2 %v2725_v3 }
  0x31   :  { %303 = vperm.xlu2 %2664, %v43_v7   ;;  %v71_v7 = vld [vmem:[%s3963_s2] sm:$0x7] }
  0x32   :  { %v2983_v8 = vperm.slane %v71_v7, 0  ;;  %v2993_v14 = vperm.slane %v71_v7, 1  ;;  %v2996_v15 = vperm.slane %v71_v7, 2 }
  0x34   :  { %311 = vperm.xlu0 %2665, %v45_v9  }
  0x36   :  { %2666 = vset.pattern.permute.xlu1 %v2724_v2 }
  0x37   :  { %104 = vperm.xlu1 %2666, %v45_v9  }
  0x39   :  { %2667 = vset.pattern.permute.xlu2 %v2724_v2 }
  0x3a   :  { %109 = vperm.xlu2 %2667, %v46_v10  }
  0x3c   :  { %2672 = vset.pattern.permute.xlu0 %v2724_v2 }
  0x3d   :  { %119 = vperm.xlu0 %2672, %v2829_v11  }
  0x3f   :  { %2668 = vset.pattern.permute.xlu1 %v2723_v1 }
  0x40   :  { %214 = vperm.xlu1 %2668, %v45_v9  }
  0x42   :  { %2669 = vset.pattern.permute.xlu2 %v2723_v1 }
  0x43   :  { %218 = vperm.xlu2 %2669, %v46_v10  }
  0x45   :  { %124 = vperm.xlu0 %2672, %v2838_v12  }
  0x48   :  { %2670 = vset.pattern.permute.xlu1 %v2725_v3 }
  0x49   :  { %315 = vperm.xlu1 %2670, %v46_v10  }
  0x4b   :  { %2671 = vset.pattern.permute.xlu2 %v2724_v2 }
  0x4c   :  { %114 = vperm.xlu2 %2671, %v47_v19  }
  0x4d   :  { %2679 = vset.pattern.permute.xlu0 %v2723_v1 }
  0x4e   :  { %234 = vperm.xlu0 %2679, %v2870_v23  }
  0x51   :  { %2673 = vset.pattern.permute.xlu1 %v2723_v1 }
  0x52   :  { %222 = vperm.xlu1 %2673, %v47_v19  }
  0x54   :  { %2674 = vset.pattern.permute.xlu2 %v2723_v1 }
  0x55   :  { %226 = vperm.xlu2 %2674, %v2829_v11  }
  0x56   :  { %238 = vperm.xlu0 %2679, %v2907_v39  }
  0x5a   :  { %2675 = vset.pattern.permute.xlu1 %v2725_v3 }
  0x5b   :  { %319 = vperm.xlu1 %2675, %v47_v19  }
  0x5d   :  { %2676 = vset.pattern.permute.xlu2 %v2725_v3 }
  0x5e   :  { %323 = vperm.xlu2 %2676, %v2829_v11   ;;  %2686 = vset.pattern.permute.xlu0 %v2725_v3  ;;  %v2988_v11 = vld [vmem:[%s3964_s3] ss:$0 sm:$0xff] }
  0x5f   :  { %339 = vperm.xlu0 %2686, %v52_v52   ;;  %v288_v58 = vpop.permute.xlu2 %287 }
  0x60   :  { %v351_v20 = vmul.f32 %v2996_v15, %v288_v58 }
  0x63   :  { %2677 = vset.pattern.permute.xlu1 %v2724_v2 }
  0x64   :  { %129 = vperm.xlu1 %2677, %v2870_v23  }
  0x66   :  { %2678 = vset.pattern.permute.xlu2 %v2723_v1 }
  0x67   :  { %230 = vperm.xlu2 %2678, %v2838_v12   ;;  %343 = vperm.xlu0 %2686, %v2972_v5   ;;  %v292_v6 = vpop.permute.xlu2 %291 }
  0x68   :  { %v352_v27 = vmul.f32 %v2996_v15, %v292_v6  ;;  %v57_v6 = vld [vmem:[%s3962_s1 + $0x10] sm:$0xff] }
  0x6c   :  { %2680 = vset.pattern.permute.xlu1 %v2725_v3 }
  0x6d   :  { %327 = vperm.xlu1 %2680, %v2838_v12  }
  0x6f   :  { %2681 = vset.pattern.permute.xlu2 %v2725_v3  ;;  %2693 = vset.pattern.permute.xlu0 %v2724_v2 }
  0x70   :  { %331 = vperm.xlu2 %2681, %v2870_v23   ;;  %v199_v13 = vpop.permute.xlu2 %198  ;;  %v56_v23 = vld [vmem:[%s3962_s1 + $0x8] sm:$0xff] }
  0x71   :  { %614 = vperm.xlu0 %2693, %v56_v23   ;;  %v256_v37 = vmul.f32 %v2993_v14, %v199_v13  ;;  %v61_v23 = vld [vmem:[%s3962_s1 + $0x30] sm:$0xff] }
  0x74   :  { %v191_v9 = vpop.permute.xlu1 %190  ;;  %v75_v10 = vpop.permute.xlu0 %74 }
  0x75   :  { %v153_v12 = vmul.f32 %v2983_v8, %v75_v10  ;;  %2682 = vset.pattern.permute.xlu1 %v2724_v2  ;;  %v254_v17 = vmul.f32 %v2993_v14, %v191_v9 }
  0x76   :  { %134 = vperm.xlu1 %2682, %v2907_v39  }
  0x77   :  { %v173_v16 = vadd.f32 %v2988_v11, %v153_v12 }
  0x78   :  { %2683 = vset.pattern.permute.xlu2 %v2724_v2 }
  0x79   :  { %139 = vperm.xlu2 %2683, %v52_v52   ;;  %v270_v21 = vadd.f32 %v254_v17, %v173_v16  ;;  %v300_v26 = vpop.permute.xlu2 %299  ;;  %v58_v17 = vld [vmem:[%s3962_s1 + $0x18] sm:$0xff]  ;;  %639 = vperm.xlu0 %2693, %v61_v23  }
  0x7a   :  { %v354_v45 = vmul.f32 %v2996_v15, %v300_v26 }
  0x7b   :  { %v367_v29 = vadd.f32 %v351_v20, %v270_v21 }
  0x7c   :  { %v195_v18 = vpop.permute.xlu1 %194  ;;  %v80_v19 = vpop.permute.xlu0 %79 }
  0x7d   :  { %v154_v22 = vmul.f32 %v2983_v8, %v80_v19  ;;  %v255_v24 = vmul.f32 %v2993_v14, %v195_v18  ;;  %v383_v34 = vmax.f32 %v367_v29, 0.0 }
  0x7e   :  { %2684 = vset.pattern.permute.xlu1 %v2723_v1 }
  0x7f   :  { %v174_v25 = vadd.f32 %v2988_v11, %v154_v22  ;;  %242 = vperm.xlu1 %2684, %v52_v52   ;;  %v59_v22 = vld [vmem:[%s3962_s1 + $0x20] sm:$0xff] }
  0x81   :  { %2685 = vset.pattern.permute.xlu2 %v2725_v3  ;;  %v271_v28 = vadd.f32 %v255_v24, %v174_v25 }
  0x82   :  { %335 = vperm.xlu2 %2685, %v2907_v39   ;;  %v100_v40 = vpop.permute.xlu2 %99 }
  0x83   :  { %v368_v30 = vadd.f32 %v352_v27, %v271_v28  ;;  %v158_v60 = vmul.f32 %v2983_v8, %v100_v40 }
  0x84   :  { %v85_v31 = vpop.permute.xlu0 %84 }
  0x85   :  { %v90_v32 = vpop.permute.xlu1 %89  ;;  %v155_v33 = vmul.f32 %v2983_v8, %v85_v31  ;;  %v384_v35 = vmax.f32 %v368_v30, 0.0 }
  0x86   :  { %v156_v39 = vmul.f32 %v2983_v8, %v90_v32 }
  0x87   :  { %2687 = vset.pattern.permute.xlu1 %v2724_v2  ;;  %v399_v36 = vpack.c.bf16 %v384_v35, %v383_v34  ;;  %v175_v38 = vadd.f32 %v2988_v11, %v155_v33  ;;  %v60_v34 = vld [vmem:[%s3962_s1 + $0x28] sm:$0xff] }
  0x88   :  { %144 = vperm.xlu1 %2687, %v2972_v5   ;;  %v176_v44 = vadd.f32 %v2988_v11, %v156_v39 }
  0x89   :  { %517 = vmatmul.bf16.vlgmr.msra.gmra.mxu0 %v399_v36  ;;  %566 = vmatmul.bf16.vlgmr.msra.gmra.mxu1 %v399_v36  ;;  %v272_v43 = vadd.f32 %v256_v37, %v175_v38  ;;  %v62_v36 = vld [vmem:[%s3962_s1 + $0x38] sm:$0xff] }
  0x8a   :  { %2688 = vset.pattern.permute.xlu2 %v2724_v2 }
  0x8b   :  { %149 = vperm.xlu2 %2688, %v54_v41   ;;  %v304_v53 = vpop.permute.xlu2 %303 }
  0x8c   :  { %v355_v4 = vmul.f32 %v2996_v15, %v304_v53 }
  0x8d   :  { %v203_v42 = vpop.permute.xlu0 %202 }
  0x8e   :  { %v257_v46 = vmul.f32 %v2993_v14, %v203_v42  ;;  %v296_v47 = vpop.permute.xlu1 %295 }
  0x8f   :  { %v353_v48 = vmul.f32 %v2996_v15, %v296_v47 }
  0x90   :  { %v273_v49 = vadd.f32 %v257_v46, %v176_v44  ;;  %2689 = vset.pattern.permute.xlu1 %v2723_v1 }
  0x91   :  { %v369_v50 = vadd.f32 %v353_v48, %v272_v43  ;;  %246 = vperm.xlu1 %2689, %v2972_v5  }
  0x92   :  { %v370_v51 = vadd.f32 %v354_v45, %v273_v49 }
  0x93   :  { %v385_v52 = vmax.f32 %v369_v50, 0.0  ;;  %2690 = vset.pattern.permute.xlu2 %v2723_v1 }
  0x94   :  { %v386_v54 = vmax.f32 %v370_v51, 0.0  ;;  %250 = vperm.xlu2 %2690, %v54_v41   ;;  %v110_v62 = vpop.permute.xlu2 %109 }
  0x95   :  { %v207_v55 = vpop.permute.xlu0 %206  ;;  %v160_v26 = vmul.f32 %v2983_v8, %v110_v62 }
  0x96   :  { %v400_v56 = vpack.c.bf16 %v386_v54, %v385_v52  ;;  %v258_v61 = vmul.f32 %v2993_v14, %v207_v55 }
  0x97   :  { %v95_v57 = vpop.permute.xlu1 %94  ;;  %v180_v30 = vadd.f32 %v2988_v11, %v160_v26 }
  0x98   :  { %v157_v58 = vmul.f32 %v2983_v8, %v95_v57  ;;  %v64_v57 = vld [vmem:[%s3962_s1 + $0x48] sm:$0xff] }
  0x99   :  { %2691 = vset.pattern.permute.xlu1 %v2725_v3  ;;  %522 = vmatmul.bf16.gmra.mxu0 %v400_v56  ;;  %v178_v3 = vadd.f32 %v2988_v11, %v158_v60 }
  0x9a   :  { %571 = vmatmul.bf16.gmra.mxu1 %v400_v56  ;;  %347 = vperm.xlu1 %2691, %v54_v41   ;;  %v177_v1 = vadd.f32 %v2988_v11, %v157_v58 }
  0x9b   :  { %654 = vperm.xlu0 %2693, %v64_v57   ;;  %v423_v57 = vld [vmem:[%s3966_s5] sm:$0x3] }
  0x9c   :  { %2692 = vset.pattern.permute.xlu2 %v2724_v2  ;;  %v274_v0 = vadd.f32 %v258_v61, %v177_v1 }
  0x9d   :  { %609 = vperm.xlu2 %2692, %v55_v59   ;;  %v219_v16 = vpop.permute.xlu2 %218 }
  0x9e   :  { %v308_v63 = vpop.permute.xlu0 %307  ;;  %v371_v10 = vadd.f32 %v355_v4, %v274_v0  ;;  %v261_v31 = vmul.f32 %v2993_v14, %v219_v16  ;;  %v63_v16 = vld [vmem:[%s3962_s1 + $0x40] sm:$0xff] }
  0x9f   :  { %v356_v9 = vmul.f32 %v2996_v15, %v308_v63 }
  0xa0   :  { %v211_v5 = vpop.permute.xlu1 %210  ;;  %v387_v18 = vmax.f32 %v371_v10, 0.0  ;;  %v277_v38 = vadd.f32 %v261_v31, %v180_v30 }
  0xa1   :  { %v259_v7 = vmul.f32 %v2993_v14, %v211_v5  ;;  %v65_v5 = vld [vmem:[%s3962_s1 + $0x50] sm:$0xff] }
  0xa2   :  { %2694 = vset.pattern.permute.xlu1 %v2724_v2 }
  0xa3   :  { %v275_v12 = vadd.f32 %v259_v7, %v178_v3  ;;  %619 = vperm.xlu1 %2694, %v57_v6  }
  0xa5   :  { %v372_v13 = vadd.f32 %v356_v9, %v275_v12  ;;  %624 = vperm.xlu2 %2692, %v58_v17  }
  0xa6   :  { %v115_v2 = vpop.permute.xlu2 %114  ;;  %v312_v28 = vpop.permute.xlu0 %311 }
  0xa7   :  { %v388_v19 = vmax.f32 %v372_v13, 0.0  ;;  %v357_v33 = vmul.f32 %v2996_v15, %v312_v28  ;;  %v161_v51 = vmul.f32 %v2983_v8, %v115_v2 }
  0xa9   :  { %v105_v20 = vpop.permute.xlu1 %104  ;;  %v401_v21 = vpack.c.bf16 %v388_v19, %v387_v18  ;;  %v181_v54 = vadd.f32 %v2988_v11, %v161_v51 }
  0xaa   :  { %v159_v24 = vmul.f32 %v2983_v8, %v105_v20 }
  0xab   :  { %527 = vmatmul.bf16.gmra.mxu0 %v401_v21  ;;  %576 = vmatmul.bf16.gmra.mxu1 %v401_v21  ;;  %v67_v21 = vld [vmem:[%s3962_s1 + $0x60] sm:$0xff] }
  0xac   :  { %629 = vperm.xlu1 %2694, %v59_v22   ;;  %v179_v29 = vadd.f32 %v2988_v11, %v159_v24  ;;  %669 = vperm.xlu0 %2693, %v67_v21  }
  0xad   :  { %634 = vperm.xlu2 %2692, %v60_v34   ;;  %v68_v34 = vld [vmem:[%s3962_s1 + $0x68] sm:$0xff] }
  0xaf   :  { %v227_v35 = vpop.permute.xlu2 %226  ;;  %v120_v41 = vpop.permute.xlu0 %119 }
  0xb0   :  { %v162_v45 = vmul.f32 %v2983_v8, %v120_v41  ;;  %v263_v48 = vmul.f32 %v2993_v14, %v227_v35  ;;  %v70_v35 = vld [vmem:[%s3962_s1 + $0x78] sm:$0xff] }
  0xb2   :  { %v215_v25 = vpop.permute.xlu1 %214  ;;  %v182_v50 = vadd.f32 %v2988_v11, %v162_v45 }
  0xb3   :  { %v260_v27 = vmul.f32 %v2993_v14, %v215_v25 }
  0xb4   :  { %644 = vperm.xlu1 %2694, %v62_v36   ;;  %v279_v52 = vadd.f32 %v263_v48, %v182_v50  ;;  %684 = vperm.xlu0 %2693, %v70_v35  }
  0xb5   :  { %v276_v32 = vadd.f32 %v260_v27, %v179_v29  ;;  %649 = vperm.xlu2 %2692, %v63_v16  }
  0xb7   :  { %v373_v40 = vadd.f32 %v357_v33, %v276_v32  ;;  %v125_v56 = vpop.permute.xlu0 %124 }
  0xb8   :  { %v324_v47 = vpop.permute.xlu2 %323  ;;  %v163_v10 = vmul.f32 %v2983_v8, %v125_v56 }
  0xb9   :  { %v389_v43 = vmax.f32 %v373_v40, 0.0  ;;  %v360_v53 = vmul.f32 %v2996_v15, %v324_v47  ;;  %v66_v47 = vld [vmem:[%s3962_s1 + $0x58] sm:$0xff] }
  0xba   :  { %v183_v17 = vadd.f32 %v2988_v11, %v163_v10 }
  0xbb   :  { %v316_v37 = vpop.permute.xlu1 %315  ;;  %v376_v58 = vadd.f32 %v360_v53, %v279_v52 }
  0xbc   :  { %v358_v39 = vmul.f32 %v2996_v15, %v316_v37  ;;  %659 = vperm.xlu1 %2694, %v65_v5  }
  0xbd   :  { %v392_v62 = vmax.f32 %v376_v58, 0.0  ;;  %664 = vperm.xlu2 %2692, %v66_v47  }
  0xbe   :  { %v374_v42 = vadd.f32 %v358_v39, %v277_v38 }
  0xc0   :  { %v390_v44 = vmax.f32 %v374_v42, 0.0  ;;  %v235_v4 = vpop.permute.xlu0 %234 }
  0xc1   :  { %v231_v60 = vpop.permute.xlu2 %230  ;;  %v265_v12 = vmul.f32 %v2993_v14, %v235_v4 }
  0xc2   :  { %v402_v46 = vpack.c.bf16 %v390_v44, %v389_v43  ;;  %v264_v18 = vmul.f32 %v2993_v14, %v231_v60  ;;  %v3120_v60 = vperm.slane %v423_v57, 0 }
  0xc4   :  { %v223_v49 = vpop.permute.xlu1 %222  ;;  %532 = vmatmul.bf16.gmra.mxu0 %v402_v46  ;;  %581 = vmatmul.bf16.gmra.mxu1 %v402_v46  ;;  %v280_v23 = vadd.f32 %v264_v18, %v183_v17 }
  0xc5   :  { %v262_v55 = vmul.f32 %v2993_v14, %v223_v49  ;;  %674 = vperm.xlu1 %2694, %v68_v34  }
  0xc7   :  { %v278_v1 = vadd.f32 %v262_v55, %v181_v54  ;;  %v69_v55 = vld [vmem:[%s3962_s1 + $0x70] sm:$0xff] }
  0xc8   :  { %v239_v29 = vpop.permute.xlu0 %238  ;;  %679 = vperm.xlu2 %2692, %v69_v55   ;;  %v2291_v55 = vld [vmem:[%s3968_s7 + $0x70] sm:$0xf] }
  0xc9   :  { %v266_v38 = vmul.f32 %v2993_v14, %v239_v29 }
  0xca   :  { %v332_v9 = vpop.permute.xlu2 %331 }
  0xcb   :  { %v362_v20 = vmul.f32 %v2996_v15, %v332_v9 }
  0xcd   :  { %v320_v59 = vpop.permute.xlu1 %319 }
  0xce   :  { %v359_v61 = vmul.f32 %v2996_v15, %v320_v59 }
  0xd0   :  { %v375_v63 = vadd.f32 %v359_v61, %v278_v1  ;;  %v3122_v1 = vperm.slane %v423_v57, 1  ;;  %v2355_v57 = vld [vmem:[%s3968_s7 + $0xf0] sm:$0xf] }
  0xd1   :  { %v340_v40 = vpop.permute.xlu0 %339 }
  0xd2   :  { %v391_v3 = vmax.f32 %v375_v63, 0.0  ;;  %v364_v46 = vmul.f32 %v2996_v15, %v340_v40 }
  0xd3   :  { %v140_v2 = vpop.permute.xlu2 %139 }
  0xd4   :  { %v403_v0 = vpack.c.bf16 %v392_v62, %v391_v3  ;;  %v166_v36 = vmul.f32 %v2983_v8, %v140_v2 }
  0xd6   :  { %v130_v6 = vpop.permute.xlu1 %129  ;;  %537 = vmatmul.bf16.gmra.mxu0 %v403_v0  ;;  %586 = vmatmul.bf16.gmra.mxu1 %v403_v0  ;;  %v186_v39 = vadd.f32 %v2988_v11, %v166_v36 }
  0xd7   :  { %v164_v7 = vmul.f32 %v2983_v8, %v130_v6 }
  0xd9   :  { %v184_v13 = vadd.f32 %v2988_v11, %v164_v7  ;;  %v344_v62 = vpop.permute.xlu0 %343 }
  0xda   :  { %v365_v16 = vmul.f32 %v2996_v15, %v344_v62 }
  0xdb   :  { %v281_v19 = vadd.f32 %v265_v12, %v184_v13 }
  0xdc   :  { %v336_v33 = vpop.permute.xlu2 %335 }
  0xdd   :  { %v378_v24 = vadd.f32 %v362_v20, %v281_v19  ;;  %v363_v42 = vmul.f32 %v2996_v15, %v336_v33 }
  0xdf   :  { %v328_v22 = vpop.permute.xlu1 %327  ;;  %v394_v27 = vmax.f32 %v378_v24, 0.0 }
  0xe0   :  { %v361_v25 = vmul.f32 %v2996_v15, %v328_v22 }
  0xe2   :  { %v377_v26 = vadd.f32 %v361_v25, %v280_v23 }
  0xe3   :  { %v3139_v21 = vpop.permute.xlu0 %614 }
  0xe4   :  { %v393_v28 = vmax.f32 %v377_v26, 0.0 }
  0xe5   :  { %v150_v44 = vpop.permute.xlu2 %149 }
  0xe6   :  { %v404_v30 = vpack.c.bf16 %v394_v27, %v393_v28  ;;  %v168_v61 = vmul.f32 %v2983_v8, %v150_v44 }
  0xe8   :  { %v135_v31 = vpop.permute.xlu1 %134  ;;  %542 = vmatmul.bf16.gmra.mxu0 %v404_v30  ;;  %591 = vmatmul.bf16.gmra.mxu1 %v404_v30  ;;  %v188_v9 = vadd.f32 %v2988_v11, %v168_v61 }
  0xe9   :  { %v165_v32 = vmul.f32 %v2983_v8, %v135_v31 }
  0xeb   :  { %v185_v37 = vadd.f32 %v2988_v11, %v165_v32 }
  0xed   :  { %v282_v41 = vadd.f32 %v266_v38, %v185_v37 }
  0xee   :  { %v251_v56 = vpop.permute.xlu2 %250 }
  0xef   :  { %v379_v48 = vadd.f32 %v363_v42, %v282_v41  ;;  %v269_v10 = vmul.f32 %v2993_v14, %v251_v56  ;;  %v2584_v56 = vld [vmem:[%s3968_s7 + $0x74] sm:$0xf0] }
  0xf0   :  { %v2292_v62 = vor.u32 %v2584_v56, %v2291_v55 }
  0xf1   :  { %v243_v43 = vpop.permute.xlu1 %242  ;;  %v395_v51 = vmax.f32 %v379_v48, 0.0  ;;  %v285_v19 = vadd.f32 %v269_v10, %v188_v9 }
  0xf2   :  { %v267_v45 = vmul.f32 %v2993_v14, %v243_v43  ;;  %1144 = vmatpush.bf16.msrb.mxu0 %v2292_v62 }
  0xf4   :  { %v283_v49 = vadd.f32 %v267_v45, %v186_v39 }
  0xf6   :  { %v380_v50 = vadd.f32 %v364_v46, %v283_v49 }
  0xf7   :  { %v3126_v3 = vpop.permute.xlu2 %609 }
  0xf8   :  { %v396_v52 = vmax.f32 %v380_v50, 0.0 }
  0xfa   :  { %v145_v53 = vpop.permute.xlu1 %144  ;;  %v405_v54 = vpack.c.bf16 %v396_v52, %v395_v51 }
  0xfb   :  { %v167_v58 = vmul.f32 %v2983_v8, %v145_v53 }
  0xfc   :  { %547 = vmatmul.bf16.gmra.mxu0 %v405_v54  ;;  %596 = vmatmul.bf16.gmra.mxu1 %v405_v54 }
  0xfd   :  { %v187_v5 = vadd.f32 %v2988_v11, %v167_v58 }
  0xff   :  { %v3159_v47 = vpop.permute.xlu2 %624 }
 0x103   :  { %v247_v59 = vpop.permute.xlu1 %246 }
 0x104   :  { %v268_v63 = vmul.f32 %v2993_v14, %v247_v59 }
 0x106   :  { %v518_v0 = vpop.f32.mrf.mxu0  ;;  %v567_v4 = vpop.f32.mrf.mxu1  ;;  %v284_v12 = vadd.f32 %v268_v63, %v187_v5  ;;  %v2600_v63 = vld [vmem:[%s3968_s7 + $0xf4] sm:$0xf0] }
 0x107   :  { %v519_v6 = vadd.f32 %v518_v0, %v3120_v60  ;;  %v568_v7 = vadd.f32 %v567_v4, %v3122_v1  ;;  %v2356_v0 = vor.u32 %v2600_v63, %v2355_v57 }
 0x108   :  { %v381_v22 = vadd.f32 %v365_v16, %v284_v12 }
 0x109   :  { %v687_v8 = vmul.f32 %v3126_v3, %v519_v6  ;;  %v688_v13 = vmul.f32 %v3126_v3, %v568_v7  ;;  %1157 = vmatpush.bf16.msrb.mxu1 %v2356_v0 }
 0x10a   :  { %v397_v28 = vmax.f32 %v381_v22, 0.0 }
 0x10b   :  { %v3136_v17 = vpack.c.bf16 %v688_v13, %v687_v8 }
 0x10c   :  { %v348_v18 = vpop.permute.xlu1 %347 }
 0x10d   :  { %v366_v20 = vmul.f32 %v2996_v15, %v348_v18  ;;  %v735_v32 = vunpack.c.l.bf16 %v3136_v17  ;;  %v736_v33 = vunpack.c.h.bf16 %v3136_v17 }
 0x10e   :  { %v520_v2 = vpop.f32.mrf.mxu0  ;;  %v569_v11 = vpop.f32.mrf.mxu1 }
 0x10f   :  { %v382_v23 = vadd.f32 %v366_v20, %v285_v19  ;;  %v521_v14 = vadd.f32 %v520_v2, %v3120_v60  ;;  %v570_v24 = vadd.f32 %v569_v11, %v3122_v1 }
 0x111   :  { %v398_v25 = vmax.f32 %v382_v23, 0.0  ;;  %v689_v26 = vmul.f32 %v3139_v21, %v521_v14  ;;  %v690_v27 = vmul.f32 %v3139_v21, %v570_v24 }
 0x113   :  { %v3145_v29 = vpack.c.bf16 %v690_v27, %v689_v26  ;;  %v406_v30 = vpack.c.bf16 %v398_v25, %v397_v28 }
 0x115   :  { %v737_v15 = vunpack.c.l.bf16 %v3145_v29  ;;  %v738_v31 = vunpack.c.h.bf16 %v3145_v29  ;;  %552 = vmatmul.bf16.gmra.mxu0 %v406_v30  ;;  %601 = vmatmul.bf16.gmra.mxu1 %v406_v30  ;;  %v3151_v35 = vpop.permute.xlu1 %619 }
 0x116   :  { %v523_v34 = vpop.f32.mrf.mxu0 }
 0x117   :  { %v524_v36 = vadd.f32 %v523_v34, %v3120_v60  ;;  %v572_v37 = vpop.f32.mrf.mxu1  ;;  %v767_v38 = vmax.f32 %v735_v32, %v737_v15  ;;  %v774_v40 = vmax.f32 %v736_v33, %v738_v31  ;;  %v3189_v15 = vpop.permute.xlu2 %634 }
 0x118   :  { %v573_v39 = vadd.f32 %v572_v37, %v3122_v1 }
 0x119   :  { %v691_v41 = vmul.f32 %v3151_v35, %v524_v36  ;;  %v768_v43 = vrot.slane %v767_v38, 4  ;;  %v775_v44 = vrot.slane %v774_v40, 4 }
 0x11a   :  { %v692_v42 = vmul.f32 %v3151_v35, %v573_v39 }
 0x11b   :  { %v769_v50 = vmax.f32 %v767_v38, %v768_v43  ;;  %v776_v51 = vmax.f32 %v774_v40, %v775_v44 }
 0x11c   :  { %v3157_v45 = vpack.c.bf16 %v692_v42, %v691_v41 }
 0x11d   :  { %v770_v58 = vrot.slane %v769_v50, 2  ;;  %v777_v59 = vrot.slane %v776_v51, 2 }
 0x11e   :  { %v525_v46 = vpop.f32.mrf.mxu0  ;;  %v739_v4 = vunpack.c.l.bf16 %v3157_v45  ;;  %v740_v5 = vunpack.c.h.bf16 %v3157_v45  ;;  %v3183_v9 = vpop.permute.xlu1 %629 }
 0x11f   :  { %v526_v48 = vadd.f32 %v525_v46, %v3120_v60  ;;  %v574_v49 = vpop.f32.mrf.mxu1  ;;  %v771_v10 = vmax.f32 %v769_v50, %v770_v58  ;;  %v778_v12 = vmax.f32 %v776_v51, %v777_v59 }
 0x120   :  { %v575_v52 = vadd.f32 %v574_v49, %v3122_v1 }
 0x121   :  { %v693_v53 = vmul.f32 %v3159_v47, %v526_v48  ;;  %v772_v14 = vrot.slane %v771_v10, 1  ;;  %v779_v24 = vrot.slane %v778_v12, 1 }
 0x122   :  { %v694_v54 = vmul.f32 %v3159_v47, %v575_v52 }
 0x123   :  { %v773_v31 = vmax.f32 %v771_v10, %v772_v14  ;;  %v780_v32 = vmax.f32 %v778_v12, %v779_v24 }
 0x124   :  { %v3174_v61 = vpack.c.bf16 %v694_v54, %v693_v53 }
 0x125   :  { %v879_v44 = vpack.c.bf16 %v773_v31, %v773_v31  ;;  %v880_v46 = vpack.c.bf16 %v780_v32, %v780_v32 }
 0x126   :  { %v741_v6 = vunpack.c.l.bf16 %v3174_v61  ;;  %v742_v7 = vunpack.c.h.bf16 %v3174_v61 }
 0x127   :  { %v943_v63 = vunpack.c.l.b16 %v879_v44 }
 0x128   :  { %v781_v8 = vmax.f32 %v739_v4, %v741_v6  ;;  %v788_v13 = vmax.f32 %v740_v5, %v742_v7  ;;  %v528_v16 = vpop.f32.mrf.mxu0  ;;  %v577_v18 = vpop.f32.mrf.mxu1  ;;  %v944_v4 = vunpack.c.l.b16 %v880_v46 }
 0x129   :  { %v529_v19 = vadd.f32 %v528_v16, %v3120_v60  ;;  %v578_v20 = vadd.f32 %v577_v18, %v3122_v1  ;;  %v2347_v16 = vld [vmem:[%s3968_s7 + $0xe0] sm:$0xf]  ;;  %v3219_v46 = vpop.permute.xlu1 %644 }
 0x12a   :  { %v782_v22 = vrot.slane %v781_v8, 4  ;;  %v789_v2 = vrot.slane %v788_v13, 4  ;;  %3982 = vst [vmem:[#allocation5_spill] sm:$0xff] %v3219_v46 }
 0x12b   :  { %v695_v11 = vmul.f32 %v3183_v9, %v529_v19  ;;  %v696_v23 = vmul.f32 %v3183_v9, %v578_v20 }
 0x12c   :  { %v783_v25 = vmax.f32 %v781_v8, %v782_v22  ;;  %v790_v26 = vmax.f32 %v788_v13, %v789_v2  ;;  %v2283_v8 = vld [vmem:[%s3968_s7 + $0x60] sm:$0xf]  ;;  %v2582_v13 = vld [vmem:[%s3968_s7 + $0x64] sm:$0xf0] }
 0x12d   :  { %v723_v27 = vpack.c.bf16 %v696_v23, %v695_v11  ;;  %v2284_v2 = vor.u32 %v2582_v13, %v2283_v8  ;;  %v2598_v11 = vld [vmem:[%s3968_s7 + $0xe4] sm:$0xf0] }
 0x12e   :  { %v784_v28 = vrot.slane %v783_v25, 2  ;;  %v791_v30 = vrot.slane %v790_v26, 2  ;;  %v2348_v23 = vor.u32 %v2598_v11, %v2347_v16 }
 0x12f   :  { %v743_v50 = vunpack.c.l.bf16 %v723_v27  ;;  %v744_v51 = vunpack.c.h.bf16 %v723_v27  ;;  %v1252_v55 = vunpack.c.l.b16 %v723_v27  ;;  %v1253_v56 = vunpack.c.h.b16 %v723_v27  ;;  %1145 = vmatpush.bf16.msrb.mxu0 %v2284_v2  ;;  %v3213_v27 = vpop.permute.xlu0 %639 }
 0x130   :  { %v785_v33 = vmax.f32 %v783_v25, %v784_v28  ;;  %v792_v34 = vmax.f32 %v790_v26, %v791_v30  ;;  %v530_v36 = vpop.f32.mrf.mxu0  ;;  %v579_v37 = vpop.f32.mrf.mxu1  ;;  %1158 = vmatpush.bf16.msrb.mxu1 %v2348_v23 }
 0x131   :  { %v531_v38 = vadd.f32 %v530_v36, %v3120_v60  ;;  %v580_v40 = vadd.f32 %v579_v37, %v3122_v1 }
 0x132   :  { %v786_v39 = vrot.slane %v785_v33, 1  ;;  %v793_v41 = vrot.slane %v792_v34, 1 }
 0x133   :  { %v697_v42 = vmul.f32 %v3189_v15, %v531_v38  ;;  %v698_v43 = vmul.f32 %v3189_v15, %v580_v40 }
 0x134   :  { %v787_v48 = vmax.f32 %v785_v33, %v786_v39  ;;  %v794_v49 = vmax.f32 %v792_v34, %v793_v41 }
 0x135   :  { %v724_v52 = vpack.c.bf16 %v698_v43, %v697_v42 }
 0x136   :  { %v881_v53 = vpack.c.bf16 %v787_v48, %v787_v48  ;;  %v882_v54 = vpack.c.bf16 %v794_v49, %v794_v49 }
 0x137   :  { %v745_v57 = vunpack.c.l.bf16 %v724_v52  ;;  %v746_v58 = vunpack.c.h.bf16 %v724_v52  ;;  %v1254_v59 = vunpack.c.l.b16 %v724_v52  ;;  %v1255_v62 = vunpack.c.h.b16 %v724_v52 }
 0x138   :  { %v945_v0 = vunpack.c.l.b16 %v881_v53  ;;  %v946_v5 = vunpack.c.l.b16 %v882_v54  ;;  %v2275_v54 = vld [vmem:[%s3968_s7 + $0x50] sm:$0xf] }
 0x139   :  { %v795_v6 = vmax.f32 %v743_v50, %v745_v57  ;;  %v802_v7 = vmax.f32 %v744_v51, %v746_v58  ;;  %v3195_v10 = vpack.c.b16 %v1254_v59, %v1252_v55  ;;  %v3197_v12 = vpack.c.b16 %v1255_v62, %v1253_v56  ;;  %v2580_v55 = vld [vmem:[%s3968_s7 + $0x54] sm:$0xf0]  ;;  %v2339_v56 = vld [vmem:[%s3968_s7 + $0xd0] sm:$0xf] }
 0x13a   :  { %v960_v18 = vsel %vm959_vm0, %v945_v0, %v943_v63  ;;  %v973_v19 = vsel %vm959_vm0, %v946_v5, %v944_v4  ;;  %v2276_v57 = vor.u32 %v2580_v55, %v2275_v54  ;;  %v2596_v58 = vld [vmem:[%s3968_s7 + $0xd4] sm:$0xf0] }
 0x13b   :  { %v796_v20 = vrot.slane %v795_v6, 4  ;;  %v803_v22 = vrot.slane %v802_v7, 4  ;;  %v2340_v4 = vor.u32 %v2596_v58, %v2339_v56 }
 0x13c   :  { %1146 = vmatpush.bf16.msrb.mxu0 %v2276_v57 }
 0x13d   :  { %v797_v14 = vmax.f32 %v795_v6, %v796_v20  ;;  %v804_v24 = vmax.f32 %v802_v7, %v803_v22  ;;  %1159 = vmatpush.bf16.msrb.mxu1 %v2340_v4 }
 0x13f   :  { %v798_v25 = vrot.slane %v797_v14, 2  ;;  %v805_v26 = vrot.slane %v804_v24, 2 }
 0x141   :  { %v799_v28 = vmax.f32 %v797_v14, %v798_v25  ;;  %v806_v30 = vmax.f32 %v804_v24, %v805_v26  ;;  %v533_v31 = vpop.f32.mrf.mxu0  ;;  %v582_v32 = vpop.f32.mrf.mxu1 }
 0x142   :  { %v534_v33 = vadd.f32 %v533_v31, %v3120_v60  ;;  %v583_v34 = vadd.f32 %v582_v32, %v3122_v1 }
 0x143   :  { %v800_v36 = vrot.slane %v799_v28, 1  ;;  %v807_v37 = vrot.slane %v806_v30, 1 }
 0x144   :  { %v699_v38 = vmul.f32 %v3213_v27, %v534_v33  ;;  %v700_v40 = vmul.f32 %v3213_v27, %v583_v34  ;;  %v3249_v33 = vpop.permute.xlu2 %649 }
 0x145   :  { %v801_v39 = vmax.f32 %v799_v28, %v800_v36  ;;  %v808_v41 = vmax.f32 %v806_v30, %v807_v37  ;;  %3983 = vst [vmem:[#allocation6_spill] sm:$0xff] %v3249_v33 }
 0x146   :  { %v725_v42 = vpack.c.bf16 %v700_v40, %v699_v38 }
 0x147   :  { %v883_v43 = vpack.c.bf16 %v801_v39, %v801_v39  ;;  %v884_v44 = vpack.c.bf16 %v808_v41, %v808_v41  ;;  %v3253_v41 = vpop.permute.xlu0 %654 }
 0x148   :  { %v747_v6 = vunpack.c.l.bf16 %v725_v42  ;;  %v748_v7 = vunpack.c.h.bf16 %v725_v42  ;;  %v1256_v8 = vunpack.c.l.b16 %v725_v42  ;;  %v1257_v13 = vunpack.c.h.b16 %v725_v42  ;;  %3984 = vst [vmem:[#allocation7_spill] sm:$0xff] %v3253_v41  ;;  %v2267_v42 = vld [vmem:[%s3968_s7 + $0x40] sm:$0xf] }
 0x149   :  { %v535_v48 = vpop.f32.mrf.mxu0  ;;  %v584_v49 = vpop.f32.mrf.mxu1  ;;  %v947_v50 = vunpack.c.l.b16 %v883_v43  ;;  %v948_v51 = vunpack.c.l.b16 %v884_v44  ;;  %v2578_v43 = vld [vmem:[%s3968_s7 + $0x44] sm:$0xf0]  ;;  %v2331_v44 = vld [vmem:[%s3968_s7 + $0xc0] sm:$0xf] }
 0x14a   :  { %v536_v52 = vadd.f32 %v535_v48, %v3120_v60  ;;  %v585_v53 = vadd.f32 %v584_v49, %v3122_v1 }
 0x14b   :  { %v3236_v59 = vsel %vm961_vm1, %v947_v50, %v960_v18  ;;  %v3239_v62 = vsel %vm961_vm1, %v948_v51, %v973_v19  ;;  %v2268_v50 = vor.u32 %v2578_v43, %v2267_v42  ;;  %v2594_v51 = vld [vmem:[%s3968_s7 + $0xc4] sm:$0xf0]  ;;  %v2599_v42 = vld [vmem:[%s3968_s7 + $0xf4] sm:$0xf]  ;;  %v2357_v43 = vld [vmem:[%s3968_s7 + $0xf8] sm:$0xf0] }
 0x14c   :  { %v701_v63 = vmul.f32 %v3219_v46, %v536_v52  ;;  %v702_v0 = vmul.f32 %v3219_v46, %v585_v53  ;;  %v2332_v54 = vor.u32 %v2594_v51, %v2331_v44  ;;  %v2574_v51 = vld [vmem:[%s3968_s7 + $0x24] sm:$0xf0] }
 0x14d   :  { %1147 = vmatpush.bf16.msrb.mxu0 %v2268_v50  ;;  %v2251_v50 = vld [vmem:[%s3968_s7 + $0x20] sm:$0xf] }
 0x14e   :  { %v726_v5 = vpack.c.bf16 %v702_v0, %v701_v63  ;;  %1160 = vmatpush.bf16.msrb.mxu1 %v2332_v54 }
 0x150   :  { %v749_v16 = vunpack.c.l.bf16 %v726_v5  ;;  %v750_v20 = vunpack.c.h.bf16 %v726_v5  ;;  %v1258_v22 = vunpack.c.l.b16 %v726_v5  ;;  %v1259_v18 = vunpack.c.h.b16 %v726_v5 }
 0x152   :  { %v809_v2 = vmax.f32 %v747_v6, %v749_v16  ;;  %v816_v11 = vmax.f32 %v748_v7, %v750_v20  ;;  %v3243_v19 = vpack.c.b16 %v1258_v22, %v1256_v8  ;;  %v3245_v23 = vpack.c.b16 %v1259_v18, %v1257_v13  ;;  %v2259_v6 = vld [vmem:[%s3968_s7 + $0x30] sm:$0xf]  ;;  %v2576_v7 = vld [vmem:[%s3968_s7 + $0x34] sm:$0xf0] }
 0x153   :  { %v538_v14 = vpop.f32.mrf.mxu0  ;;  %v587_v24 = vpop.f32.mrf.mxu1  ;;  %v2323_v8 = vld [vmem:[%s3968_s7 + $0xb0] sm:$0xf]  ;;  %v2260_v16 = vor.u32 %v2576_v7, %v2259_v6  ;;  %v2592_v20 = vld [vmem:[%s3968_s7 + $0xb4] sm:$0xf0] }
 0x154   :  { %v810_v25 = vrot.slane %v809_v2, 4  ;;  %v817_v26 = vrot.slane %v816_v11, 4  ;;  %v539_v31 = vadd.f32 %v538_v14, %v3120_v60  ;;  %v588_v32 = vadd.f32 %v587_v24, %v3122_v1 }
 0x155   :  { %v2324_v18 = vor.u32 %v2592_v20, %v2323_v8  ;;  %1148 = vmatpush.bf16.msrb.mxu0 %v2260_v16  ;;  %v2597_v8 = vld [vmem:[%s3968_s7 + $0xe4] sm:$0xf]  ;;  %v3347_v16 = vpop.permute.xlu2 %664 }
 0x156   :  { %v811_v28 = vmax.f32 %v809_v2, %v810_v25  ;;  %v818_v30 = vmax.f32 %v816_v11, %v817_v26  ;;  %v703_v40 = vmul.f32 %v3249_v33, %v539_v31  ;;  %v704_v39 = vmul.f32 %v3249_v33, %v588_v32  ;;  %3986 = vst [vmem:[#allocation9_spill] sm:$0xff] %v3347_v16 }
 0x157   :  { %1161 = vmatpush.bf16.msrb.mxu1 %v2324_v18 }
 0x158   :  { %v812_v34 = vrot.slane %v811_v28, 2  ;;  %v819_v36 = vrot.slane %v818_v30, 2  ;;  %v3269_v57 = vpack.c.bf16 %v704_v39, %v703_v40  ;;  %v3305_v40 = vpop.permute.xlu1 %659  ;;  %v2293_v39 = vld [vmem:[%s3968_s7 + $0x78] sm:$0xf0] }
 0x159   :  { %3985 = vst [vmem:[#allocation8_spill] sm:$0xff] %v3305_v40 }
 0x15a   :  { %v813_v37 = vmax.f32 %v811_v28, %v812_v34  ;;  %v820_v38 = vmax.f32 %v818_v30, %v819_v36  ;;  %v1260_v11 = vunpack.c.l.b16 %v3269_v57  ;;  %v1261_v25 = vunpack.c.h.b16 %v3269_v57 }
 0x15b   :  { %v540_v48 = vpop.f32.mrf.mxu0  ;;  %v589_v49 = vpop.f32.mrf.mxu1 }
 0x15c   :  { %v541_v52 = vadd.f32 %v540_v48, %v3120_v60  ;;  %v590_v53 = vadd.f32 %v589_v49, %v3122_v1  ;;  %v814_v55 = vrot.slane %v813_v37, 1  ;;  %v821_v56 = vrot.slane %v820_v38, 1 }
 0x15d   :  { %v2360_v49 = vor.u32 %v2599_v42, %v2357_v43 }
 0x15e   :  { %v705_v58 = vmul.f32 %v3253_v41, %v541_v52  ;;  %v706_v63 = vmul.f32 %v3253_v41, %v590_v53  ;;  %v815_v0 = vmax.f32 %v813_v37, %v814_v55  ;;  %v822_v4 = vmax.f32 %v820_v38, %v821_v56  ;;  %v2315_v52 = vld [vmem:[%s3968_s7 + $0xa0] sm:$0xf]  ;;  %v2590_v56 = vld [vmem:[%s3968_s7 + $0xa4] sm:$0xf0] }
 0x15f   :  { %v2252_v55 = vor.u32 %v2574_v51, %v2251_v50  ;;  %1183 = vmatpush.bf16.msra.mxu3 %v2360_v49  ;;  %v2316_v6 = vor.u32 %v2590_v56, %v2315_v52  ;;  %v2577_v49 = vld [vmem:[%s3968_s7 + $0x44] sm:$0xf] }
 0x160   :  { %v3273_v5 = vpack.c.bf16 %v706_v63, %v705_v58  ;;  %v885_v13 = vpack.c.bf16 %v815_v0, %v815_v0  ;;  %v886_v22 = vpack.c.bf16 %v822_v4, %v822_v4  ;;  %v2581_v58 = vld [vmem:[%s3968_s7 + $0x64] sm:$0xf]  ;;  %v2285_v63 = vld [vmem:[%s3968_s7 + $0x68] sm:$0xf0] }
 0x161   :  { %v2288_v7 = vor.u32 %v2581_v58, %v2285_v63  ;;  %1149 = vmatpush.bf16.msrb.mxu0 %v2252_v55  ;;  %1162 = vmatpush.bf16.msrb.mxu1 %v2316_v6  ;;  %v2593_v50 = vld [vmem:[%s3968_s7 + $0xc4] sm:$0xf] }
 0x162   :  { %v949_v2 = vunpack.c.l.b16 %v885_v13  ;;  %v950_v14 = vunpack.c.l.b16 %v886_v22  ;;  %v1262_v24 = vunpack.c.l.b16 %v3273_v5  ;;  %v1263_v26 = vunpack.c.h.b16 %v3273_v5  ;;  %v2349_v13 = vld [vmem:[%s3968_s7 + $0xe8] sm:$0xf0] }
 0x163   :  { %v2352_v20 = vor.u32 %v2597_v8, %v2349_v13  ;;  %v2575_v8 = vld [vmem:[%s3968_s7 + $0x34] sm:$0xf]  ;;  %v2261_v13 = vld [vmem:[%s3968_s7 + $0x38] sm:$0xf0] }
 0x164   :  { %v3293_v28 = vsel %vm963_vm2, %v949_v2, %v3236_v59  ;;  %v3297_v32 = vsel %vm963_vm2, %v950_v14, %v3239_v62  ;;  %v3299_v34 = vpack.c.b16 %v1262_v24, %v1260_v11  ;;  %v3301_v36 = vpack.c.b16 %v1263_v26, %v1261_v25  ;;  %v2583_v59 = vld [vmem:[%s3968_s7 + $0x74] sm:$0xf]  ;;  %v2277_v26 = vld [vmem:[%s3968_s7 + $0x58] sm:$0xf0] }
 0x165   :  { %v543_v30 = vpop.f32.mrf.mxu0  ;;  %v592_v31 = vpop.f32.mrf.mxu1  ;;  %v2296_v62 = vor.u32 %v2583_v59, %v2293_v39  ;;  %v753_v11 = vunpack.c.l.bf16 %v3273_v5  ;;  %v754_v14 = vunpack.c.h.bf16 %v3273_v5  ;;  %1184 = vmatpush.bf16.msra.mxu3 %v2352_v20  ;;  %v2579_v25 = vld [vmem:[%s3968_s7 + $0x54] sm:$0xf] }
 0x166   :  { %v544_v37 = vadd.f32 %v543_v30, %v3120_v60  ;;  %v593_v38 = vadd.f32 %v592_v31, %v3122_v1  ;;  %v2595_v30 = vld [vmem:[%s3968_s7 + $0xd4] sm:$0xf]  ;;  %v751_v31 = vunpack.c.l.bf16 %v3269_v57  ;;  %v2280_v5 = vor.u32 %v2579_v25, %v2277_v26 }
 0x167   :  { %1170 = vmatpush.bf16.msra.mxu2 %v2296_v62  ;;  %v2591_v20 = vld [vmem:[%s3968_s7 + $0xb4] sm:$0xf] }
 0x168   :  { %v707_v44 = vmul.f32 %v3305_v40, %v544_v37  ;;  %v708_v48 = vmul.f32 %v3305_v40, %v593_v38  ;;  %v752_v37 = vunpack.c.h.bf16 %v3269_v57  ;;  %v2341_v38 = vld [vmem:[%s3968_s7 + $0xd8] sm:$0xf0]  ;;  %v823_v42 = vmax.f32 %v751_v31, %v753_v11  ;;  %v2269_v57 = vld [vmem:[%s3968_s7 + $0x48] sm:$0xf0] }
 0x169   :  { %v2344_v59 = vor.u32 %v2595_v30, %v2341_v38  ;;  %v2272_v52 = vor.u32 %v2577_v49, %v2269_v57  ;;  %v2253_v38 = vld [vmem:[%s3968_s7 + $0x28] sm:$0xf0] }
 0x16a   :  { %v729_v22 = vpack.c.bf16 %v708_v48, %v707_v44  ;;  %v830_v43 = vmax.f32 %v752_v37, %v754_v14  ;;  %v824_v56 = vrot.slane %v823_v42, 4  ;;  %v2264_v14 = vor.u32 %v2575_v8, %v2261_v13  ;;  %v2588_v8 = vld [vmem:[%s3968_s7 + $0x94] sm:$0xf0]  ;;  %v2571_v13 = vld [vmem:[%s3968_s7 + $0x14] sm:$0xf] }
 0x16b   :  { %1171 = vmatpush.bf16.msra.mxu2 %v2288_v7  ;;  %1185 = vmatpush.bf16.msra.mxu3 %v2344_v59  ;;  %v2589_v59 = vld [vmem:[%s3968_s7 + $0xa4] sm:$0xf] }
 0x16c   :  { %v1264_v39 = vunpack.c.l.b16 %v729_v22  ;;  %v1265_v44 = vunpack.c.h.b16 %v729_v22  ;;  %v831_v58 = vrot.slane %v830_v43, 4  ;;  %v755_v7 = vunpack.c.l.bf16 %v729_v22 }
 0x16d   :  { %v545_v53 = vpop.f32.mrf.mxu0  ;;  %v594_v54 = vpop.f32.mrf.mxu1  ;;  %v3397_v26 = vmax.f32 %v823_v42, %v824_v56 }
 0x16e   :  { %v546_v0 = vadd.f32 %v545_v53, %v3120_v60  ;;  %v595_v4 = vadd.f32 %v594_v54, %v3122_v1  ;;  %v2333_v53 = vld [vmem:[%s3968_s7 + $0xc8] sm:$0xf0]  ;;  %v3399_v30 = vmax.f32 %v830_v43, %v831_v58  ;;  %v2243_v58 = vld [vmem:[%s3968_s7 + $0x10] sm:$0xf] }
 0x16f   :  { %1172 = vmatpush.bf16.msra.mxu2 %v2280_v5  ;;  %v2336_v55 = vor.u32 %v2593_v50, %v2333_v53  ;;  %v3403_v5 = vpop.permute.xlu0 %669  ;;  %v2317_v43 = vld [vmem:[%s3968_s7 + $0xa8] sm:$0xf0] }
 0x170   :  { %v709_v18 = vmul.f32 %v3347_v16, %v546_v0  ;;  %v710_v2 = vmul.f32 %v3347_v16, %v595_v4  ;;  %3987 = vst [vmem:[#allocation10_spill] sm:$0xff] %v3403_v5  ;;  %v833_v49 = vrot.slane %v3399_v30, 2 }
 0x171   :  { %1186 = vmatpush.bf16.msra.mxu3 %v2336_v55 }
 0x172   :  { %v730_v24 = vpack.c.bf16 %v710_v2, %v709_v18  ;;  %v756_v18 = vunpack.c.h.bf16 %v729_v22  ;;  %v2573_v22 = vld [vmem:[%s3968_s7 + $0x24] sm:$0xf] }
 0x173   :  { %1173 = vmatpush.bf16.msra.mxu2 %v2272_v52  ;;  %v2256_v42 = vor.u32 %v2573_v22, %v2253_v38  ;;  %v2235_v22 = vld [vmem:[%s3968_s7] sm:$0xf] }
 0x174   :  { %v1266_v62 = vunpack.c.l.b16 %v730_v24  ;;  %v1267_v48 = vunpack.c.h.b16 %v730_v24  ;;  %v757_v63 = vunpack.c.l.bf16 %v730_v24  ;;  %v758_v0 = vunpack.c.h.bf16 %v730_v24  ;;  %v2325_v24 = vld [vmem:[%s3968_s7 + $0xb8] sm:$0xf0] }
 0x175   :  { %v2328_v25 = vor.u32 %v2591_v20, %v2325_v24  ;;  %v2245_v20 = vld [vmem:[%s3968_s7 + $0x18] sm:$0xf0]  ;;  %v2587_v24 = vld [vmem:[%s3968_s7 + $0x94] sm:$0xf] }
 0x176   :  { %v3376_v51 = vpack.c.b16 %v1266_v62, %v1264_v39  ;;  %v3381_v54 = vpack.c.b16 %v1267_v48, %v1265_v44  ;;  %v837_v31 = vmax.f32 %v755_v7, %v757_v63  ;;  %v3401_v37 = vmax.f32 %v756_v18, %v758_v0  ;;  %v2572_v63 = vld [vmem:[%s3968_s7 + $0x14] sm:$0xf0]  ;;  %v2307_v0 = vld [vmem:[%s3968_s7 + $0x90] sm:$0xf] }
 0x177   :  { %1174 = vmatpush.bf16.msra.mxu2 %v2264_v14  ;;  %1187 = vmatpush.bf16.msra.mxu3 %v2328_v25  ;;  %v2320_v44 = vor.u32 %v2589_v59, %v2317_v43  ;;  %v826_v48 = vrot.slane %v3397_v26, 2  ;;  %v2244_v7 = vor.u32 %v2572_v63, %v2243_v58  ;;  %v2248_v14 = vor.u32 %v2571_v13, %v2245_v20  ;;  %v2309_v25 = vld [vmem:[%s3968_s7 + $0x98] sm:$0xf0]  ;;  %v2570_v59 = vld [vmem:[%s3968_s7 + $0x4] sm:$0xf0] }
 0x178   :  { %v838_v57 = vrot.slane %v837_v31, 4  ;;  %v845_v50 = vrot.slane %v3401_v37, 4  ;;  %v2312_v38 = vor.u32 %v2587_v24, %v2309_v25  ;;  %v2236_v43 = vor.u32 %v2570_v59, %v2235_v22  ;;  %v2616_v13 = vld [vmem:[%s3967_s6 + $0x74] sm:$0xf0]  ;;  %v2421_v25 = vld [vmem:[%s3967_s6 + $0x78] sm:$0xf0] }
 0x179   :  { %v548_v4 = vpop.f32.mrf.mxu0  ;;  %v597_v6 = vpop.f32.mrf.mxu1  ;;  %1150 = vmatpush.bf16.msrb.mxu0 %v2244_v7  ;;  %v2301_v7 = vld [vmem:[%s3968_s7 + $0x88] sm:$0xf0]  ;;  %v2631_v22 = vld [vmem:[%s3967_s6 + $0xf4] sm:$0xf] }
 0x17a   :  { %v549_v2 = vadd.f32 %v548_v4, %v3120_v60  ;;  %v598_v11 = vadd.f32 %v597_v6, %v3122_v1  ;;  %v3435_v6 = vpop.permute.xlu1 %674 }
 0x17b   :  { %1175 = vmatpush.bf16.msra.mxu2 %v2256_v42  ;;  %1188 = vmatpush.bf16.msra.mxu3 %v2320_v44  ;;  %3988 = vst [vmem:[#allocation11_spill] sm:$0xff] %v3435_v6 }
 0x17c   :  { %v711_v39 = vmul.f32 %v3403_v5, %v549_v2  ;;  %v712_v62 = vmul.f32 %v3403_v5, %v598_v11  ;;  %v2308_v11 = vor.u32 %v2588_v8, %v2307_v0  ;;  %v2419_v8 = vld [vmem:[%s3967_s6 + $0x70] sm:$0xf] }
 0x17d   :  { %1151 = vmatpush.bf16.msrb.mxu0 %v2236_v43 }
 0x17e   :  { %v3433_v4 = vpack.c.bf16 %v712_v62, %v711_v39  ;;  %v2299_v39 = vld [vmem:[%s3968_s7 + $0x80] sm:$0xf]  ;;  %v2586_v62 = vld [vmem:[%s3968_s7 + $0x84] sm:$0xf0]  ;;  %1163 = vmatpush.bf16.msrb.mxu1 %v2308_v11  ;;  %v2632_v11 = vld [vmem:[%s3967_s6 + $0xf4] sm:$0xf0] }
 0x17f   :  { %1176 = vmatpush.bf16.msra.mxu2 %v2248_v14  ;;  %v2300_v44 = vor.u32 %v2586_v62, %v2299_v39  ;;  %1189 = vmatpush.bf16.msra.mxu3 %v2312_v38  ;;  %v2615_v14 = vld [vmem:[%s3967_s6 + $0x74] sm:$0xf]  ;;  %v2485_v38 = vld [vmem:[%s3967_s6 + $0xf8] sm:$0xf0] }
 0x180   :  { %v759_v58 = vunpack.c.l.bf16 %v3433_v4  ;;  %v760_v63 = vunpack.c.h.bf16 %v3433_v4  ;;  %v1268_v59 = vunpack.c.l.b16 %v3433_v4  ;;  %v2424_v43 = vor.u32 %v2615_v14, %v2421_v25 }
 0x181   :  { %v550_v52 = vpop.f32.mrf.mxu0  ;;  %v599_v53 = vpop.f32.mrf.mxu1 }
 0x182   :  { %v551_v55 = vadd.f32 %v550_v52, %v3120_v60  ;;  %v600_v56 = vadd.f32 %v599_v53, %v3122_v1  ;;  %v2569_v52 = vld [vmem:[%s3968_s7 + $0x4] sm:$0xf]  ;;  %v2237_v53 = vld [vmem:[%s3968_s7 + $0x8] sm:$0xf0]  ;;  %1164 = vmatpush.bf16.msrb.mxu1 %v2300_v44  ;;  %v2630_v44 = vld [vmem:[%s3967_s6 + $0xe4] sm:$0xf0]  ;;  %1566 = vmatpush.bf16.msra.mxu0 %v2424_v43 }
 0x183   :  { %v2240_v0 = vor.u32 %v2569_v52, %v2237_v53  ;;  %v2411_v53 = vld [vmem:[%s3967_s6 + $0x60] sm:$0xf]  ;;  %v2405_v43 = vld [vmem:[%s3967_s6 + $0x58] sm:$0xf0] }
 0x184   :  { %v713_v18 = vmul.f32 %v3435_v6, %v551_v55  ;;  %v714_v2 = vmul.f32 %v3435_v6, %v600_v56  ;;  %v2585_v55 = vld [vmem:[%s3968_s7 + $0x84] sm:$0xf]  ;;  %v3475_v56 = vmax.f32 %v837_v31, %v838_v57 }
 0x185   :  { %v2304_v20 = vor.u32 %v2585_v55, %v2301_v7  ;;  %1177 = vmatpush.bf16.msra.mxu2 %v2240_v0  ;;  %v2614_v55 = vld [vmem:[%s3967_s6 + $0x64] sm:$0xf0]  ;;  %v2475_v7 = vld [vmem:[%s3967_s6 + $0xe0] sm:$0xf]  ;;  %v2613_v0 = vld [vmem:[%s3967_s6 + $0x64] sm:$0xf] }
 0x186   :  { %v732_v42 = vpack.c.bf16 %v714_v2, %v713_v18  ;;  %v2420_v18 = vor.u32 %v2616_v13, %v2419_v8  ;;  %v2483_v2 = vld [vmem:[%s3967_s6 + $0xf0] sm:$0xf]  ;;  %v2413_v13 = vld [vmem:[%s3967_s6 + $0x68] sm:$0xf0]  ;;  %v840_v14 = vrot.slane %v3475_v56, 2 }
 0x187   :  { %v2484_v24 = vor.u32 %v2632_v11, %v2483_v2  ;;  %1190 = vmatpush.bf16.msra.mxu3 %v2304_v20  ;;  %v2476_v20 = vor.u32 %v2630_v44, %v2475_v7  ;;  %v2629_v2 = vld [vmem:[%s3967_s6 + $0xe4] sm:$0xf]  ;;  %v2477_v11 = vld [vmem:[%s3967_s6 + $0xe8] sm:$0xf0]  ;;  %v2627_v7 = vld [vmem:[%s3967_s6 + $0xd4] sm:$0xf] }
 0x188   :  { %v761_v31 = vunpack.c.l.bf16 %v732_v42  ;;  %v762_v57 = vunpack.c.h.bf16 %v732_v42  ;;  %v1270_v39 = vunpack.c.l.b16 %v732_v42  ;;  %v1271_v8 = vunpack.c.h.b16 %v732_v42 }
 0x189   :  { %1468 = vmatpush.bf16.msrb.mxu2 %v2420_v18  ;;  %v1269_v42 = vunpack.c.h.b16 %v3433_v4  ;;  %v2416_v18 = vor.u32 %v2613_v0, %v2413_v13  ;;  %v2480_v25 = vor.u32 %v2629_v2, %v2477_v11  ;;  %v2403_v4 = vld [vmem:[%s3967_s6 + $0x50] sm:$0xf]  ;;  %v2395_v0 = vld [vmem:[%s3967_s6 + $0x40] sm:$0xf]  ;;  %v2397_v2 = vld [vmem:[%s3967_s6 + $0x48] sm:$0xf0]  ;;  %v3585_v11 = vmax.f32 %v3397_v26, %v826_v48 }
 0x18a   :  { %v851_v62 = vmax.f32 %v759_v58, %v761_v31  ;;  %v3507_v52 = vmax.f32 %v760_v63, %v762_v57  ;;  %v2488_v58 = vor.u32 %v2631_v22, %v2485_v38  ;;  %v2412_v63 = vor.u32 %v2614_v55, %v2411_v53  ;;  %v2467_v22 = vld [vmem:[%s3967_s6 + $0xd0] sm:$0xf]  ;;  %v2459_v13 = vld [vmem:[%s3967_s6 + $0xc0] sm:$0xf] }
 0x18b   :  { %v3527_v31 = vpack.c.b16 %v1270_v39, %v1268_v59  ;;  %1517 = vmatpush.bf16.msrb.mxu3 %v2484_v24  ;;  %v2612_v24 = vld [vmem:[%s3967_s6 + $0x54] sm:$0xf0]  ;;  %v3546_v38 = vpack.c.b16 %v1271_v8, %v1269_v42  ;;  %v2611_v39 = vld [vmem:[%s3967_s6 + $0x54] sm:$0xf]  ;;  %v2469_v8 = vld [vmem:[%s3967_s6 + $0xd8] sm:$0xf0]  ;;  %1567 = vmatpush.bf16.msra.mxu0 %v2416_v18 }
 0x18c   :  { %v852_v57 = vrot.slane %v851_v62, 4  ;;  %1615 = vmatpush.bf16.msra.mxu1 %v2488_v58  ;;  %v2628_v59 = vld [vmem:[%s3967_s6 + $0xd4] sm:$0xf0]  ;;  %v859_v53 = vrot.slane %v3507_v52, 4  ;;  %v2404_v55 = vor.u32 %v2612_v24, %v2403_v4  ;;  %v2408_v44 = vor.u32 %v2611_v39, %v2405_v43  ;;  %v2609_v18 = vld [vmem:[%s3967_s6 + $0x44] sm:$0xf] }
 0x18d   :  { %1469 = vmatpush.bf16.msrb.mxu2 %v2412_v63  ;;  %v2468_v58 = vor.u32 %v2628_v59, %v2467_v22  ;;  %v2610_v63 = vld [vmem:[%s3967_s6 + $0x44] sm:$0xf0]  ;;  %v2472_v42 = vor.u32 %v2627_v7, %v2469_v8  ;;  %v2625_v22 = vld [vmem:[%s3967_s6 + $0xc4] sm:$0xf]  ;;  %v2461_v59 = vld [vmem:[%s3967_s6 + $0xc8] sm:$0xf0]  ;;  %v3599_v39 = vmax.f32 %v3475_v56, %v840_v14  ;;  %v2400_v14 = vor.u32 %v2609_v18, %v2397_v2 }
 0x18e   :  { %v3601_v26 = vmax.f32 %v851_v62, %v852_v57  ;;  %v2396_v43 = vor.u32 %v2610_v63, %v2395_v0  ;;  %v3611_v7 = vmax.f32 %v3507_v52, %v859_v53  ;;  %v2464_v62 = vor.u32 %v2625_v22, %v2461_v59  ;;  %v3613_v57 = vpop.permute.xlu2 %679  ;;  %v2608_v63 = vld [vmem:[%s3967_s6 + $0x34] sm:$0xf0]  ;;  %v2607_v18 = vld [vmem:[%s3967_s6 + $0x34] sm:$0xf]  ;;  %v2389_v2 = vld [vmem:[%s3967_s6 + $0x38] sm:$0xf0] }
 0x18f   :  { %1518 = vmatpush.bf16.msrb.mxu3 %v2476_v20  ;;  %v2626_v20 = vld [vmem:[%s3967_s6 + $0xc4] sm:$0xf0]  ;;  %1568 = vmatpush.bf16.msra.mxu0 %v2408_v44  ;;  %3989 = vst [vmem:[#allocation12_spill] sm:$0xff] %v3613_v57  ;;  %v2387_v44 = vld [vmem:[%s3967_s6 + $0x30] sm:$0xf]  ;;  %v2392_v59 = vor.u32 %v2607_v18, %v2389_v2 }
 0x190   :  { %1616 = vmatpush.bf16.msra.mxu1 %v2480_v25  ;;  %v3590_v25 = vmax.f32 %v3401_v37, %v845_v50  ;;  %v3606_v37 = vmax.f32 %v3399_v30, %v833_v49  ;;  %v2460_v56 = vor.u32 %v2626_v20, %v2459_v13  ;;  %v854_v53 = vrot.slane %v3601_v26, 2  ;;  %v2451_v13 = vld [vmem:[%s3967_s6 + $0xb0] sm:$0xf]  ;;  %v2624_v20 = vld [vmem:[%s3967_s6 + $0xb4] sm:$0xf0] }
 0x191   :  { %1470 = vmatpush.bf16.msrb.mxu2 %v2404_v55  ;;  %v2452_v22 = vor.u32 %v2624_v20, %v2451_v13  ;;  %v2443_v13 = vld [vmem:[%s3967_s6 + $0xa0] sm:$0xf]  ;;  %v2622_v20 = vld [vmem:[%s3967_s6 + $0xa4] sm:$0xf0]  ;;  %v2621_v18 = vld [vmem:[%s3967_s6 + $0xa4] sm:$0xf] }
 0x192   :  { %v553_v4 = vpop.f32.mrf.mxu0  ;;  %v602_v24 = vpop.f32.mrf.mxu1  ;;  %v847_v55 = vrot.slane %v3590_v25, 2 }
 0x193   :  { %v554_v48 = vadd.f32 %v553_v4, %v3120_v60  ;;  %v603_v50 = vadd.f32 %v602_v24, %v3122_v1  ;;  %1519 = vmatpush.bf16.msrb.mxu3 %v2468_v58  ;;  %v861_v58 = vrot.slane %v3611_v7, 2  ;;  %1569 = vmatpush.bf16.msra.mxu0 %v2400_v14 }
 0x194   :  { %1617 = vmatpush.bf16.msra.mxu1 %v2472_v42  ;;  %v2388_v42 = vor.u32 %v2608_v63, %v2387_v44  ;;  %v2606_v63 = vld [vmem:[%s3967_s6 + $0x24] sm:$0xf0] }
 0x195   :  { %v715_v0 = vmul.f32 %v3613_v57, %v554_v48  ;;  %v716_v52 = vmul.f32 %v3613_v57, %v603_v50  ;;  %1471 = vmatpush.bf16.msrb.mxu2 %v2396_v43  ;;  %v2623_v48 = vld [vmem:[%s3967_s6 + $0xb4] sm:$0xf]  ;;  %v2453_v50 = vld [vmem:[%s3967_s6 + $0xb8] sm:$0xf0]  ;;  %v2379_v43 = vld [vmem:[%s3967_s6 + $0x20] sm:$0xf] }
 0x196   :  { %v2456_v44 = vor.u32 %v2623_v48, %v2453_v50  ;;  %v2604_v48 = vld [vmem:[%s3967_s6 + $0x14] sm:$0xf0]  ;;  %v855_v50 = vmax.f32 %v3601_v26, %v854_v53  ;;  %v862_v26 = vmax.f32 %v3611_v7, %v861_v58  ;;  %v2619_v53 = vld [vmem:[%s3967_s6 + $0x94] sm:$0xf]  ;;  %v2363_v58 = vld [vmem:[%s3967_s6] sm:$0xf] }
 0x197   :  { %1520 = vmatpush.bf16.msrb.mxu3 %v2460_v56  ;;  %v3650_v56 = vpack.c.bf16 %v716_v52, %v715_v0  ;;  %v3663_v0 = vpop.permute.xlu0 %684  ;;  %1570 = vmatpush.bf16.msra.mxu0 %v2392_v59  ;;  %v2605_v52 = vld [vmem:[%s3967_s6 + $0x24] sm:$0xf]  ;;  %v2371_v59 = vld [vmem:[%s3967_s6 + $0x10] sm:$0xf] }
 0x198   :  { %1618 = vmatpush.bf16.msra.mxu1 %v2464_v62  ;;  %3990 = vst [vmem:[#allocation13_spill] sm:$0xff] %v3663_v0  ;;  %v863_v5 = vrot.slane %v862_v26, 1 }
 0x199   :  { %1472 = vmatpush.bf16.msrb.mxu2 %v2388_v42  ;;  %v2381_v42 = vld [vmem:[%s3967_s6 + $0x28] sm:$0xf0] }
 0x19a   :  { %v555_v4 = vpop.f32.mrf.mxu0  ;;  %v604_v24 = vpop.f32.mrf.mxu1 }
 0x19b   :  { %v556_v14 = vadd.f32 %v555_v4, %v3120_v60  ;;  %v605_v62 = vadd.f32 %v604_v24, %v3122_v1  ;;  %1521 = vmatpush.bf16.msrb.mxu3 %v2452_v22  ;;  %v2380_v60 = vor.u32 %v2606_v63, %v2379_v43  ;;  %v2444_v1 = vor.u32 %v2622_v20, %v2443_v13  ;;  %v2445_v22 = vld [vmem:[%s3967_s6 + $0xa8] sm:$0xf0]  ;;  %v2603_v63 = vld [vmem:[%s3967_s6 + $0x14] sm:$0xf] }
 0x19c   :  { %1619 = vmatpush.bf16.msra.mxu1 %v2456_v44  ;;  %v2384_v24 = vor.u32 %v2605_v52, %v2381_v42  ;;  %v848_v43 = vmax.f32 %v3590_v25, %v847_v55  ;;  %v2620_v44 = vld [vmem:[%s3967_s6 + $0x94] sm:$0xf0]  ;;  %v763_v13 = vunpack.c.l.bf16 %v3650_v56  ;;  %v2372_v25 = vor.u32 %v2604_v48, %v2371_v59  ;;  %v2373_v55 = vld [vmem:[%s3967_s6 + $0x18] sm:$0xf0]  ;;  %v2601_v48 = vld [vmem:[%s3967_s6 + $0x4] sm:$0xf] }
 0x19d   :  { %v717_v2 = vmul.f32 %v3663_v0, %v556_v14  ;;  %v718_v4 = vmul.f32 %v3663_v0, %v605_v62  ;;  %v2448_v14 = vor.u32 %v2621_v18, %v2445_v22  ;;  %v2435_v62 = vld [vmem:[%s3967_s6 + $0x90] sm:$0xf]  ;;  %1473 = vmatpush.bf16.msrb.mxu2 %v2380_v60  ;;  %v2437_v52 = vld [vmem:[%s3967_s6 + $0x98] sm:$0xf0]  ;;  %v764_v42 = vunpack.c.h.bf16 %v3650_v56  ;;  %v2602_v60 = vld [vmem:[%s3967_s6 + $0x4] sm:$0xf0] }
 0x19e   :  { %1571 = vmatpush.bf16.msra.mxu0 %v2384_v24  ;;  %v2436_v18 = vor.u32 %v2620_v44, %v2435_v62  ;;  %v2376_v7 = vor.u32 %v2603_v63, %v2373_v55  ;;  %v2618_v24 = vld [vmem:[%s3967_s6 + $0x84] sm:$0xf0]  ;;  %v2365_v62 = vld [vmem:[%s3967_s6 + $0x8] sm:$0xf0]  ;;  %v856_v63 = vrot.slane %v855_v50, 1  ;;  %v849_v55 = vrot.slane %v848_v43, 1 }
 0x19f   :  { %v734_v20 = vpack.c.bf16 %v718_v4, %v717_v2  ;;  %1522 = vmatpush.bf16.msrb.mxu3 %v2444_v1  ;;  %v2427_v2 = vld [vmem:[%s3967_s6 + $0x80] sm:$0xf]  ;;  %v1272_v4 = vunpack.c.l.b16 %v3650_v56  ;;  %v2440_v1 = vor.u32 %v2619_v53, %v2437_v52  ;;  %v2429_v53 = vld [vmem:[%s3967_s6 + $0x88] sm:$0xf0]  ;;  %v1273_v52 = vunpack.c.h.b16 %v3650_v56 }
 0x1a0   :  { %1620 = vmatpush.bf16.msra.mxu1 %v2448_v14  ;;  %v2617_v14 = vld [vmem:[%s3967_s6 + $0x84] sm:$0xf]  ;;  %v2364_v0 = vor.u32 %v2602_v60, %v2363_v58  ;;  %v2428_v6 = vor.u32 %v2618_v24, %v2427_v2  ;;  %v2368_v40 = vor.u32 %v2601_v48, %v2365_v62  ;;  %v3991_v56 = vrot.slane %v3585_v11, 1 }
 0x1a1   :  { %v765_v22 = vunpack.c.l.bf16 %v734_v20  ;;  %v766_v59 = vunpack.c.h.bf16 %v734_v20  ;;  %v1274_v44 = vunpack.c.l.b16 %v734_v20  ;;  %v1275_v49 = vunpack.c.h.b16 %v734_v20  ;;  %1474 = vmatpush.bf16.msrb.mxu2 %v2372_v25 }
 0x1a2   :  { %1572 = vmatpush.bf16.msra.mxu0 %v2376_v7  ;;  %v2432_v46 = vor.u32 %v2617_v14, %v2429_v53  ;;  %v3992_v20 = vrot.slane %v3606_v37, 1  ;;  %v850_v58 = vmax.f32 %v848_v43, %v849_v55  ;;  %v857_v60 = vmax.f32 %v855_v50, %v856_v63 }
 0x1a3   :  { %v865_v8 = vmax.f32 %v763_v13, %v765_v22  ;;  %v872_v30 = vmax.f32 %v764_v42, %v766_v59  ;;  %v3734_v57 = vpack.c.b16 %v1274_v44, %v1272_v4  ;;  %1523 = vmatpush.bf16.msrb.mxu3 %v2436_v18  ;;  %v3736_v33 = vpack.c.b16 %v1275_v49, %v1273_v52 }
 0x1a4   :  { %1621 = vmatpush.bf16.msra.mxu1 %v2440_v1  ;;  %v829_v13 = vmax.f32 %v3585_v11, %v3991_v56  ;;  %v836_v25 = vmax.f32 %v3606_v37, %v3992_v20  ;;  %v3993_v42 = vrot.slane %v3599_v39, 1  ;;  %v864_v2 = vmax.f32 %v862_v26, %v863_v5 }
 0x1a5   :  { %v866_v16 = vrot.slane %v865_v8, 4  ;;  %v873_v41 = vrot.slane %v872_v30, 4  ;;  %1475 = vmatpush.bf16.msrb.mxu2 %v2364_v0  ;;  %v890_v48 = vpack.c.bf16 %v850_v58, %v850_v58  ;;  %v891_v62 = vpack.c.bf16 %v857_v60, %v857_v60 }
 0x1a6   :  { %v843_v18 = vmax.f32 %v3599_v39, %v3993_v42  ;;  %1573 = vmatpush.bf16.msra.mxu0 %v2368_v40  ;;  %v887_v11 = vpack.c.bf16 %v829_v13, %v829_v13  ;;  %v888_v59 = vpack.c.bf16 %v836_v25, %v836_v25  ;;  %v892_v44 = vpack.c.bf16 %v864_v2, %v864_v2 }
 0x1a7   :  { %v867_v7 = vmax.f32 %v865_v8, %v866_v16  ;;  %v874_v49 = vmax.f32 %v872_v30, %v873_v41  ;;  %1524 = vmatpush.bf16.msrb.mxu3 %v2428_v6  ;;  %v954_v40 = vunpack.c.l.b16 %v890_v48  ;;  %v955_v0 = vunpack.c.l.b16 %v891_v62  ;;  %v2638_v48 = vld [vmem:[%s3970_s9 + $0x28] sm:$0xff] }
 0x1a8   :  { %1622 = vmatpush.bf16.msra.mxu1 %v2432_v46  ;;  %v889_v24 = vpack.c.bf16 %v843_v18, %v843_v18  ;;  %v951_v8 = vunpack.c.l.b16 %v887_v11  ;;  %v952_v41 = vunpack.c.l.b16 %v888_v59  ;;  %v956_v46 = vunpack.c.l.b16 %v892_v44  ;;  %v2648_v18 = vld [vmem:[%s3970_s9 + $0x78] sm:$0xff]  ;;  %v2647_v11 = vld [vmem:[%s3970_s9 + $0x70] sm:$0xff]  ;;  %v2646_v62 = vld [vmem:[%s3970_s9 + $0x68] sm:$0xff] }
 0x1a9   :  { %v868_v4 = vrot.slane %v867_v7, 2  ;;  %v875_v22 = vrot.slane %v874_v49, 2  ;;  %v1247_v58 = vunpack.c.h.b16 %v3145_v29  ;;  %v1245_v60 = vunpack.c.h.b16 %v3136_v17  ;;  %v2633_v44 = vld [vmem:[%s3970_s9] sm:$0xff] }
 0x1aa   :  { %v953_v5 = vunpack.c.l.b16 %v889_v24  ;;  %v966_v26 = vsel %vm965_vm3, %v951_v8, %v3293_v28  ;;  %v976_v63 = vsel %vm965_vm3, %v952_v41, %v3297_v32  ;;  %v2640_v32 = vld [vmem:[%s3970_s9 + $0x38] sm:$0xff]  ;;  %v1248_v59 = vunpack.c.l.b16 %v3157_v45 }
 0x1ab   :  { %v869_v1 = vmax.f32 %v867_v7, %v868_v4  ;;  %v876_v37 = vmax.f32 %v874_v49, %v875_v22  ;;  %v977_v52 = vsel %vm967_vm4, %v954_v40, %v976_v63  ;;  %v1246_v7 = vunpack.c.l.b16 %v3145_v29  ;;  %v2639_v22 = vld [vmem:[%s3970_s9 + $0x30] sm:$0xff]  ;;  %v1748_v63 = vld [vmem:[%s3969_s8] sm:$0x3] }
 0x1ac   :  { %v968_v14 = vsel %vm967_vm4, %v953_v5, %v966_v26  ;;  %v978_v13 = vsel %vm969_vm5, %v956_v46, %v977_v52  ;;  %v1244_v49 = vunpack.c.l.b16 %v3136_v17  ;;  %v1277_v4 = vpack.c.b16 %v1247_v58, %v1245_v60 }
 0x1ad   :  { %v870_v39 = vrot.slane %v869_v1, 1  ;;  %v877_v16 = vrot.slane %v876_v37, 1  ;;  %v970_v56 = vsel %vm969_vm5, %v955_v0, %v968_v14  ;;  %v1250_v29 = vunpack.c.l.b16 %v3174_v61 }
 0x1ae   :  { %v1276_v2 = vpack.c.b16 %v1246_v7, %v1244_v49  ;;  %v1251_v17 = vunpack.c.h.b16 %v3174_v61  ;;  %v2645_v61 = vld [vmem:[%s3970_s9 + $0x60] sm:$0xff]  ;;  %v3864_v49 = vperm.slane %v1748_v63, 0 }
 0x1af   :  { %v871_v30 = vmax.f32 %v869_v1, %v870_v39  ;;  %v878_v6 = vmax.f32 %v876_v37, %v877_v16  ;;  %v1249_v1 = vunpack.c.h.b16 %v3157_v45  ;;  %v1278_v24 = vpack.c.b16 %v1250_v29, %v1248_v59  ;;  %v2637_v45 = vld [vmem:[%s3970_s9 + $0x20] sm:$0xff] }
 0x1b0   :  { %v2641_v39 = vld [vmem:[%s3970_s9 + $0x40] sm:$0xff] }
 0x1b1   :  { %v893_v50 = vpack.c.bf16 %v871_v30, %v871_v30  ;;  %v894_v43 = vpack.c.bf16 %v878_v6, %v878_v6  ;;  %v1279_v37 = vpack.c.b16 %v1251_v17, %v1249_v1 }
 0x1b3   :  { %v957_v55 = vunpack.c.l.b16 %v893_v50  ;;  %v958_v53 = vunpack.c.l.b16 %v894_v43 }
 0x1b5   :  { %v972_v20 = vsel %vm971_vm6, %v957_v55, %v970_v56  ;;  %v979_v25 = vsel %vm971_vm6, %v958_v53, %v978_v13  ;;  %v3860_v53 = vperm.slane %v1748_v63, 1 }
 0x1b6   :  { %v980_v42 = vpack.c.b16 %v972_v20, %v972_v20  ;;  %v981_v28 = vpack.c.b16 %v979_v25, %v979_v25 }
 0x1b8   :  { %1152 = vmatmul.bf16.vlgmr.msrb.gmra.mxu0 %v980_v42  ;;  %1165 = vmatmul.bf16.vlgmr.msrb.gmra.mxu1 %v981_v28 }
 0x1b9   :  { %1178 = vmatmul.bf16.vlgmr.msra.gmra.mxu2 %v980_v42  ;;  %1191 = vmatmul.bf16.vlgmr.msra.gmra.mxu3 %v981_v28 }
 0x1ba   :  { %1966 = vmatpush.bf16.msra.mxu2 %v2640_v32  ;;  %2015 = vmatpush.bf16.msra.mxu3 %v2648_v18 }
 0x1be   :  { %1967 = vmatpush.bf16.msra.mxu2 %v2639_v22  ;;  %2016 = vmatpush.bf16.msra.mxu3 %v2647_v11 }
 0x1c2   :  { %1968 = vmatpush.bf16.msra.mxu2 %v2638_v48  ;;  %2017 = vmatpush.bf16.msra.mxu3 %v2646_v62 }
 0x1c6   :  { %1969 = vmatpush.bf16.msra.mxu2 %v2637_v45  ;;  %2018 = vmatpush.bf16.msra.mxu3 %v2645_v61 }
 0x1c8   :  { %1574 = vmatmul.bf16.vlgmr.msra.gmra.mxu0 %v1276_v2  ;;  %1623 = vmatmul.bf16.vlgmr.msra.gmra.mxu1 %v1277_v4 }
 0x1c9   :  { %1476 = vmatmul.bf16.vlgmr.msrb.gmra.mxu2 %v1276_v2  ;;  %1525 = vmatmul.bf16.vlgmr.msrb.gmra.mxu3 %v1277_v4 }
 0x1d8   :  { %1579 = vmatmul.bf16.gmra.mxu0 %v1278_v24  ;;  %1628 = vmatmul.bf16.gmra.mxu1 %v1279_v37 }
 0x1d9   :  { %1481 = vmatmul.bf16.gmra.mxu2 %v1278_v24  ;;  %1530 = vmatmul.bf16.gmra.mxu3 %v1279_v37 }
 0x1e8   :  { %1584 = vmatmul.bf16.gmra.mxu0 %v3195_v10  ;;  %1633 = vmatmul.bf16.gmra.mxu1 %v3197_v12 }
 0x1e9   :  { %1486 = vmatmul.bf16.gmra.mxu2 %v3195_v10  ;;  %1535 = vmatmul.bf16.gmra.mxu3 %v3197_v12  ;;  %v2636_v10 = vld [vmem:[%s3970_s9 + $0x18] sm:$0xff] }
 0x1ea   :  { %v2644_v12 = vld [vmem:[%s3970_s9 + $0x58] sm:$0xff]  ;;  %1970 = vmatpush.bf16.msra.mxu2 %v2636_v10 }
 0x1eb   :  { %2019 = vmatpush.bf16.msra.mxu3 %v2644_v12 }
 0x1f8   :  { %1589 = vmatmul.bf16.gmra.mxu0 %v3243_v19  ;;  %1638 = vmatmul.bf16.gmra.mxu1 %v3245_v23 }
 0x1f9   :  { %1491 = vmatmul.bf16.gmra.mxu2 %v3243_v19  ;;  %1540 = vmatmul.bf16.gmra.mxu3 %v3245_v23  ;;  %v2635_v19 = vld [vmem:[%s3970_s9 + $0x10] sm:$0xff] }
 0x1fa   :  { %v2643_v23 = vld [vmem:[%s3970_s9 + $0x50] sm:$0xff]  ;;  %1971 = vmatpush.bf16.msra.mxu2 %v2635_v19 }
 0x1fb   :  { %2020 = vmatpush.bf16.msra.mxu3 %v2643_v23 }
 0x208   :  { %1594 = vmatmul.bf16.gmra.mxu0 %v3299_v34  ;;  %1643 = vmatmul.bf16.gmra.mxu1 %v3301_v36 }
 0x209   :  { %1496 = vmatmul.bf16.gmra.mxu2 %v3299_v34  ;;  %1545 = vmatmul.bf16.gmra.mxu3 %v3301_v36  ;;  %v2634_v34 = vld [vmem:[%s3970_s9 + $0x8] sm:$0xff] }
 0x20a   :  { %v2642_v36 = vld [vmem:[%s3970_s9 + $0x48] sm:$0xff]  ;;  %1972 = vmatpush.bf16.msra.mxu2 %v2634_v34 }
 0x20b   :  { %2021 = vmatpush.bf16.msra.mxu3 %v2642_v36 }
 0x20e   :  { %1973 = vmatpush.bf16.msra.mxu2 %v2633_v44 }
 0x20f   :  { %2022 = vmatpush.bf16.msra.mxu3 %v2641_v39 }
 0x218   :  { %1599 = vmatmul.bf16.gmra.mxu0 %v3376_v51  ;;  %1648 = vmatmul.bf16.gmra.mxu1 %v3381_v54 }
 0x219   :  { %1501 = vmatmul.bf16.gmra.mxu2 %v3376_v51  ;;  %1550 = vmatmul.bf16.gmra.mxu3 %v3381_v54 }
 0x228   :  { %1604 = vmatmul.bf16.gmra.mxu0 %v3527_v31  ;;  %1653 = vmatmul.bf16.gmra.mxu1 %v3546_v38 }
 0x229   :  { %1506 = vmatmul.bf16.gmra.mxu2 %v3527_v31  ;;  %1555 = vmatmul.bf16.gmra.mxu3 %v3546_v38 }
 0x235   :  { %v1153_v51 = vpop.f32.mrf.mxu0  ;;  %v1166_v54 = vpop.f32.mrf.mxu1 }
 0x236   :  { %v3839_v5 = vadd.f32 %v1166_v54, %v1153_v51 }
 0x238   :  { %1609 = vmatmul.bf16.gmra.mxu0 %v3734_v57  ;;  %1658 = vmatmul.bf16.gmra.mxu1 %v3736_v33 }
 0x239   :  { %1511 = vmatmul.bf16.gmra.mxu2 %v3734_v57  ;;  %1560 = vmatmul.bf16.gmra.mxu3 %v3736_v33 }
 0x23c   :  { %v1179_v31 = vpop.f32.mrf.mxu2  ;;  %v1192_v38 = vpop.f32.mrf.mxu3 }
 0x23d   :  { %v1193_v16 = vadd.f32 %v1192_v38, %v1179_v31  ;;  %v1155_v8 = vpop.f32.mrf.mxu0  ;;  %v1168_v41 = vpop.f32.mrf.mxu1 }
 0x23f   :  { %v3837_v30 = vrot.slane %v1193_v16, 7 }
 0x241   :  { %v3844_v6 = vsel %vm967_vm4, %v3839_v5, %v3837_v30  ;;  %v3849_v33 = vsel %vm969_vm5, %v3839_v5, %v3837_v30  ;;  %v3853_v50 = vsel %vm1681_vm7, %v3837_v30, %v3839_v5  ;;  %v1668_v43 = vsel %vm1667_vm8, %v3839_v5, %v3837_v30 }
 0x242   :  { %v1685_v55 = vperm.slane %v1668_v43, 1  ;;  %v1684_v18 = vperm.slane %v1668_v43, 0  ;;  %v1669_v60 = vsel %vm959_vm0, %v3839_v5, %v3837_v30 }
 0x243   :  { %v1670_v24 = vrot.slane %v1669_v60, 1 }
 0x244   :  { %v1181_v57 = vpop.f32.mrf.mxu2  ;;  %v1194_v40 = vpop.f32.mrf.mxu3 }
 0x245   :  { %v1575_v0 = vpop.f32.mrf.mxu0  ;;  %v1624_v46 = vpop.f32.mrf.mxu1  ;;  %v1687_v61 = vperm.slane %v1670_v24, 1  ;;  %v1686_v16 = vperm.slane %v1670_v24, 0  ;;  %v1671_v57 = vsel %vm961_vm1, %v3839_v5, %v3837_v30 }
 0x246   :  { %v1625_v26 = vadd.f32 %v1624_v46, %v1575_v0 }
 0x248   :  { %v1717_v14 = vadd.f32 %v1685_v55, %v1625_v26 }
 0x24a   :  { %v1755_v28 = vadd.f32 %v3860_v53, %v1717_v14  ;;  %v1672_v14 = vrot.slane %v1671_v57, 2 }
 0x24c   :  { %v1477_v52 = vpop.f32.mrf.mxu2  ;;  %v1526_v56 = vpop.f32.mrf.mxu3  ;;  %v1787_v2 = vmax.f32 %v1755_v28, 0.0 }
 0x24d   :  { %v1577_v13 = vpop.f32.mrf.mxu0  ;;  %v1626_v20 = vpop.f32.mrf.mxu1  ;;  %v1527_v42 = vadd.f32 %v1526_v56, %v1477_v52 }
 0x24e   :  { %v1627_v25 = vadd.f32 %v1626_v20, %v1577_v13 }
 0x24f   :  { %v1716_v58 = vadd.f32 %v1684_v18, %v1527_v42  ;;  %v1689_v42 = vperm.slane %v1672_v14, 1 }
 0x250   :  { %v1719_v32 = vadd.f32 %v1685_v55, %v1627_v25 }
 0x251   :  { %v1754_v37 = vadd.f32 %v3864_v49, %v1716_v58 }
 0x252   :  { %v1757_v7 = vadd.f32 %v3860_v53, %v1719_v32 }
 0x253   :  { %v1786_v10 = vmax.f32 %v1754_v37, 0.0  ;;  %v1673_v37 = vsel %vm963_vm2, %v3839_v5, %v3837_v30 }
 0x254   :  { %v1789_v4 = vmax.f32 %v1757_v7, 0.0  ;;  %v1479_v22 = vpop.f32.mrf.mxu2  ;;  %v1528_v11 = vpop.f32.mrf.mxu3 }
 0x255   :  { %v1529_v29 = vadd.f32 %v1528_v11, %v1479_v22  ;;  %v1580_v17 = vpop.f32.mrf.mxu0  ;;  %v1629_v59 = vpop.f32.mrf.mxu1 }
 0x256   :  { %v1819_v1 = vpack.c.bf16 %v1789_v4, %v1787_v2  ;;  %v1630_v62 = vadd.f32 %v1629_v59, %v1580_v17  ;;  %v1688_v59 = vperm.slane %v1672_v14, 0 }
 0x257   :  { %v1718_v48 = vadd.f32 %v1684_v18, %v1529_v29 }
 0x258   :  { %2023 = vmatmul.bf16.vlgmr.msra.gmra.mxu3 %v1819_v1  ;;  %v1721_v19 = vadd.f32 %v1687_v61, %v1630_v62 }
 0x259   :  { %v1756_v45 = vadd.f32 %v3864_v49, %v1718_v48 }
 0x25a   :  { %v1759_v38 = vadd.f32 %v3860_v53, %v1721_v19 }
 0x25b   :  { %v1788_v12 = vmax.f32 %v1756_v45, 0.0 }
 0x25c   :  { %v1482_v23 = vpop.f32.mrf.mxu2  ;;  %v1531_v34 = vpop.f32.mrf.mxu3  ;;  %v1791_v46 = vmax.f32 %v1759_v38, 0.0 }
 0x25d   :  { %v1582_v36 = vpop.f32.mrf.mxu0  ;;  %v1631_v51 = vpop.f32.mrf.mxu1  ;;  %v1818_v54 = vpack.c.bf16 %v1788_v12, %v1786_v10  ;;  %v1532_v39 = vadd.f32 %v1531_v34, %v1482_v23  ;;  %v1674_v23 = vrot.slane %v1673_v37, 3 }
 0x25e   :  { %v1632_v44 = vadd.f32 %v1631_v51, %v1582_v36 }
 0x25f   :  { %1974 = vmatmul.bf16.vlgmr.msra.gmra.mxu2 %v1818_v54  ;;  %v1720_v41 = vadd.f32 %v1686_v16, %v1532_v39  ;;  %v1691_v39 = vperm.slane %v1674_v23, 1 }
 0x260   :  { %v1723_v31 = vadd.f32 %v1687_v61, %v1632_v44 }
 0x261   :  { %v1758_v13 = vadd.f32 %v3864_v49, %v1720_v41 }
 0x262   :  { %v1761_v8 = vadd.f32 %v3860_v53, %v1723_v31 }
 0x263   :  { %v1790_v28 = vmax.f32 %v1758_v13, 0.0 }
 0x264   :  { %v1484_v40 = vpop.f32.mrf.mxu2  ;;  %v1533_v0 = vpop.f32.mrf.mxu3  ;;  %v1793_v43 = vmax.f32 %v1761_v8, 0.0 }
 0x265   :  { %v1534_v26 = vadd.f32 %v1533_v0, %v1484_v40  ;;  %v1585_v63 = vpop.f32.mrf.mxu0  ;;  %v1634_v55 = vpop.f32.mrf.mxu1 }
 0x266   :  { %v1821_v52 = vpack.c.bf16 %v1793_v43, %v1791_v46  ;;  %v1635_v20 = vadd.f32 %v1634_v55, %v1585_v63  ;;  %v1690_v55 = vperm.slane %v1674_v23, 0 }
 0x267   :  { %v1722_v56 = vadd.f32 %v1686_v16, %v1534_v26 }
 0x268   :  { %2028 = vmatmul.bf16.gmra.mxu3 %v1821_v52  ;;  %v1725_v18 = vadd.f32 %v1689_v42, %v1635_v20 }
 0x269   :  { %v1760_v25 = vadd.f32 %v3864_v49, %v1722_v56  ;;  %v1675_v56 = vsel %vm965_vm3, %v3839_v5, %v3837_v30 }
 0x26a   :  { %v1763_v17 = vadd.f32 %v3860_v53, %v1725_v18 }
 0x26b   :  { %v1792_v32 = vmax.f32 %v1760_v25, 0.0 }
 0x26c   :  { %v1487_v7 = vpop.f32.mrf.mxu2  ;;  %v1536_v58 = vpop.f32.mrf.mxu3  ;;  %v1795_v45 = vmax.f32 %v1763_v17, 0.0 }
 0x26d   :  { %v1587_v60 = vpop.f32.mrf.mxu0  ;;  %v1636_v2 = vpop.f32.mrf.mxu1  ;;  %v1820_v4 = vpack.c.bf16 %v1792_v32, %v1790_v28  ;;  %v1537_v11 = vadd.f32 %v1536_v58, %v1487_v7  ;;  %v1676_v7 = vrot.slane %v1675_v56, 4 }
 0x26e   :  { %v1637_v22 = vadd.f32 %v1636_v2, %v1587_v60 }
 0x26f   :  { %1979 = vmatmul.bf16.gmra.mxu2 %v1820_v4  ;;  %v1724_v24 = vadd.f32 %v1688_v59, %v1537_v11  ;;  %v1693_v11 = vperm.slane %v1676_v7, 1 }
 0x270   :  { %v1727_v29 = vadd.f32 %v1689_v42, %v1637_v22 }
 0x271   :  { %v1762_v51 = vadd.f32 %v3864_v49, %v1724_v24 }
 0x272   :  { %v1765_v1 = vadd.f32 %v3860_v53, %v1727_v29 }
 0x273   :  { %v1794_v31 = vmax.f32 %v1762_v51, 0.0 }
 0x274   :  { %v1489_v48 = vpop.f32.mrf.mxu2  ;;  %v1538_v62 = vpop.f32.mrf.mxu3  ;;  %v1797_v61 = vmax.f32 %v1765_v1, 0.0 }
 0x275   :  { %v1539_v10 = vadd.f32 %v1538_v62, %v1489_v48  ;;  %v1590_v12 = vpop.f32.mrf.mxu0  ;;  %v1639_v19 = vpop.f32.mrf.mxu1 }
 0x276   :  { %v1823_v34 = vpack.c.bf16 %v1797_v61, %v1795_v45  ;;  %v1640_v54 = vadd.f32 %v1639_v19, %v1590_v12 }
 0x277   :  { %v1726_v36 = vadd.f32 %v1688_v59, %v1539_v10  ;;  %v1692_v10 = vperm.slane %v1676_v7, 0 }
 0x278   :  { %2033 = vmatmul.bf16.gmra.mxu3 %v1823_v34  ;;  %v1729_v16 = vadd.f32 %v1691_v39, %v1640_v54 }
 0x279   :  { %v1764_v44 = vadd.f32 %v3864_v49, %v1726_v36 }
 0x27a   :  { %v1767_v26 = vadd.f32 %v3860_v53, %v1729_v16 }
 0x27b   :  { %v1796_v38 = vmax.f32 %v1764_v44, 0.0 }
 0x27c   :  { %v1492_v8 = vpop.f32.mrf.mxu2  ;;  %v1541_v41 = vpop.f32.mrf.mxu3  ;;  %v1799_v13 = vmax.f32 %v1767_v26, 0.0 }
 0x27d   :  { %v1592_v57 = vpop.f32.mrf.mxu0  ;;  %v1641_v40 = vpop.f32.mrf.mxu1  ;;  %v1822_v0 = vpack.c.bf16 %v1796_v38, %v1794_v31  ;;  %v1542_v43 = vadd.f32 %v1541_v41, %v1492_v8  ;;  %v1678_v31 = vrot.slane %v3844_v6, 5 }
 0x27e   :  { %v1642_v46 = vadd.f32 %v1641_v40, %v1592_v57 }
 0x27f   :  { %1984 = vmatmul.bf16.gmra.mxu2 %v1822_v0  ;;  %v1728_v52 = vadd.f32 %v1690_v55, %v1542_v43  ;;  %v1695_v40 = vperm.slane %v1678_v31, 1 }
 0x280   :  { %v1731_v63 = vadd.f32 %v1691_v39, %v1642_v46 }
 0x281   :  { %v1766_v60 = vadd.f32 %v3864_v49, %v1728_v52 }
 0x282   :  { %v1769_v14 = vadd.f32 %v3860_v53, %v1731_v63 }
 0x283   :  { %v1798_v29 = vmax.f32 %v1766_v60, 0.0 }
 0x284   :  { %v1801_v20 = vmax.f32 %v1769_v14, 0.0  ;;  %v1494_v25 = vpop.f32.mrf.mxu2  ;;  %v1543_v42 = vpop.f32.mrf.mxu3 }
 0x285   :  { %v1544_v28 = vadd.f32 %v1543_v42, %v1494_v25  ;;  %v1595_v32 = vpop.f32.mrf.mxu0  ;;  %v1644_v18 = vpop.f32.mrf.mxu1  ;;  %v1694_v25 = vperm.slane %v1678_v31, 0 }
 0x286   :  { %v1825_v58 = vpack.c.bf16 %v1801_v20, %v1799_v13  ;;  %v1645_v4 = vadd.f32 %v1644_v18, %v1595_v32 }
 0x287   :  { %v1730_v2 = vadd.f32 %v1690_v55, %v1544_v28 }
 0x288   :  { %2038 = vmatmul.bf16.gmra.mxu3 %v1825_v58  ;;  %v1733_v30 = vadd.f32 %v1693_v11, %v1645_v4 }
 0x289   :  { %v1768_v22 = vadd.f32 %v3864_v49, %v1730_v2 }
 0x28a   :  { %v1771_v45 = vadd.f32 %v3860_v53, %v1733_v30 }
 0x28b   :  { %v1800_v17 = vmax.f32 %v1768_v22, 0.0  ;;  %v1680_v22 = vrot.slane %v3849_v33, 6 }
 0x28c   :  { %v1497_v5 = vpop.f32.mrf.mxu2  ;;  %v1546_v59 = vpop.f32.mrf.mxu3  ;;  %v1803_v23 = vmax.f32 %v1771_v45, 0.0 }
 0x28d   :  { %v1597_v1 = vpop.f32.mrf.mxu0  ;;  %v1646_v24 = vpop.f32.mrf.mxu1  ;;  %v1824_v37 = vpack.c.bf16 %v1800_v17, %v1798_v29  ;;  %v1547_v62 = vadd.f32 %v1546_v59, %v1497_v5  ;;  %v1697_v59 = vperm.slane %v1680_v22, 1 }
 0x28e   :  { %v1647_v48 = vadd.f32 %v1646_v24, %v1597_v1 }
 0x28f   :  { %1989 = vmatmul.bf16.gmra.mxu2 %v1824_v37  ;;  %v1732_v19 = vadd.f32 %v1692_v10, %v1547_v62 }
 0x290   :  { %v1735_v61 = vadd.f32 %v1693_v11, %v1647_v48 }
 0x291   :  { %v1770_v16 = vadd.f32 %v3864_v49, %v1732_v19 }
 0x292   :  { %v1773_v12 = vadd.f32 %v3860_v53, %v1735_v61 }
 0x293   :  { %v1802_v0 = vmax.f32 %v1770_v16, 0.0 }
 0x294   :  { %v1805_v34 = vmax.f32 %v1773_v12, 0.0  ;;  %v1499_v36 = vpop.f32.mrf.mxu2  ;;  %v1548_v51 = vpop.f32.mrf.mxu3 }
 0x295   :  { %v1549_v54 = vadd.f32 %v1548_v51, %v1499_v36  ;;  %v1600_v44 = vpop.f32.mrf.mxu0  ;;  %v1649_v39 = vpop.f32.mrf.mxu1 }
 0x296   :  { %v1827_v38 = vpack.c.bf16 %v1805_v34, %v1803_v23  ;;  %v1650_v41 = vadd.f32 %v1649_v39, %v1600_v44  ;;  %v1696_v34 = vperm.slane %v1680_v22, 0 }
 0x297   :  { %v1734_v8 = vadd.f32 %v1692_v10, %v1549_v54 }
 0x298   :  { %2043 = vmatmul.bf16.gmra.mxu3 %v1827_v38  ;;  %v1737_v43 = vadd.f32 %v1695_v40, %v1650_v41  ;;  %v1683_v41 = vrot.slane %v3853_v50, 7 }
 0x299   :  { %v1772_v57 = vadd.f32 %v3864_v49, %v1734_v8 }
 0x29a   :  { %v1775_v6 = vadd.f32 %v3860_v53, %v1737_v43 }
 0x29b   :  { %v1804_v46 = vmax.f32 %v1772_v57, 0.0 }
 0x29c   :  { %v1502_v26 = vpop.f32.mrf.mxu2  ;;  %v1551_v63 = vpop.f32.mrf.mxu3  ;;  %v1807_v32 = vmax.f32 %v1775_v6, 0.0 }
 0x29d   :  { %v1602_v55 = vpop.f32.mrf.mxu0  ;;  %v1651_v14 = vpop.f32.mrf.mxu1  ;;  %v1826_v52 = vpack.c.bf16 %v1804_v46, %v1802_v0  ;;  %v1552_v13 = vadd.f32 %v1551_v63, %v1502_v26  ;;  %v1699_v26 = vperm.slane %v1683_v41, 1 }
 0x29e   :  { %v1652_v56 = vadd.f32 %v1651_v14, %v1602_v55 }
 0x29f   :  { %1994 = vmatmul.bf16.gmra.mxu2 %v1826_v52  ;;  %v1736_v28 = vadd.f32 %v1694_v25, %v1552_v13 }
 0x2a0   :  { %v1739_v20 = vadd.f32 %v1695_v40, %v1652_v56 }
 0x2a1   :  { %v1774_v29 = vadd.f32 %v3864_v49, %v1736_v28 }
 0x2a2   :  { %v1777_v42 = vadd.f32 %v3860_v53, %v1739_v20 }
 0x2a3   :  { %v1806_v1 = vmax.f32 %v1774_v29, 0.0 }
 0x2a4   :  { %v1809_v18 = vmax.f32 %v1777_v42, 0.0  ;;  %v1504_v7 = vpop.f32.mrf.mxu2  ;;  %v1553_v58 = vpop.f32.mrf.mxu3 }
 0x2a5   :  { %v1554_v60 = vadd.f32 %v1553_v58, %v1504_v7  ;;  %v1605_v2 = vpop.f32.mrf.mxu0  ;;  %v1654_v4 = vpop.f32.mrf.mxu1 }
 0x2a6   :  { %v1829_v11 = vpack.c.bf16 %v1809_v18, %v1807_v32  ;;  %v1655_v30 = vadd.f32 %v1654_v4, %v1605_v2  ;;  %v1698_v32 = vperm.slane %v1683_v41, 0 }
 0x2a7   :  { %v1738_v17 = vadd.f32 %v1694_v25, %v1554_v60 }
 0x2a8   :  { %2048 = vmatmul.bf16.gmra.mxu3 %v1829_v11  ;;  %v1741_v37 = vadd.f32 %v1697_v59, %v1655_v30 }
 0x2a9   :  { %v1776_v5 = vadd.f32 %v3864_v49, %v1738_v17 }
 0x2aa   :  { %v1779_v33 = vadd.f32 %v3860_v53, %v1741_v37 }
 0x2ab   :  { %v1808_v24 = vmax.f32 %v1776_v5, 0.0 }
 0x2ac   :  { %v1507_v48 = vpop.f32.mrf.mxu2  ;;  %v1556_v62 = vpop.f32.mrf.mxu3  ;;  %v1811_v54 = vmax.f32 %v1779_v33, 0.0 }
 0x2ad   :  { %v1607_v45 = vpop.f32.mrf.mxu0  ;;  %v1656_v61 = vpop.f32.mrf.mxu1  ;;  %v1828_v10 = vpack.c.bf16 %v1808_v24, %v1806_v1  ;;  %v1557_v19 = vadd.f32 %v1556_v62, %v1507_v48 }
 0x2ae   :  { %v1657_v12 = vadd.f32 %v1656_v61, %v1607_v45 }
 0x2af   :  { %1999 = vmatmul.bf16.gmra.mxu2 %v1828_v10  ;;  %v1740_v51 = vadd.f32 %v1696_v34, %v1557_v19 }
 0x2b0   :  { %v1743_v23 = vadd.f32 %v1697_v59, %v1657_v12 }
 0x2b1   :  { %v1778_v40 = vadd.f32 %v3864_v49, %v1740_v51 }
 0x2b2   :  { %v1781_v36 = vadd.f32 %v3860_v53, %v1743_v23 }
 0x2b3   :  { %v1810_v63 = vmax.f32 %v1778_v40, 0.0 }
 0x2b4   :  { %v1813_v44 = vmax.f32 %v1781_v36, 0.0  ;;  %v1509_v39 = vpop.f32.mrf.mxu2  ;;  %v1558_v31 = vpop.f32.mrf.mxu3 }
 0x2b5   :  { %v1559_v38 = vadd.f32 %v1558_v31, %v1509_v39  ;;  %v1610_v16 = vpop.f32.mrf.mxu0  ;;  %v1659_v8 = vpop.f32.mrf.mxu1 }
 0x2b6   :  { %v1831_v57 = vpack.c.bf16 %v1813_v44, %v1811_v54  ;;  %v1660_v46 = vadd.f32 %v1659_v8, %v1610_v16 }
 0x2b7   :  { %v1742_v0 = vadd.f32 %v1696_v34, %v1559_v38 }
 0x2b8   :  { %2053 = vmatmul.bf16.gmra.mxu3 %v1831_v57  ;;  %v1745_v14 = vadd.f32 %v1699_v26, %v1660_v46 }
 0x2b9   :  { %v1780_v43 = vadd.f32 %v3864_v49, %v1742_v0 }
 0x2ba   :  { %v1783_v50 = vadd.f32 %v3860_v53, %v1745_v14 }
 0x2bb   :  { %v1812_v55 = vmax.f32 %v1780_v43, 0.0 }
 0x2bc   :  { %v1512_v52 = vpop.f32.mrf.mxu2  ;;  %v1561_v56 = vpop.f32.mrf.mxu3  ;;  %v1815_v58 = vmax.f32 %v1783_v50, 0.0 }
 0x2bd   :  { %v1612_v13 = vpop.f32.mrf.mxu0  ;;  %v1661_v6 = vpop.f32.mrf.mxu1  ;;  %v1830_v20 = vpack.c.bf16 %v1812_v55, %v1810_v63  ;;  %v1562_v42 = vadd.f32 %v1561_v56, %v1512_v52 }
 0x2be   :  { %v1662_v25 = vadd.f32 %v1661_v6, %v1612_v13 }
 0x2bf   :  { %2004 = vmatmul.bf16.gmra.mxu2 %v1830_v20  ;;  %v1744_v7 = vadd.f32 %v1698_v32, %v1562_v42 }
 0x2c0   :  { %v1747_v28 = vadd.f32 %v1699_v26, %v1662_v25 }
 0x2c1   :  { %v1782_v29 = vadd.f32 %v3864_v49, %v1744_v7 }
 0x2c2   :  { %v1785_v18 = vadd.f32 %v3860_v53, %v1747_v28  ;;  %v3914_v53 = vld [vmem:[%s3971_s10] ss:$0 sm:$0xff]  ;;  %s2726_s10 = smov [#allocation2]  }
 0x2c3   :  { %v1814_v5 = vmax.f32 %v1782_v29, 0.0  ;;  %s2158_s15 = sshll.u32 %s2726_s10, 4  ;;  %s2159_s15 = int_to_ptr.vmem [resolvable:$true] %s2158_s15 }
 0x2c4   :  { %v1817_v60 = vmax.f32 %v1785_v18, 0.0  ;;  %v1514_v2 = vpop.f32.mrf.mxu2  ;;  %v1563_v4 = vpop.f32.mrf.mxu3 }
 0x2c5   :  { %v1564_v22 = vadd.f32 %v1563_v4, %v1514_v2 }
 0x2c6   :  { %v1833_v11 = vpack.c.bf16 %v1817_v60, %v1815_v58 }
 0x2c7   :  { %v1746_v17 = vadd.f32 %v1698_v32, %v1564_v22 }
 0x2c8   :  { %2058 = vmatmul.bf16.gmra.mxu3 %v1833_v11 }
 0x2c9   :  { %v1784_v30 = vadd.f32 %v3864_v49, %v1746_v17 }
 0x2cb   :  { %v1816_v59 = vmax.f32 %v1784_v30, 0.0 }
 0x2cd   :  { %v1832_v1 = vpack.c.bf16 %v1816_v59, %v1814_v5 }
 0x2cf   :  { %2009 = vmatmul.bf16.gmra.mxu2 %v1832_v1 }
 0x2db   :  { %v2024_v24 = vpop.f32.mrf.mxu3 }
 0x2e2   :  { %v1975_v37 = vpop.f32.mrf.mxu2 }
 0x2e3   :  { %v1976_v48 = vadd.f32 %v3914_v53, %v1975_v37  ;;  %v2026_v62 = vpop.f32.mrf.mxu3 }
 0x2e5   :  { %v2025_v45 = vadd.f32 %v2024_v24, %v1976_v48 }
 0x2e7   :  { %v2064_v19 = vmul.f32 %v2025_v45, %v3126_v3 }
 0x2ea   :  { %v1977_v61 = vpop.f32.mrf.mxu2 }
 0x2eb   :  { %v1978_v10 = vadd.f32 %v3914_v53, %v1977_v61  ;;  %v2029_v12 = vpop.f32.mrf.mxu3 }
 0x2ed   :  { %v2027_v49 = vadd.f32 %v2026_v62, %v1978_v10 }
 0x2ef   :  { %v2065_v33 = vmul.f32 %v2027_v49, %v3139_v21 }
 0x2f1   :  { %v2080_v23 = vmax.f32 %v2064_v19, %v2065_v33 }
 0x2f2   :  { %v1980_v34 = vpop.f32.mrf.mxu2 }
 0x2f3   :  { %v1981_v36 = vadd.f32 %v3914_v53, %v1980_v34  ;;  %v2031_v51 = vpop.f32.mrf.mxu3  ;;  %v2081_v44 = vrot.slane %v2080_v23, 4 }
 0x2f5   :  { %v2030_v54 = vadd.f32 %v2029_v12, %v1981_v36  ;;  %v2082_v16 = vmax.f32 %v2080_v23, %v2081_v44 }
 0x2f7   :  { %v2066_v41 = vmul.f32 %v2030_v54, %v3151_v35  ;;  %v2083_v3 = vrot.slane %v2082_v16, 2 }
 0x2f9   :  { %v2084_v26 = vmax.f32 %v2082_v16, %v2083_v3 }
 0x2fa   :  { %v1982_v39 = vpop.f32.mrf.mxu2 }
 0x2fb   :  { %v1983_v31 = vadd.f32 %v3914_v53, %v1982_v39  ;;  %v2034_v38 = vpop.f32.mrf.mxu3  ;;  %v2085_v52 = vrot.slane %v2084_v26, 1 }
 0x2fd   :  { %v2032_v8 = vadd.f32 %v2031_v51, %v1983_v31  ;;  %v2086_v25 = vmax.f32 %v2084_v26, %v2085_v52  ;;  %v3996_v52 = vld [vmem:[#allocation9_spill] sm:$0xff] }
 0x2ff   :  { %v2067_v57 = vmul.f32 %v2032_v8, %v3159_v47 }
 0x301   :  { %v2087_v40 = vmax.f32 %v2066_v41, %v2067_v57 }
 0x302   :  { %v1985_v21 = vpop.f32.mrf.mxu2 }
 0x303   :  { %v2088_v0 = vrot.slane %v2087_v40, 4  ;;  %v1986_v46 = vadd.f32 %v3914_v53, %v1985_v21  ;;  %v2036_v43 = vpop.f32.mrf.mxu3 }
 0x305   :  { %v2089_v63 = vmax.f32 %v2087_v40, %v2088_v0  ;;  %v2035_v55 = vadd.f32 %v2034_v38, %v1986_v46 }
 0x307   :  { %v2090_v14 = vrot.slane %v2089_v63, 2  ;;  %v2068_v28 = vmul.f32 %v2035_v55, %v3183_v9 }
 0x309   :  { %v2091_v56 = vmax.f32 %v2089_v63, %v2090_v14  ;;  %v3995_v63 = vld [vmem:[#allocation7_spill] sm:$0xff] }
 0x30a   :  { %v1987_v13 = vpop.f32.mrf.mxu2 }
 0x30b   :  { %v2092_v6 = vrot.slane %v2091_v56, 1  ;;  %v1988_v20 = vadd.f32 %v3914_v53, %v1987_v13  ;;  %v2039_v35 = vpop.f32.mrf.mxu3 }
 0x30d   :  { %v2093_v47 = vmax.f32 %v2091_v56, %v2092_v6  ;;  %v2037_v42 = vadd.f32 %v2036_v43, %v1988_v20  ;;  %v3997_v6 = vld [vmem:[#allocation6_spill] sm:$0xff] }
 0x30f   :  { %v2144_v50 = vsel %vm959_vm0, %v2093_v47, %v2086_v25  ;;  %v2069_v32 = vmul.f32 %v2037_v42, %v3189_v15  ;;  %v3994_v15 = vld [vmem:[#allocation5_spill] sm:$0xff]  ;;  %v3999_v47 = vld [vmem:[#allocation11_spill] sm:$0xff] }
 0x311   :  { %v2094_v18 = vmax.f32 %v2068_v28, %v2069_v32  ;;  %v4000_v28 = vld [vmem:[#allocation10_spill] sm:$0xff] }
 0x312   :  { %v1990_v7 = vpop.f32.mrf.mxu2 }
 0x313   :  { %v2095_v58 = vrot.slane %v2094_v18, 4  ;;  %v1991_v60 = vadd.f32 %v3914_v53, %v1990_v7  ;;  %v2041_v2 = vpop.f32.mrf.mxu3 }
 0x315   :  { %v2096_v4 = vmax.f32 %v2094_v18, %v2095_v58  ;;  %v2040_v22 = vadd.f32 %v2039_v35, %v1991_v60  ;;  %v3998_v35 = vld [vmem:[#allocation8_spill] sm:$0xff] }
 0x317   :  { %v2097_v11 = vrot.slane %v2096_v4, 2  ;;  %v2070_v9 = vmul.f32 %v2040_v22, %v3213_v27 }
 0x319   :  { %v2098_v29 = vmax.f32 %v2096_v4, %v2097_v11 }
 0x31a   :  { %v1992_v17 = vpop.f32.mrf.mxu2 }
 0x31b   :  { %v2099_v30 = vrot.slane %v2098_v29, 1  ;;  %v1993_v5 = vadd.f32 %v3914_v53, %v1992_v17  ;;  %v2044_v59 = vpop.f32.mrf.mxu3 }
 0x31d   :  { %v2100_v1 = vmax.f32 %v2098_v29, %v2099_v30  ;;  %v2042_v24 = vadd.f32 %v2041_v2, %v1993_v5 }
 0x31f   :  { %v2071_v37 = vmul.f32 %v2042_v24, %v3994_v15  ;;  %v2145_v48 = vsel %vm961_vm1, %v2100_v1, %v2144_v50 }
 0x321   :  { %v2101_v62 = vmax.f32 %v2070_v9, %v2071_v37 }
 0x322   :  { %v1995_v45 = vpop.f32.mrf.mxu2 }
 0x323   :  { %v2102_v61 = vrot.slane %v2101_v62, 4  ;;  %v2046_v10 = vpop.f32.mrf.mxu3  ;;  %v1996_v8 = vadd.f32 %v3914_v53, %v1995_v45 }
 0x325   :  { %v2103_v12 = vmax.f32 %v2101_v62, %v2102_v61  ;;  %v2045_v0 = vadd.f32 %v2044_v59, %v1996_v8  ;;  %v4001_v62 = vld [vmem:[#allocation12_spill] sm:$0xff]  ;;  %v4002_v61 = vld [vmem:[#allocation13_spill] sm:$0xff] }
 0x327   :  { %v2104_v49 = vrot.slane %v2103_v12, 2  ;;  %v2072_v20 = vmul.f32 %v2045_v0, %v3997_v6 }
 0x329   :  { %v2105_v19 = vmax.f32 %v2103_v12, %v2104_v49 }
 0x32a   :  { %v1997_v33 = vpop.f32.mrf.mxu2 }
 0x32b   :  { %v2106_v23 = vrot.slane %v2105_v19, 1  ;;  %v2049_v34 = vpop.f32.mrf.mxu3  ;;  %v1998_v38 = vadd.f32 %v3914_v53, %v1997_v33 }
 0x32d   :  { %v2107_v36 = vmax.f32 %v2105_v19, %v2106_v23  ;;  %v2047_v57 = vadd.f32 %v2046_v10, %v1998_v38 }
 0x32f   :  { %v3935_v51 = vsel %vm963_vm2, %v2107_v36, %v2145_v48  ;;  %v2073_v55 = vmul.f32 %v2047_v57, %v3995_v63 }
 0x331   :  { %v2108_v50 = vmax.f32 %v2072_v20, %v2073_v55 }
 0x332   :  { %v2000_v54 = vpop.f32.mrf.mxu2 }
 0x333   :  { %v2051_v27 = vpop.f32.mrf.mxu3  ;;  %v2001_v41 = vadd.f32 %v3914_v53, %v2000_v54  ;;  %v2109_v2 = vrot.slane %v2108_v50, 4 }
 0x335   :  { %v2050_v43 = vadd.f32 %v2049_v34, %v2001_v41  ;;  %v2110_v29 = vmax.f32 %v2108_v50, %v2109_v2 }
 0x337   :  { %v2074_v25 = vmul.f32 %v2050_v43, %v3998_v35  ;;  %v2111_v24 = vrot.slane %v2110_v29, 2 }
 0x339   :  { %v2112_v12 = vmax.f32 %v2110_v29, %v2111_v24 }
 0x33a   :  { %v2002_v44 = vpop.f32.mrf.mxu2 }
 0x33b   :  { %v2054_v39 = vpop.f32.mrf.mxu3  ;;  %v2003_v16 = vadd.f32 %v3914_v53, %v2002_v44  ;;  %v2113_v34 = vrot.slane %v2112_v12, 1 }
 0x33d   :  { %v2052_v21 = vadd.f32 %v2051_v27, %v2003_v16 }
 0x33f   :  { %v2075_v56 = vmul.f32 %v2052_v21, %v3996_v52 }
 0x341   :  { %v2115_v18 = vmax.f32 %v2074_v25, %v2075_v56 }
 0x342   :  { %v2005_v31 = vpop.f32.mrf.mxu2 }
 0x343   :  { %v2006_v3 = vadd.f32 %v3914_v53, %v2005_v31  ;;  %v2056_v40 = vpop.f32.mrf.mxu3  ;;  %v2116_v4 = vrot.slane %v2115_v18, 4 }
 0x345   :  { %v2055_v14 = vadd.f32 %v2054_v39, %v2006_v3  ;;  %v2117_v17 = vmax.f32 %v2115_v18, %v2116_v4 }
 0x347   :  { %v2076_v32 = vmul.f32 %v2055_v14, %v4000_v28  ;;  %v2118_v15 = vrot.slane %v2117_v17, 2 }
 0x349   :  { %v2119_v49 = vmax.f32 %v2117_v17, %v2118_v15 }
 0x34a   :  { %v2007_v46 = vpop.f32.mrf.mxu2 }
 0x34b   :  { %v2008_v26 = vadd.f32 %v3914_v53, %v2007_v46  ;;  %v2059_v58 = vpop.f32.mrf.mxu3  ;;  %v2120_v36 = vrot.slane %v2119_v49, 1 }
 0x34d   :  { %v2057_v13 = vadd.f32 %v2056_v40, %v2008_v26  ;;  %v2121_v39 = vmax.f32 %v2119_v49, %v2120_v36 }
 0x34f   :  { %v2077_v42 = vmul.f32 %v2057_v13, %v3999_v47 }
 0x351   :  { %v2122_v7 = vmax.f32 %v2076_v32, %v2077_v42 }
 0x352   :  { %v2010_v60 = vpop.f32.mrf.mxu2 }
 0x353   :  { %v2123_v22 = vrot.slane %v2122_v7, 4  ;;  %v2011_v11 = vadd.f32 %v3914_v53, %v2010_v60  ;;  %v2061_v9 = vpop.f32.mrf.mxu3 }
 0x355   :  { %v2124_v30 = vmax.f32 %v2122_v7, %v2123_v22  ;;  %v2060_v59 = vadd.f32 %v2059_v58, %v2011_v11 }
 0x357   :  { %v2125_v48 = vrot.slane %v2124_v30, 2  ;;  %v2078_v45 = vmul.f32 %v2060_v59, %v4001_v62 }
 0x359   :  { %v2126_v33 = vmax.f32 %v2124_v30, %v2125_v48 }
 0x35a   :  { %v2012_v5 = vpop.f32.mrf.mxu2 }
 0x35b   :  { %v2013_v1 = vadd.f32 %v3914_v53, %v2012_v5  ;;  %v2127_v27 = vrot.slane %v2126_v33, 1  ;;  %v2114_v53 = vmax.f32 %v2112_v12, %v2113_v34 }
 0x35d   :  { %v2062_v37 = vadd.f32 %v2061_v9, %v2013_v1  ;;  %v2128_v38 = vmax.f32 %v2126_v33, %v2127_v27  ;;  %v2147_v8 = vsel %vm965_vm3, %v2114_v53, %v3935_v51 }
 0x35e   :  { %v2148_v57 = vsel %vm967_vm4, %v2121_v39, %v2147_v8 }
 0x35f   :  { %v2079_v10 = vmul.f32 %v2062_v37, %v4002_v61  ;;  %v2149_v3 = vsel %vm969_vm5, %v2128_v38, %v2148_v57 }
 0x361   :  { %v2129_v19 = vmax.f32 %v2078_v45, %v2079_v10 }
 0x363   :  { %v2130_v23 = vrot.slane %v2129_v19, 4 }
 0x365   :  { %v2131_v54 = vmax.f32 %v2129_v19, %v2130_v23 }
 0x367   :  { %v2132_v44 = vrot.slane %v2131_v54, 2 }
 0x369   :  { %v2133_v31 = vmax.f32 %v2131_v54, %v2132_v44 }
 0x36b   :  { %v2134_v16 = vrot.slane %v2133_v31, 1 }
 0x36d   :  { %v2135_v41 = vmax.f32 %v2133_v31, %v2134_v16 }
 0x36f   :  { %v2150_v40 = vsel %vm971_vm6, %v2135_v41, %v2149_v3 }
 0x370   :  { %2152 = vst [vmem:[#allocation2] sm:$0xff] %v2150_v40 }
 0x371   :  { %2163 = dma.vmem_to_hbm [thread:$0]  %s2159_s15, 128, %s2161_s17, [#allocation3]  }
 0x372   :  { %2721 = dma.done.wait [#allocation3], 128  }
 0x373   :  { %2722 = vsyncadd [#allocation3], 4294967168 }
 0x374   :  { %2168 = vsyncpa [#allocation3], 1 }

</bundles_post_ra>
